<compile_context>
chip_gen: v6e
topology: v6e:2x2x1
jax: 0.10.0
libtpu: 0.0.40
codegen_flags: <defaults>
</compile_context>

<pallas_src>
import jax
import jax.numpy as jnp
from jax.experimental import pallas as pl
from jax.experimental.pallas import tpu as pltpu

IN_RAW = 28 * 28      # 784  (full K dim; no explicit padding)
HID = 512
OUT_RAW = 10
OUT_PAD = 128         # lane-dense output width
NEG_BIG = -1.0e30     # finite "minus infinity" sentinel for padded fc3 columns


def _mnist_mlp_kernel(x_ref, w1_ref, b1_ref, w2_ref, b2_ref, w3_ref, b3_ref,
                      o_ref):
    """One (TILE_B, :) batch slab of the fused 3-layer MLP + log_softmax.

    x/weights are bf16, biases f32, matmul accumulation f32.  Output is
    (TILE_B, 128) f32 log-probs; columns >= 10 are ~-1e30 padding.
    """
    x = x_ref[...]                                                # (TB, 784) bf16

    # fc1 + relu
    h1 = jnp.dot(x, w1_ref[...], preferred_element_type=jnp.float32) + b1_ref[...]
    h1 = jnp.maximum(h1, 0.0).astype(jnp.bfloat16)                # (TB, 512)

    # fc2 + relu
    h2 = jnp.dot(h1, w2_ref[...], preferred_element_type=jnp.float32) + b2_ref[...]
    h2 = jnp.maximum(h2, 0.0).astype(jnp.bfloat16)                # (TB, 512)

    # fc3 (N padded to 128; padded bias entries ~ -1e30 -> vanish in softmax)
    logits = jnp.dot(h2, w3_ref[...], preferred_element_type=jnp.float32)
    logits = logits + b3_ref[...]                                 # (TB, 128) f32

    # numerically stable log_softmax along the lane axis
    m = jnp.max(logits, axis=1, keepdims=True)
    shifted = logits - m
    lse = jnp.log(jnp.sum(jnp.exp(shifted), axis=1, keepdims=True))
    o_ref[...] = shifted - lse


def _prepare_params(params):
    """Cast / pad torch-equivalent params for the kernel."""
    w1, b1, w2, b2, w3, b3 = params
    # fc3: pad output dim 10 -> 128; padded bias = -1e30 kills those columns.
    w3p = (jnp.zeros((HID, OUT_PAD), jnp.float32)
           .at[:, :OUT_RAW].set(w3)).astype(jnp.bfloat16)
    b3p = (jnp.full((1, OUT_PAD), NEG_BIG, jnp.float32)
           .at[:, :OUT_RAW].set(b3.reshape(1, OUT_RAW)))
    return (w1.astype(jnp.bfloat16),
            b1.reshape(1, HID).astype(jnp.float32),
            w2.astype(jnp.bfloat16),
            b2.reshape(1, HID).astype(jnp.float32),
            w3p,
            b3p)


def _pick_tile_b(batch, max_tile_b):
    """Batch tile: big enough to amortize per-step pipeline overhead, but keep
    >= 2 grid steps whenever possible so the 'parallel' batch axis can be
    split across v7x's two TensorCores."""
    half = pl.cdiv(batch, 2)
    tile = pl.cdiv(half, 128) * 128
    return int(max(128, min(tile, max_tile_b)))


def mnist_net_forward(x_nchw, params, *, max_tile_b=512):
    """x_nchw: (B, 1, 28, 28). Returns (B, 10) f32 log-probs (matches torch)."""
    w1p, b1p, w2p, b2p, w3p, b3p = _prepare_params(params)

    B = x_nchw.shape[0]
    tile_b = _pick_tile_b(B, max_tile_b)

    x = x_nchw.reshape(B, IN_RAW).astype(jnp.bfloat16)   # glue: torch x.view(-1, 784)
    bpad = (-B) % tile_b
    x = jnp.pad(x, ((0, bpad), (0, 0)))                  # batch pad only (exact)
    b_total = B + bpad

    # v5e's scoped-VMEM default is 16 MiB; only tiles past 512 need more
    # (v7x physical VMEM is 64 MiB/TC, so 64 MiB is safe everywhere).
    compiler_kwargs = dict(dimension_semantics=("parallel",))
    if tile_b > 512:
        compiler_kwargs["vmem_limit_bytes"] = 64 << 20

    const_map = lambda i: (0, 0)   # weights / biases: same block every step -> resident
    out = pl.pallas_call(
        _mnist_mlp_kernel,
        out_shape=jax.ShapeDtypeStruct((b_total, OUT_PAD), jnp.float32),
        grid=(b_total // tile_b,),
        in_specs=[
            pl.BlockSpec((tile_b, IN_RAW), lambda i: (i, 0)),   # x: streamed per batch tile
            pl.BlockSpec((IN_RAW, HID), const_map),             # w1 (resident)
            pl.BlockSpec((1, HID), const_map),                  # b1
            pl.BlockSpec((HID, HID), const_map),                # w2
            pl.BlockSpec((1, HID), const_map),                  # b2
            pl.BlockSpec((HID, OUT_PAD), const_map),            # w3 (padded)
            pl.BlockSpec((1, OUT_PAD), const_map),              # b3 (-1e30 padded)
        ],
        out_specs=pl.BlockSpec((tile_b, OUT_PAD), lambda i: (i, 0)),
        compiler_params=pltpu.CompilerParams(**compiler_kwargs),
    )(x, w1p, b1p, w2p, b2p, w3p, b3p)

    return out[:B, :OUT_RAW]


def init_params(key):
    """Mimics nn.Linear's U(-1/sqrt(fan_in), +1/sqrt(fan_in)) init.

    Weights stored as (in_features, out_features); biases as (1, out_features).
    """
    def linear(key, fan_in, fan_out):
        kw, kb = jax.random.split(key)
        bound = 1.0 / jnp.sqrt(jnp.float32(fan_in))
        w = jax.random.uniform(kw, (fan_in, fan_out), jnp.float32,
                               minval=-bound, maxval=bound)
        b = jax.random.uniform(kb, (1, fan_out), jnp.float32,
                               minval=-bound, maxval=bound)
        return w, b

    k1, k2, k3 = jax.random.split(key, 3)
    w1, b1 = linear(k1, IN_RAW, HID)
    w2, b2 = linear(k2, HID, HID)
    w3, b3 = linear(k3, HID, OUT_RAW)
    return (w1, b1, w2, b2, w3, b3)


def reference_forward(x_nchw, params):
    """Pure-JAX reference mirroring the kernel's bf16-weight / f32-accum math.

    Note: bf16 weights/activations match a true f32 torch model only to ~1e-2;
    keep everything f32 if strict torch-f32 parity is required.
    """
    w1, b1, w2, b2, w3, b3 = params
    x = x_nchw.reshape(x_nchw.shape[0], IN_RAW)

    def mm(a, w):
        return jnp.dot(a.astype(jnp.bfloat16), w.astype(jnp.bfloat16),
                       preferred_element_type=jnp.float32)

    h1 = jnp.maximum(mm(x, w1) + b1, 0.0).astype(jnp.bfloat16)
    h2 = jnp.maximum(mm(h1, w2) + b2, 0.0).astype(jnp.bfloat16)
    logits = mm(h2, w3) + b3
    return jax.nn.log_softmax(logits, axis=1)


if __name__ == "__main__":
    key = jax.random.PRNGKey(0)
    kx, kp = jax.random.split(key)

    # B=200 is not a tile multiple -> exercises batch padding AND a 2-step
    # grid (tile_b picks 128 here so both v7x TensorCores would get work).
    B = 200
    x = jax.random.normal(kx, (B, 1, 28, 28), dtype=jnp.float32)
    params = init_params(kp)

    out = mnist_net_forward(x, params)
    out = jax.block_until_ready(out)

    ref = reference_forward(x, params)
    assert out.shape == (B, OUT_RAW)
    assert bool(jnp.all(jnp.isfinite(out))), "non-finite log-probs"
    assert jnp.allclose(out, ref, atol=1e-2, rtol=1e-2), "mismatch vs reference"
    # log-probs must normalize: logsumexp over classes ~ 0
    assert jnp.allclose(jax.scipy.special.logsumexp(out, axis=1), 0.0,
                        atol=1e-3), "log_softmax not normalized"

    print("KERNEL_OK")
</pallas_src>

<mosaic_0001>
module attributes {stable_mosaic.version = 11 : i64} {
  func.func @_mnist_mlp_kernel(%arg0: i32, %arg1: memref<128x784xbf16, #tpu.memory_space<vmem>>, %arg2: memref<784x512xbf16, #tpu.memory_space<vmem>>, %arg3: memref<1x512xf32, #tpu.memory_space<vmem>>, %arg4: memref<512x512xbf16, #tpu.memory_space<vmem>>, %arg5: memref<1x512xf32, #tpu.memory_space<vmem>>, %arg6: memref<512x128xbf16, #tpu.memory_space<vmem>>, %arg7: memref<1x128xf32, #tpu.memory_space<vmem>>, %arg8: memref<128x128xf32, #tpu.memory_space<vmem>>) attributes {dimension_semantics = [#tpu.dimension_semantics<parallel>], iteration_bounds = array<i64: 2>, scalar_prefetch = 0 : i64, scratch_operands = 0 : i64, tpu.core_type = #tpu.core_type<tc>, window_params = [{transform_indices = @transform_0, window_bounds = array<i64: 128, 784>}, {pipeline_mode = #tpu.pipeline_mode<synchronous>, transform_indices = @transform_1, window_bounds = array<i64: 784, 512>}, {pipeline_mode = #tpu.pipeline_mode<synchronous>, transform_indices = @transform_2, window_bounds = array<i64: 1, 512>}, {pipeline_mode = #tpu.pipeline_mode<synchronous>, transform_indices = @transform_3, window_bounds = array<i64: 512, 512>}, {pipeline_mode = #tpu.pipeline_mode<synchronous>, transform_indices = @transform_4, window_bounds = array<i64: 1, 512>}, {pipeline_mode = #tpu.pipeline_mode<synchronous>, transform_indices = @transform_5, window_bounds = array<i64: 512, 128>}, {pipeline_mode = #tpu.pipeline_mode<synchronous>, transform_indices = @transform_6, window_bounds = array<i64: 1, 128>}, {transform_indices = @transform_7, window_bounds = array<i64: 128, 128>}]} {
    %c0 = arith.constant 0 : index
    %c0_0 = arith.constant 0 : index
    %0 = vector.load %arg1[%c0, %c0_0] : memref<128x784xbf16, #tpu.memory_space<vmem>>, vector<128x784xbf16>
    %c0_1 = arith.constant 0 : index
    %c0_2 = arith.constant 0 : index
    %1 = vector.load %arg2[%c0_1, %c0_2] : memref<784x512xbf16, #tpu.memory_space<vmem>>, vector<784x512xbf16>
    %cst = arith.constant dense<0.000000e+00> : vector<128x512xf32>
    %2 = tpu.matmul %0, %1, %cst {dimension_numbers = #tpu.dot_dimension_numbers<[1], [0], [0], [1], [0, 0, 1, 1], [], []>} : vector<128x784xbf16>, vector<784x512xbf16>, vector<128x512xf32> -> vector<128x512xf32>
    %c0_3 = arith.constant 0 : index
    %c0_4 = arith.constant 0 : index
    %3 = vector.load %arg3[%c0_3, %c0_4] : memref<1x512xf32, #tpu.memory_space<vmem>>, vector<1x512xf32>
    %4 = vector.broadcast %3 : vector<1x512xf32> to vector<128x512xf32>
    %5 = arith.addf %2, %4 : vector<128x512xf32>
    %cst_5 = arith.constant 0.000000e+00 : f32
    %6 = vector.broadcast %cst_5 : f32 to vector<128x512xf32>
    %7 = arith.maximumf %5, %6 : vector<128x512xf32>
    %8 = arith.truncf %7 : vector<128x512xf32> to vector<128x512xbf16>
    %c0_6 = arith.constant 0 : index
    %c0_7 = arith.constant 0 : index
    %9 = vector.load %arg4[%c0_6, %c0_7] : memref<512x512xbf16, #tpu.memory_space<vmem>>, vector<512x512xbf16>
    %cst_8 = arith.constant dense<0.000000e+00> : vector<128x512xf32>
    %10 = tpu.matmul %8, %9, %cst_8 {dimension_numbers = #tpu.dot_dimension_numbers<[1], [0], [0], [1], [0, 0, 1, 1], [], []>} : vector<128x512xbf16>, vector<512x512xbf16>, vector<128x512xf32> -> vector<128x512xf32>
    %c0_9 = arith.constant 0 : index
    %c0_10 = arith.constant 0 : index
    %11 = vector.load %arg5[%c0_9, %c0_10] : memref<1x512xf32, #tpu.memory_space<vmem>>, vector<1x512xf32>
    %12 = vector.broadcast %11 : vector<1x512xf32> to vector<128x512xf32>
    %13 = arith.addf %10, %12 : vector<128x512xf32>
    %cst_11 = arith.constant 0.000000e+00 : f32
    %14 = vector.broadcast %cst_11 : f32 to vector<128x512xf32>
    %15 = arith.maximumf %13, %14 : vector<128x512xf32>
    %16 = arith.truncf %15 : vector<128x512xf32> to vector<128x512xbf16>
    %c0_12 = arith.constant 0 : index
    %c0_13 = arith.constant 0 : index
    %17 = vector.load %arg6[%c0_12, %c0_13] : memref<512x128xbf16, #tpu.memory_space<vmem>>, vector<512x128xbf16>
    %cst_14 = arith.constant dense<0.000000e+00> : vector<128x128xf32>
    %18 = tpu.matmul %16, %17, %cst_14 {dimension_numbers = #tpu.dot_dimension_numbers<[1], [0], [0], [1], [0, 0, 1, 1], [], []>} : vector<128x512xbf16>, vector<512x128xbf16>, vector<128x128xf32> -> vector<128x128xf32>
    %c0_15 = arith.constant 0 : index
    %c0_16 = arith.constant 0 : index
    %19 = vector.load %arg7[%c0_15, %c0_16] : memref<1x128xf32, #tpu.memory_space<vmem>>, vector<1x128xf32>
    %20 = vector.broadcast %19 : vector<1x128xf32> to vector<128x128xf32>
    %21 = arith.addf %18, %20 : vector<128x128xf32>
    %cst_17 = arith.constant dense<0xFF800000> : vector<128xf32>
    %22 = vector.multi_reduction <maximumf>, %21, %cst_17 [1] : vector<128x128xf32> to vector<128xf32>
    %23 = vector.shape_cast %22 : vector<128xf32> to vector<128x1xf32>
    %24 = vector.broadcast %23 : vector<128x1xf32> to vector<128x128xf32>
    %25 = arith.subf %21, %24 : vector<128x128xf32>
    %26 = math.exp %25 : vector<128x128xf32>
    %cst_18 = arith.constant dense<0.000000e+00> : vector<128xf32>
    %27 = vector.multi_reduction <add>, %26, %cst_18 [1] : vector<128x128xf32> to vector<128xf32>
    %28 = vector.shape_cast %27 : vector<128xf32> to vector<128x1xf32>
    %29 = math.log %28 : vector<128x1xf32>
    %30 = vector.broadcast %29 : vector<128x1xf32> to vector<128x128xf32>
    %31 = arith.subf %25, %30 : vector<128x128xf32>
    %c0_19 = arith.constant 0 : index
    %c0_20 = arith.constant 0 : index
    %32 = vector.load %arg8[%c0_19, %c0_20] : memref<128x128xf32, #tpu.memory_space<vmem>>, vector<128x128xf32>
    tpu.vector_store %arg8[%c0_19, %c0_20], %31 {strides = array<i32>} : memref<128x128xf32, #tpu.memory_space<vmem>>, vector<128x128xf32>,
    return
  }
  func.func @transform_0(%arg0: i32) -> (i32, i32) {
    %c0_i32 = arith.constant 0 : i32
    %c0_i32_0 = arith.constant 0 : i32
    return %arg0, %c0_i32 : i32, i32
  }
  func.func @transform_1(%arg0: i32) -> (i32, i32) {
    %c0_i32 = arith.constant 0 : i32
    %c0_i32_0 = arith.constant 0 : i32
    %c0_i32_1 = arith.constant 0 : i32
    return %c0_i32, %c0_i32_0 : i32, i32
  }
  func.func @transform_2(%arg0: i32) -> (i32, i32) {
    %c0_i32 = arith.constant 0 : i32
    %c0_i32_0 = arith.constant 0 : i32
    %c0_i32_1 = arith.constant 0 : i32
    return %c0_i32, %c0_i32_0 : i32, i32
  }
  func.func @transform_3(%arg0: i32) -> (i32, i32) {
    %c0_i32 = arith.constant 0 : i32
    %c0_i32_0 = arith.constant 0 : i32
    %c0_i32_1 = arith.constant 0 : i32
    return %c0_i32, %c0_i32_0 : i32, i32
  }
  func.func @transform_4(%arg0: i32) -> (i32, i32) {
    %c0_i32 = arith.constant 0 : i32
    %c0_i32_0 = arith.constant 0 : i32
    %c0_i32_1 = arith.constant 0 : i32
    return %c0_i32, %c0_i32_0 : i32, i32
  }
  func.func @transform_5(%arg0: i32) -> (i32, i32) {
    %c0_i32 = arith.constant 0 : i32
    %c0_i32_0 = arith.constant 0 : i32
    %c0_i32_1 = arith.constant 0 : i32
    return %c0_i32, %c0_i32_0 : i32, i32
  }
  func.func @transform_6(%arg0: i32) -> (i32, i32) {
    %c0_i32 = arith.constant 0 : i32
    %c0_i32_0 = arith.constant 0 : i32
    %c0_i32_1 = arith.constant 0 : i32
    return %c0_i32, %c0_i32_0 : i32, i32
  }
  func.func @transform_7(%arg0: i32) -> (i32, i32) {
    %c0_i32 = arith.constant 0 : i32
    %c0_i32_0 = arith.constant 0 : i32
    return %arg0, %c0_i32 : i32, i32
  }
}

</mosaic_0001>

<bundles_post_ra>
// kernel: tpu_custom_call.1
= control target key start
LH: loop header
LB: loop body
LE: loop exit
PB: predicated region body
PF: predicated region fallthrough
CT: control target
= control target key end

     0   :  { %12 = vsyncpa [#allocation3], 0  ;;  %s8292_s0 = inlined_call_operand.vmem [shape: bf16[256,784], index: 0, kind: input, shape index: {}]   ;;  %s8293_s1 = inlined_call_operand.vmem [shape: bf16[784,512], index: 1, kind: input, shape index: {}]   ;;  %s8294_s2 = inlined_call_operand.vmem [shape: f32[1,512], index: 2, kind: input, shape index: {}]   ;;  %s8295_s3 = inlined_call_operand.hbm [shape: bf16[512,512], index: 3, kind: input, shape index: {}]   ;;  %s8296_s4 = inlined_call_operand.vmem [shape: f32[1,512], index: 4, kind: input, shape index: {}]   ;;  %s8297_s5 = inlined_call_operand.hbm [shape: bf16[512,128], index: 5, kind: input, shape index: {}]   ;;  %s8298_s6 = inlined_call_operand.vmem [shape: f32[1,128], index: 6, kind: input, shape index: {}]   ;;  %s8299_s7 = inlined_call_operand.hbm [shape: f32[256,128], index: 7, kind: output, shape index: {}]  }
   0x1   :  { %13 = vsyncpa [#allocation6], 0 }
   0x2   :  { %14 = vsyncpa [#allocation4], 0 }
   0x3   :  { %16 = vsyncpa [#allocation4 + $0x1], 0  ;;  %s6482_s24 = smov 0   ;;  %s6484_s25 = smov 0  }
   0x4   :  { %s6486_s26 = smov 0   ;;  %s6488_s27 = smov 0  }
   0x5 LB: > { %s6503_s28 = sadd.s32 4294967295, %s6430_s27   ;;  %s4950_s29 = sadd.s32 4294967294, %s6430_s27   ;;  %s6430_s27 = sphi %s6488_s27, %s8351_s27   ;;  %s6426_s26 = sphi %s6486_s26, %s8350_s26   ;;  %s6422_s25 = sphi %s6484_s25, %s8349_s25   ;;  %s6418_s24 = sphi %s6482_s24, %s8348_s24  }
   0x6   : > { %s6507_s30 = sadd.s32 1, %s6430_s27   ;;  %s181_s8 = sadd.s32 1, %s6426_s26 }
   0x7   : > { %s178_s9 = ssub.s32 %s6430_s27, %s6507_s30  ;;  %p191_p0 = scmp.ne.s32.totalorder %s6426_s26, %s6422_s25 }
   0x8   : > { %p179_p1 = scmp.eq.s32.totalorder %s178_s9, 0  ;;  %p192_p2 = scmp.eq.s32.totalorder %s6503_s28, 1 }
   0x9   : > { %p197_p3 = scmp.ne.s32.totalorder %s6422_s25, %s6418_s24  ;;  %p198_p4 = scmp.eq.s32.totalorder %s4950_s29, 1 }
   0xa   : > { %s6518_s10 = scalar_select %p179_p1, %s6426_s26, %s181_s8  }
   0xb   : > { %p6520_p5 = por %p192_p2, %p191_p0  ;;  %p6524_p6 = por %p198_p4, %p197_p3 }
   0xc   : > { %p4951_p7 = scmp.ge.s32.totalorder %s6430_s27, 1  ;;  %p205_p8 = scmp.lt.s32.totalorder %s6430_s27, 3 }
   0xd   : > { %s8309_s12 = scalar_select %p6524_p6, 1, 0 }
   0xe   : > { %p8300_p9 = scmp.eq.s32.totalorder %s6503_s28, 0  ;;  %p6531_p10 = pnand %p4951_p7, %p205_p8 }
   0xf   : > { %s6432_s14 = smov [#allocation2]   ;;  %s6433_s17 = smov [#allocation5]  }
  0x10   : > { %s223_s15 = sshll.u32 %s6432_s14, 4  ;;  %p5535_p11 = pneg %p6531_p10  ;;  %s224_s15 = int_to_ptr.vmem [resolvable:$true] %s223_s15 }
  0x11   : > { %s239_s18 = sshll.u32 %s6433_s17, 4  ;;  %s6321_s19 = scalar_lea.vmem %s224_s15, 16384  ;;  %s240_s18 = int_to_ptr.vmem [resolvable:$true] %s239_s18 }
  0x12   : > { %p6539_p12 = pnand %p8300_p9, %p5535_p11  ;;  %p6322_p0 = scmp.ne.s32.totalorder %s224_s15, %s6321_s19 }
  0x13   : > { %p6329_p3 = scmp.lt.s32.totalorder %s224_s15, %s224_s15  ;;  %p6330_p4 = scmp.lt.s32.totalorder %s6321_s19, %s6321_s19 }
  0x14   : > { %p6312_p13 = pneg %p6539_p12 }
  0x15   : > { %p6331_p7 = por %p6330_p4, %p6329_p3 }
  0x16   : > { %p6324_p1 = pnand %p6322_p0, %p6312_p13 }
  0x18   : > { %p6325_p2 = pneg %p6324_p1 }
  0x1a   : > { %p6332_p8 = pnand %p6331_p7, %p6325_p2 }
  0x1c   : > { %6335 = shalt.err (!%p6332_p8)
}
  0x1d   : > { %s6434_s20 = smov 256   ;;  %s6435_s21 = smov 16  }
  0x1e   : > { %5538 = dma.hbm_to_vmem [thread:$0]  (!%p6539_p12), %s8295_s3, 16384, %s224_s15, [#allocation3], %s6434_s20, %s6434_s20, %s6435_s21  }
  0x1f   : > { %s6347_s29 = scalar_lea.vmem %s240_s18, 4096  ;;  %p6355_p9 = scmp.lt.s32.totalorder %s240_s18, %s240_s18 }
  0x20   : > { %p6348_p11 = scmp.ne.s32.totalorder %s240_s18, %s6347_s29  ;;  %p6356_p6 = scmp.lt.s32.totalorder %s6347_s29, %s6347_s29 }
  0x22   : > { %p6350_p0 = pnand %p6348_p11, %p6312_p13  ;;  %p6357_p3 = por %p6356_p6, %p6355_p9 }
  0x24   : > { %p6351_p1 = pneg %p6350_p0 }
  0x26   : > { %p6358_p2 = pnand %p6357_p3, %p6351_p1 }
  0x28   : > { %6361 = shalt.err (!%p6358_p2)
}
  0x29   : > { %s6436_s8 = smov 64   ;;  %s6437_s9 = smov 4  }
  0x2a   : > { %5541 = dma.hbm_to_vmem [thread:$0]  (!%p6539_p12), %s8297_s5, 4096, %s240_s18, [#allocation6], %s6436_s8, %s6436_s8, %s6437_s9  }
  0x2b   : > { %268 = sbr.rel (%p6531_p10) target bundleno = 1374 (0x55e), region = 48 }
  0x30   : > { %p8312_p4 = scmp.eq.s32.totalorder %s6503_s28, 0 }
  0x32   : > { %6405 = dma.done.wait (%p8312_p4), [#allocation3], 16384   ;;  %p8313_p13 = pmov %p8312_p4 }
  0x33   : > { %p8314_p6 = pmov %p8312_p4 }
  0x34   : > { %6407 = vsyncadd (%p8313_p13), [#allocation3], 4294950912 }
  0x35   : > { %6409 = dma.done.wait (%p8314_p6), [#allocation6], 4096   ;;  %p8315_p9 = pmov %p8312_p4 }
  0x36   : > { %v5592_v0 = vld [vmem:[%s8293_s1 + $0xe4] ss:$16 sps:$4 sm:$0xff]   ;;  %v5596_v2 = vld [vmem:[%s8293_s1 + $0xe0] ss:$16 sps:$4 sm:$0xff]   ;;  %s4959_s13 = sshll.u32 %s6503_s28, 4  ;;  %vm1856_vm0 = vcmask 130048  }
  0x37   : > { %6411 = vsyncadd (%p8315_p9), [#allocation6], 4294963200  ;;  %v5594_v1 = vld [vmem:[%s8293_s1 + $0x2e4] ss:$16 sps:$4 sm:$0xff]   ;;  %1881 = vmatprep.subr.bf16.mxu0 %v5592_v0  ;;  %v5597_v3 = vld [vmem:[%s8293_s1 + $0x2e0] ss:$16 sps:$4 sm:$0xff]  }
  0x38   : > { %1994 = vmatprep.subr.bf16.mxu1 %v5594_v1  ;;  %v5598_v4 = vld [vmem:[%s8293_s1 + $0xc4] ss:$16 sps:$4 sm:$0xff]   ;;  %1882 = vmatpush1.bf16.msra.mxu0 %v5596_v2  ;;  %v5602_v6 = vld [vmem:[%s8293_s1 + $0xc0] ss:$16 sps:$4 sm:$0xff]   ;;  %p306_p10 = scmp.lt.s32.totalorder %s4959_s13, 31  ;;  %s302_s29 = sand.u32 1, %s6422_s25  }
  0x39   : > { %1995 = vmatpush1.bf16.msra.mxu1 %v5597_v3  ;;  %v5600_v5 = vld [vmem:[%s8293_s1 + $0x2c4] ss:$16 sps:$4 sm:$0xff]   ;;  %1883 = vmatprep.subr.bf16.mxu0 %v5598_v4  ;;  %v5603_v7 = vld [vmem:[%s8293_s1 + $0x2c0] ss:$16 sps:$4 sm:$0xff]   ;;  %s5395_s14 = sshll.u32 %s6503_s28, 11  ;;  %s6439_s20 = smov [#allocation7]  }
  0x3a   : > { %1996 = vmatprep.subr.bf16.mxu1 %v5600_v5  ;;  %v5604_v8 = vld [vmem:[%s8293_s1 + $0xa4] ss:$16 sps:$4 sm:$0xff]   ;;  %v5608_v10 = vld [vmem:[%s8293_s1 + $0xa0] ss:$16 sps:$4 sm:$0xff]   ;;  %s8353_s13 = smov (!%p306_p10, %s4959_s13), 31  ;;  %s8244_s19 = scalar_lea.hbm %s8299_s7, %s5395_s14 }
  0x3b   : > { %v5606_v9 = vld [vmem:[%s8293_s1 + $0x2a4] ss:$16 sps:$4 sm:$0xff]   ;;  %v5609_v11 = vld [vmem:[%s8293_s1 + $0x2a0] ss:$16 sps:$4 sm:$0xff]   ;;  %s5524_s15 = smul.u32 28, %s8353_s13  ;;  %s4958_s13 = sshll.u32 %s302_s29, 7 }
  0x3c   : > { %1884 = vmatpush1.bf16.msra.mxu0 %v5602_v6  ;;  %v5610_v12 = vld [vmem:[%s8293_s1 + $0x84] ss:$16 sps:$4 sm:$0xff]   ;;  %v5614_v14 = vld [vmem:[%s8293_s1 + $0x80] ss:$16 sps:$4 sm:$0xff]   ;;  %s8208_s8 = scalar_lea.vmem [#allocation7], %s4958_s13  ;;  %s6366_s21 = sshll.u32 %s6439_s20, 4  ;;  %s6367_s21 = int_to_ptr.vmem [resolvable:$false] %s6366_s21 }
  0x3d   : > { %1997 = vmatpush1.bf16.msra.mxu1 %v5603_v7  ;;  %1885 = vmatprep.subr.bf16.mxu0 %v5604_v8  ;;  %v5612_v13 = vld [vmem:[%s8293_s1 + $0x284] ss:$16 sps:$4 sm:$0xff]   ;;  %v5615_v15 = vld [vmem:[%s8293_s1 + $0x280] ss:$16 sps:$4 sm:$0xff]   ;;  %s6710_s9 = scalar_lea.vmem %s8292_s0, %s5524_s15  ;;  %s4866_s17 = sshll.u32 %s8208_s8, 4  ;;  %s8246_s17 = int_to_ptr.vmem [resolvable:$true] %s4866_s17 }
  0x3e   : > { %1998 = vmatprep.subr.bf16.mxu1 %v5606_v9  ;;  %v5616_v16 = vld [vmem:[%s8293_s1 + $0x64] ss:$16 sps:$4 sm:$0xff]   ;;  %v5620_v18 = vld [vmem:[%s8293_s1 + $0x60] ss:$16 sps:$4 sm:$0xff]   ;;  %v5693_v51 = vld [vmem:[%s6710_s9 + $0xc] ss:$28 sps:$4 sm:$0xff]   ;;  %p6369_p11 = scmp.lt.s32.totalorder %s8246_s17, %s6367_s21 }
  0x3f   : > { %v5618_v17 = vld [vmem:[%s8293_s1 + $0x264] ss:$16 sps:$4 sm:$0xff]   ;;  %v5621_v19 = vld [vmem:[%s8293_s1 + $0x260] ss:$16 sps:$4 sm:$0xff]   ;;  %2026 = vmatprep.mubr.bf16.mxu1 %v5693_v51  ;;  %v5703_v9 = vld [vmem:[%s6710_s9 + $0x3c] ss:$28 sps:$4 sm:$0xff]  }
  0x40   : > { %1886 = vmatpush1.bf16.msra.mxu0 %v5608_v10  ;;  %v5622_v20 = vld [vmem:[%s8293_s1 + $0x44] ss:$16 sps:$4 sm:$0xff]   ;;  %v5626_v22 = vld [vmem:[%s8293_s1 + $0x40] ss:$16 sps:$4 sm:$0xff]   ;;  %v5765_v51 = vld [vmem:[%s6710_s9 + $0x15c] ss:$28 sps:$4 sm:$0xff]  }
  0x41   : > { %1999 = vmatpush1.bf16.msra.mxu1 %v5609_v11  ;;  %1887 = vmatprep.subr.bf16.mxu0 %v5610_v12  ;;  %v5624_v21 = vld [vmem:[%s8293_s1 + $0x244] ss:$16 sps:$4 sm:$0xff]   ;;  %v5627_v23 = vld [vmem:[%s8293_s1 + $0x240] ss:$16 sps:$4 sm:$0xff]   ;;  %s6362_s28 = scalar_lea.vmem %s8246_s17, 2048  ;;  %s6368_s22 = scalar_lea.vmem %s6367_s21, 4096 }
  0x42   : > { %2000 = vmatprep.subr.bf16.mxu1 %v5612_v13  ;;  %v5628_v24 = vld [vmem:[%s8293_s1 + $0x24] ss:$16 sps:$4 sm:$0xff]   ;;  %v5632_v26 = vld [vmem:[%s8293_s1 + $0x20] ss:$16 sps:$4 sm:$0xff]   ;;  %p6363_p12 = scmp.ne.s32.totalorder %s8246_s17, %s6362_s28  ;;  %p6370_p0 = scmp.lt.s32.totalorder %s6368_s22, %s6362_s28 }
  0x43   : > { %v5630_v25 = vld [vmem:[%s8293_s1 + $0x224] ss:$16 sps:$4 sm:$0xff]   ;;  %v5633_v27 = vld [vmem:[%s8293_s1 + $0x220] ss:$16 sps:$4 sm:$0xff]  }
  0x44   : > { %1888 = vmatpush1.bf16.msra.mxu0 %v5614_v14  ;;  %v5634_v28 = vld [vmem:[%s8293_s1 + $0x4] ss:$16 sps:$4 sm:$0xff]   ;;  %v5638_v30 = vld [vmem:[%s8293_s1] ss:$16 sps:$4 sm:$0xff]   ;;  %p6364_p7 = pnand %p6363_p12, %p6520_p5  ;;  %p6371_p1 = por %p6370_p0, %p6369_p11 }
  0x45   : > { %2001 = vmatpush1.bf16.msra.mxu1 %v5615_v15  ;;  %1889 = vmatprep.subr.bf16.mxu0 %v5616_v16  ;;  %v5636_v29 = vld [vmem:[%s8293_s1 + $0x204] ss:$16 sps:$4 sm:$0xff]   ;;  %v5639_v31 = vld [vmem:[%s8293_s1 + $0x200] ss:$16 sps:$4 sm:$0xff]  }
  0x46   : > { %2002 = vmatprep.subr.bf16.mxu1 %v5618_v17  ;;  %v5640_v32 = vld [vmem:[%s8293_s1 + $0x1e4] ss:$16 sps:$4 sm:$0xff]   ;;  %v5644_v34 = vld [vmem:[%s8293_s1 + $0x1e0] ss:$16 sps:$4 sm:$0xff]   ;;  %p6365_p8 = pneg %p6364_p7 }
  0x47   : > { %v5642_v33 = vld [vmem:[%s8293_s1 + $0x3e4] ss:$16 sps:$4 sm:$0xff]   ;;  %v5645_v35 = vld [vmem:[%s8293_s1 + $0x3e0] ss:$16 sps:$4 sm:$0xff]  }
  0x48   : > { %1890 = vmatpush1.bf16.msra.mxu0 %v5620_v18  ;;  %v5646_v36 = vld [vmem:[%s8293_s1 + $0x1c4] ss:$16 sps:$4 sm:$0xff]   ;;  %v5650_v38 = vld [vmem:[%s8293_s1 + $0x1c0] ss:$16 sps:$4 sm:$0xff]   ;;  %v5717_v18 = vld [vmem:[%s6710_s9 + $0x7c] ss:$28 sps:$4 sm:$0xff]   ;;  %p6372_p3 = pnand %p6371_p1, %p6365_p8 }
  0x49   : > { %2003 = vmatpush1.bf16.msra.mxu1 %v5621_v19  ;;  %1891 = vmatprep.subr.bf16.mxu0 %v5622_v20  ;;  %v5648_v37 = vld [vmem:[%s8293_s1 + $0x3c4] ss:$16 sps:$4 sm:$0xff]   ;;  %v5651_v39 = vld [vmem:[%s8293_s1 + $0x3c0] ss:$16 sps:$4 sm:$0xff]  }
  0x4a   : > { %2004 = vmatprep.subr.bf16.mxu1 %v5624_v21  ;;  %v5652_v40 = vld [vmem:[%s8293_s1 + $0x1a4] ss:$16 sps:$4 sm:$0xff]   ;;  %v5656_v42 = vld [vmem:[%s8293_s1 + $0x1a0] ss:$16 sps:$4 sm:$0xff]  }
  0x4b   : > { %v5654_v41 = vld [vmem:[%s8293_s1 + $0x3a4] ss:$16 sps:$4 sm:$0xff]   ;;  %v5657_v43 = vld [vmem:[%s8293_s1 + $0x3a0] ss:$16 sps:$4 sm:$0xff]  }
  0x4c   : > { %1892 = vmatpush1.bf16.msra.mxu0 %v5626_v22  ;;  %v5658_v44 = vld [vmem:[%s8293_s1 + $0x184] ss:$16 sps:$4 sm:$0xff]   ;;  %v5662_v46 = vld [vmem:[%s8293_s1 + $0x180] ss:$16 sps:$4 sm:$0xff]  }
  0x4d   : > { %2005 = vmatpush1.bf16.msra.mxu1 %v5627_v23  ;;  %1893 = vmatprep.subr.bf16.mxu0 %v5628_v24  ;;  %v5660_v45 = vld [vmem:[%s8293_s1 + $0x384] ss:$16 sps:$4 sm:$0xff]   ;;  %v5663_v47 = vld [vmem:[%s8293_s1 + $0x380] ss:$16 sps:$4 sm:$0xff]  }
  0x4e   : > { %2006 = vmatprep.subr.bf16.mxu1 %v5630_v25  ;;  %v5664_v48 = vld [vmem:[%s8293_s1 + $0x164] ss:$16 sps:$4 sm:$0xff]   ;;  %v5668_v52 = vld [vmem:[%s8293_s1 + $0x160] ss:$16 sps:$4 sm:$0xff]   ;;  %v5727_v25 = vld [vmem:[%s6710_s9 + $0xac] ss:$28 sps:$4 sm:$0xff]  }
  0x4f   : > { %v5690_v49 = vld [vmem:[%s6710_s9 + $0x4] ss:$28 sps:$4 sm:$0xff]   ;;  %v5707_v13 = vld [vmem:[%s6710_s9 + $0x38] ss:$28 sps:$4 sm:$0xff]   ;;  %v5719_v21 = vld [vmem:[%s6710_s9 + $0x70] ss:$28 sps:$4 sm:$0xff]  }
  0x50   : > { %1894 = vmatpush1.bf16.msra.mxu0 %v5632_v26  ;;  %v5666_v50 = vld [vmem:[%s8293_s1 + $0x364] ss:$16 sps:$4 sm:$0xff]   ;;  %1913 = vmatprep.mubr.bf16.mxu0 %v5690_v49  ;;  %v5669_v53 = vld [vmem:[%s8293_s1 + $0x360] ss:$16 sps:$4 sm:$0xff]  }
  0x51   : > { %2007 = vmatpush1.bf16.msra.mxu1 %v5633_v27  ;;  %1895 = vmatprep.subr.bf16.mxu0 %v5634_v28  ;;  %v5670_v54 = vld [vmem:[%s8293_s1 + $0x144] ss:$16 sps:$4 sm:$0xff]   ;;  %v5674_v56 = vld [vmem:[%s8293_s1 + $0x140] ss:$16 sps:$4 sm:$0xff]  }
  0x52   : > { %2008 = vmatprep.subr.bf16.mxu1 %v5636_v29  ;;  %v5672_v55 = vld [vmem:[%s8293_s1 + $0x344] ss:$16 sps:$4 sm:$0xff]   ;;  %v5675_v57 = vld [vmem:[%s8293_s1 + $0x340] ss:$16 sps:$4 sm:$0xff]  }
  0x53   : > { %v5676_v58 = vld [vmem:[%s8293_s1 + $0x124] ss:$16 sps:$4 sm:$0xff]   ;;  %v5680_v60 = vld [vmem:[%s8293_s1 + $0x120] ss:$16 sps:$4 sm:$0xff]  }
  0x54   : > { %1896 = vmatpush1.bf16.msra.mxu0 %v5638_v30  ;;  %v5678_v59 = vld [vmem:[%s8293_s1 + $0x324] ss:$16 sps:$4 sm:$0xff]   ;;  %v5681_v61 = vld [vmem:[%s8293_s1 + $0x320] ss:$16 sps:$4 sm:$0xff]  }
  0x55   : > { %2009 = vmatpush1.bf16.msra.mxu1 %v5639_v31  ;;  %1897 = vmatprep.subr.bf16.mxu0 %v5640_v32  ;;  %v5682_v62 = vld [vmem:[%s8293_s1 + $0x104] ss:$16 sps:$4 sm:$0xff]   ;;  %v5686_v0 = vld [vmem:[%s8293_s1 + $0x100] ss:$16 sps:$4 sm:$0xff]  }
  0x56   : > { %2010 = vmatprep.subr.bf16.mxu1 %v5642_v33  ;;  %v5684_v63 = vld [vmem:[%s8293_s1 + $0x304] ss:$16 sps:$4 sm:$0xff]   ;;  %v5687_v1 = vld [vmem:[%s8293_s1 + $0x300] ss:$16 sps:$4 sm:$0xff]  }
  0x57   : > { %v5696_v2 = vld [vmem:[%s8293_s1 + $0x4e4] ss:$16 sps:$4 sm:$0xff]   ;;  %v5688_v4 = vld [vmem:[%s6710_s9] ss:$28 sps:$4 sm:$0xff]   ;;  %v5732_v30 = vld [vmem:[%s6710_s9 + $0xb0] ss:$28 sps:$4 sm:$0xff]  }
  0x58   : > { %1898 = vmatpush2.bf16.msra.mxu0 %v5644_v34  ;;  %v5699_v3 = vld [vmem:[%s8293_s1 + $0x604] ss:$16 sps:$4 sm:$0xff]   ;;  %v5694_v6 = vld [vmem:[%s8293_s1 + $0x4e0] ss:$16 sps:$4 sm:$0xff]   ;;  %v5741_v34 = vld [vmem:[%s6710_s9 + $0xec] ss:$28 sps:$4 sm:$0xff]  }
  0x59   : > { %2011 = vmatpush2.bf16.msra.mxu1 %v5645_v35  ;;  %1899 = vmatprep.subr.bf16.mxu0 %v5646_v36  ;;  %v5691_v5 = vld [vmem:[%s6710_s9 + $0x8] ss:$28 sps:$4 sm:$0xff]   ;;  %v5697_v7 = vld [vmem:[%s8293_s1 + $0x600] ss:$16 sps:$4 sm:$0xff]   ;;  %v5720_v22 = vld [vmem:[%s6710_s9 + $0x78] ss:$28 sps:$4 sm:$0xff]  }
  0x5a   : > { %2012 = vmatprep.subr.bf16.mxu1 %v5648_v37  ;;  %v5702_v8 = vld [vmem:[%s8293_s1 + $0x4c4] ss:$16 sps:$4 sm:$0xff]   ;;  %v5700_v11 = vld [vmem:[%s8293_s1 + $0x4c0] ss:$16 sps:$4 sm:$0xff]   ;;  %v5796_v35 = vld [vmem:[%s8293_s1 + $0x2ec] ss:$16 sps:$4 sm:$0xff]  }
  0x5b   : > { %v5705_v10 = vld [vmem:[%s6710_s9 + $0x44] ss:$28 sps:$4 sm:$0xff]   ;;  %v5715_v17 = vld [vmem:[%s6710_s9 + $0x74] ss:$28 sps:$4 sm:$0xff]  }
  0x5c   : > { %1900 = vmatpush2.bf16.msra.mxu0 %v5650_v38  ;;  %v5711_v12 = vld [vmem:[%s8293_s1 + $0x4a4] ss:$16 sps:$4 sm:$0xff]   ;;  %v5708_v14 = vld [vmem:[%s6710_s9 + $0x40] ss:$28 sps:$4 sm:$0xff]  }
  0x5d   : > { %2013 = vmatpush2.bf16.msra.mxu1 %v5651_v39  ;;  %1901 = vmatprep.subr.bf16.mxu0 %v5652_v40  ;;  %v5709_v15 = vld [vmem:[%s8293_s1 + $0x4a0] ss:$16 sps:$4 sm:$0xff]   ;;  %v5714_v16 = vld [vmem:[%s8293_s1 + $0x484] ss:$16 sps:$4 sm:$0xff]  }
  0x5e   : > { %2014 = vmatprep.subr.bf16.mxu1 %v5654_v41  ;;  %v5712_v19 = vld [vmem:[%s8293_s1 + $0x480] ss:$16 sps:$4 sm:$0xff]   ;;  %v5723_v20 = vld [vmem:[%s8293_s1 + $0x464] ss:$16 sps:$4 sm:$0xff]   ;;  %v5751_v41 = vld [vmem:[%s6710_s9 + $0x11c] ss:$28 sps:$4 sm:$0xff]  }
  0x5f   : > { %v5721_v23 = vld [vmem:[%s8293_s1 + $0x460] ss:$16 sps:$4 sm:$0xff]   ;;  %v5726_v24 = vld [vmem:[%s8293_s1 + $0x444] ss:$16 sps:$4 sm:$0xff]  }
  0x60   : > { %1902 = vmatpush2.bf16.msra.mxu0 %v5656_v42  ;;  %v5729_v26 = vld [vmem:[%s6710_s9 + $0xb4] ss:$28 sps:$4 sm:$0xff]   ;;  %v5731_v29 = vld [vmem:[%s6710_s9 + $0xa8] ss:$28 sps:$4 sm:$0xff]   ;;  %v5743_v38 = vld [vmem:[%s6710_s9 + $0xe0] ss:$28 sps:$4 sm:$0xff]  }
  0x61   : > { %2015 = vmatpush2.bf16.msra.mxu1 %v5657_v43  ;;  %1903 = vmatprep.subr.bf16.mxu0 %v5658_v44  ;;  %v5724_v27 = vld [vmem:[%s8293_s1 + $0x440] ss:$16 sps:$4 sm:$0xff]   ;;  %v5735_v28 = vld [vmem:[%s8293_s1 + $0x424] ss:$16 sps:$4 sm:$0xff]  }
  0x62   : > { %2016 = vmatprep.subr.bf16.mxu1 %v5660_v45  ;;  %v5733_v31 = vld [vmem:[%s8293_s1 + $0x420] ss:$16 sps:$4 sm:$0xff]   ;;  %v5738_v32 = vld [vmem:[%s8293_s1 + $0x404] ss:$16 sps:$4 sm:$0xff]  }
  0x63   : > { %v5739_v33 = vld [vmem:[%s6710_s9 + $0xe4] ss:$28 sps:$4 sm:$0xff]   ;;  %v5755_v45 = vld [vmem:[%s6710_s9 + $0x118] ss:$28 sps:$4 sm:$0xff]  }
  0x64   : > { %1904 = vmatpush2.bf16.msra.mxu0 %v5662_v46  ;;  %v5736_v36 = vld [vmem:[%s8293_s1 + $0x400] ss:$16 sps:$4 sm:$0xff]   ;;  %v5747_v37 = vld [vmem:[%s8293_s1 + $0x5e4] ss:$16 sps:$4 sm:$0xff]  }
  0x65   : > { %2017 = vmatpush2.bf16.msra.mxu1 %v5663_v47  ;;  %1905 = vmatprep.subr.bf16.mxu0 %v5664_v48  ;;  %v5744_v39 = vld [vmem:[%s6710_s9 + $0xe8] ss:$28 sps:$4 sm:$0xff]   ;;  %v5745_v40 = vld [vmem:[%s8293_s1 + $0x5e0] ss:$16 sps:$4 sm:$0xff]  }
  0x66   : > { %2018 = vmatprep.subr.bf16.mxu1 %v5666_v50  ;;  %v5750_v42 = vld [vmem:[%s8293_s1 + $0x5c4] ss:$16 sps:$4 sm:$0xff]   ;;  %v5748_v44 = vld [vmem:[%s8293_s1 + $0x5c0] ss:$16 sps:$4 sm:$0xff]  }
  0x67   : > { %v5753_v43 = vld [vmem:[%s6710_s9 + $0x124] ss:$28 sps:$4 sm:$0xff]   ;;  %v5763_v49 = vld [vmem:[%s6710_s9 + $0x154] ss:$28 sps:$4 sm:$0xff]  }
  0x68   : > { %1906 = vmatpush2.bf16.msra.mxu0 %v5668_v52  ;;  %v5759_v46 = vld [vmem:[%s8293_s1 + $0x5a4] ss:$16 sps:$4 sm:$0xff]   ;;  %v5756_v47 = vld [vmem:[%s6710_s9 + $0x120] ss:$28 sps:$4 sm:$0xff]  }
  0x69   : > { %2019 = vmatpush2.bf16.msra.mxu1 %v5669_v53  ;;  %1907 = vmatprep.subr.bf16.mxu0 %v5670_v54  ;;  %v5757_v48 = vld [vmem:[%s8293_s1 + $0x5a0] ss:$16 sps:$4 sm:$0xff]   ;;  %v5762_v50 = vld [vmem:[%s8293_s1 + $0x584] ss:$16 sps:$4 sm:$0xff]  }
  0x6a   : > { %2020 = vmatprep.subr.bf16.mxu1 %v5672_v55  ;;  %v5760_v52 = vld [vmem:[%s8293_s1 + $0x580] ss:$16 sps:$4 sm:$0xff]   ;;  %v5771_v54 = vld [vmem:[%s8293_s1 + $0x564] ss:$16 sps:$4 sm:$0xff]  }
  0x6b   : > { %v5767_v53 = vld [vmem:[%s6710_s9 + $0x150] ss:$28 sps:$4 sm:$0xff]   ;;  %v5768_v55 = vld [vmem:[%s6710_s9 + $0x158] ss:$28 sps:$4 sm:$0xff]  }
  0x6c   : > { %1908 = vmatpush2.bf16.msra.mxu0 %v5674_v56  ;;  %v5769_v56 = vld [vmem:[%s8293_s1 + $0x560] ss:$16 sps:$4 sm:$0xff]  }
  0x6d   : > { %2021 = vmatpush2.bf16.msra.mxu1 %v5675_v57  ;;  %1909 = vmatprep.subr.bf16.mxu0 %v5676_v58  ;;  %v5774_v57 = vld [vmem:[%s8293_s1 + $0x544] ss:$16 sps:$4 sm:$0xff]   ;;  %v5775_v58 = vld [vmem:[%s6710_s9 + $0x18c] ss:$28 sps:$4 sm:$0xff]  }
  0x6e   : > { %2022 = vmatprep.subr.bf16.mxu1 %v5678_v59  ;;  %v5777_v59 = vld [vmem:[%s6710_s9 + $0x194] ss:$28 sps:$4 sm:$0xff]  }
  0x70   : > { %1910 = vmatpush2.bf16.msra.mxu0 %v5680_v60  ;;  %v5772_v60 = vld [vmem:[%s8293_s1 + $0x540] ss:$16 sps:$4 sm:$0xff]  }
  0x71   : > { %2023 = vmatpush2.bf16.msra.mxu1 %v5681_v61  ;;  %1911 = vmatprep.subr.bf16.mxu0 %v5682_v62  ;;  %v5783_v61 = vld [vmem:[%s8293_s1 + $0x524] ss:$16 sps:$4 sm:$0xff]  }
  0x72   : > { %2024 = vmatprep.subr.bf16.mxu1 %v5684_v63  ;;  %v5779_v62 = vld [vmem:[%s6710_s9 + $0x188] ss:$28 sps:$4 sm:$0xff]   ;;  %v5780_v63 = vld [vmem:[%s6710_s9 + $0x190] ss:$28 sps:$4 sm:$0xff]  }
  0x74   : > { %1912 = vmatpush2.bf16.msra.mxu0 %v5686_v0  ;;  %v5781_v0 = vld [vmem:[%s8293_s1 + $0x520] ss:$16 sps:$4 sm:$0xff]  }
  0x75   : > { %2025 = vmatpush2.bf16.msra.mxu1 %v5687_v1  ;;  %2107 = vmatprep.subr.bf16.mxu0 %v5696_v2  ;;  %v5789_v1 = vld [vmem:[%s6710_s9 + $0x14] ss:$28 sps:$4 sm:$0xff]  }
  0x76   : > { %2234 = vmatprep.subr.bf16.mxu1 %v5699_v3  ;;  %v5786_v2 = vld [vmem:[%s8293_s1 + $0x504] ss:$16 sps:$4 sm:$0xff]   ;;  %v5784_v3 = vld [vmem:[%s8293_s1 + $0x500] ss:$16 sps:$4 sm:$0xff]  }
  0x77   : > { %1914 = vmatmul.mubr.bf16.vlgmr.msra.gmra.mxu0 %v5688_v4  ;;  %v6438_v4 = vmov 0  }
  0x78   : > { %2027 = vmatmul.mubr.bf16.vlgmr.msra.gmra.mxu1 %v5691_v5  ;;  %2108 = vmatpush1.bf16.msra.mxu0 %v5694_v6  ;;  %v5793_v5 = vld [vmem:[%s8293_s1 + $0xec] ss:$16 sps:$4 sm:$0xff]  }
  0x79   : > { %2235 = vmatpush1.bf16.msra.mxu1 %v5697_v7  ;;  %2109 = vmatprep.subr.bf16.mxu0 %v5702_v8  ;;  %v5787_v6 = vld [vmem:[%s6710_s9 + $0x10] ss:$28 sps:$4 sm:$0xff]   ;;  %v5790_v7 = vld [vmem:[%s6710_s9 + $0x18] ss:$28 sps:$4 sm:$0xff]  }
  0x7a   : > { %1923 = vmatprep.mubr.bf16.mxu0 %v5703_v9  ;;  %2036 = vmatprep.mubr.bf16.mxu1 %v5705_v10  ;;  %v5791_v8 = vld [vmem:[%s8293_s1 + $0xe8] ss:$16 sps:$4 sm:$0xff]   ;;  %v5799_v10 = vld [vmem:[%s8293_s1 + $0xcc] ss:$16 sps:$4 sm:$0xff]  }
  0x7b   : > { %2446 = vmatprep.subr.bf16.mxu1 %v5796_v35  ;;  %v5794_v9 = vld [vmem:[%s8293_s1 + $0x2e8] ss:$16 sps:$4 sm:$0xff]  }
  0x7c   : > { %2110 = vmatpush1.bf16.msra.mxu0 %v5700_v11  ;;  %v5802_v11 = vld [vmem:[%s8293_s1 + $0x2cc] ss:$16 sps:$4 sm:$0xff]   ;;  %v5829_v35 = vld [vmem:[%s8293_s1 + $0x48] ss:$16 sps:$4 sm:$0xff]  }
  0x7d   : > { %2111 = vmatprep.subr.bf16.mxu0 %v5711_v12  ;;  %v5803_v12 = vld [vmem:[%s6710_s9 + $0x4c] ss:$28 sps:$4 sm:$0xff]  }
  0x7f   : > { %1924 = vmatmul.mubr.bf16.gmra.mxu0 %v5707_v13  ;;  %v5797_v13 = vld [vmem:[%s8293_s1 + $0xc8] ss:$16 sps:$4 sm:$0xff]  }
  0x80   : > { %2037 = vmatmul.mubr.bf16.gmra.mxu1 %v5708_v14  ;;  %2112 = vmatpush1.bf16.msra.mxu0 %v5709_v15  ;;  %v5800_v14 = vld [vmem:[%s8293_s1 + $0x2c8] ss:$16 sps:$4 sm:$0xff]  }
  0x81   : > { %1933 = vmatprep.mubr.bf16.mxu0 %v5715_v17  ;;  %2113 = vmatprep.subr.bf16.mxu0 %v5714_v16  ;;  %v5805_v15 = vld [vmem:[%s6710_s9 + $0x48] ss:$28 sps:$4 sm:$0xff]   ;;  %v5809_v16 = vld [vmem:[%s8293_s1 + $0xac] ss:$16 sps:$4 sm:$0xff]  }
  0x82   : > { %2046 = vmatprep.mubr.bf16.mxu1 %v5717_v18  ;;  %v5812_v17 = vld [vmem:[%s8293_s1 + $0x2ac] ss:$16 sps:$4 sm:$0xff]  }
  0x83   : > { %v5806_v18 = vld [vmem:[%s6710_s9 + $0x50] ss:$28 sps:$4 sm:$0xff]  }
  0x84   : > { %2114 = vmatpush1.bf16.msra.mxu0 %v5712_v19  ;;  %v5807_v19 = vld [vmem:[%s8293_s1 + $0xa8] ss:$16 sps:$4 sm:$0xff]  }
  0x85   : > { %2115 = vmatprep.subr.bf16.mxu0 %v5723_v20  ;;  %v5810_v20 = vld [vmem:[%s8293_s1 + $0x2a8] ss:$16 sps:$4 sm:$0xff]  }
  0x87   : > { %1934 = vmatmul.mubr.bf16.gmra.mxu0 %v5719_v21  ;;  %v5815_v21 = vld [vmem:[%s8293_s1 + $0x8c] ss:$16 sps:$4 sm:$0xff]  }
  0x88   : > { %2047 = vmatmul.mubr.bf16.gmra.mxu1 %v5720_v22  ;;  %2116 = vmatpush1.bf16.msra.mxu0 %v5721_v23  ;;  %v5818_v22 = vld [vmem:[%s8293_s1 + $0x28c] ss:$16 sps:$4 sm:$0xff]   ;;  %v5819_v23 = vld [vmem:[%s6710_s9 + $0x84] ss:$28 sps:$4 sm:$0xff]  }
  0x89   : > { %1943 = vmatprep.mubr.bf16.mxu0 %v5727_v25  ;;  %2117 = vmatprep.subr.bf16.mxu0 %v5726_v24  ;;  %v5813_v24 = vld [vmem:[%s8293_s1 + $0x88] ss:$16 sps:$4 sm:$0xff]  }
  0x8a   : > { %2056 = vmatprep.mubr.bf16.mxu1 %v5729_v26  ;;  %v5816_v25 = vld [vmem:[%s8293_s1 + $0x288] ss:$16 sps:$4 sm:$0xff]   ;;  %v5821_v26 = vld [vmem:[%s6710_s9 + $0x80] ss:$28 sps:$4 sm:$0xff]  }
  0x8c   : > { %2118 = vmatpush1.bf16.msra.mxu0 %v5724_v27  ;;  %v5825_v27 = vld [vmem:[%s8293_s1 + $0x6c] ss:$16 sps:$4 sm:$0xff]  }
  0x8d   : > { %2119 = vmatprep.subr.bf16.mxu0 %v5735_v28  ;;  %v5828_v28 = vld [vmem:[%s8293_s1 + $0x26c] ss:$16 sps:$4 sm:$0xff]  }
  0x8f   : > { %1944 = vmatmul.mubr.bf16.gmra.mxu0 %v5731_v29  ;;  %v5822_v29 = vld [vmem:[%s6710_s9 + $0x88] ss:$28 sps:$4 sm:$0xff]  }
  0x90   : > { %2057 = vmatmul.mubr.bf16.gmra.mxu1 %v5732_v30  ;;  %2120 = vmatpush1.bf16.msra.mxu0 %v5733_v31  ;;  %v5823_v30 = vld [vmem:[%s8293_s1 + $0x68] ss:$16 sps:$4 sm:$0xff]  }
  0x91   : > { %1953 = vmatprep.mubr.bf16.mxu0 %v5739_v33  ;;  %2121 = vmatprep.subr.bf16.mxu0 %v5738_v32  ;;  %v5826_v31 = vld [vmem:[%s8293_s1 + $0x268] ss:$16 sps:$4 sm:$0xff]   ;;  %v5831_v32 = vld [vmem:[%s8293_s1 + $0x4c] ss:$16 sps:$4 sm:$0xff]  }
  0x92   : > { %2066 = vmatprep.mubr.bf16.mxu1 %v5741_v34  ;;  %v5834_v33 = vld [vmem:[%s8293_s1 + $0x24c] ss:$16 sps:$4 sm:$0xff]  }
  0x93   : > { %v5835_v34 = vld [vmem:[%s6710_s9 + $0xbc] ss:$28 sps:$4 sm:$0xff]  }
  0x94   : > { %2122 = vmatpush1.bf16.msra.mxu0 %v5736_v36  ;;  %v5832_v36 = vld [vmem:[%s8293_s1 + $0x248] ss:$16 sps:$4 sm:$0xff]  }
  0x95   : > { %2123 = vmatprep.subr.bf16.mxu0 %v5747_v37  ;;  %v5841_v37 = vld [vmem:[%s8293_s1 + $0x2c] ss:$16 sps:$4 sm:$0xff]  }
  0x97   : > { %1954 = vmatmul.mubr.bf16.gmra.mxu0 %v5743_v38  ;;  %v5844_v38 = vld [vmem:[%s8293_s1 + $0x22c] ss:$16 sps:$4 sm:$0xff]  }
  0x98   : > { %2067 = vmatmul.mubr.bf16.gmra.mxu1 %v5744_v39  ;;  %2124 = vmatpush2.bf16.msra.mxu0 %v5745_v40  ;;  %v5837_v39 = vld [vmem:[%s6710_s9 + $0xb8] ss:$28 sps:$4 sm:$0xff]   ;;  %v5838_v40 = vld [vmem:[%s6710_s9 + $0xc0] ss:$28 sps:$4 sm:$0xff]  }
  0x99   : > { %1963 = vmatprep.mubr.bf16.mxu0 %v5751_v41  ;;  %2125 = vmatprep.subr.bf16.mxu0 %v5750_v42  ;;  %v5839_v41 = vld [vmem:[%s8293_s1 + $0x28] ss:$16 sps:$4 sm:$0xff]  }
  0x9a   : > { %2076 = vmatprep.mubr.bf16.mxu1 %v5753_v43  ;;  %v5842_v42 = vld [vmem:[%s8293_s1 + $0x228] ss:$16 sps:$4 sm:$0xff]   ;;  %v5847_v43 = vld [vmem:[%s8293_s1 + $0xc] ss:$16 sps:$4 sm:$0xff]  }
  0x9c   : > { %2126 = vmatpush2.bf16.msra.mxu0 %v5748_v44  ;;  %v5850_v44 = vld [vmem:[%s8293_s1 + $0x20c] ss:$16 sps:$4 sm:$0xff]  }
  0x9d   : > { %2127 = vmatprep.subr.bf16.mxu0 %v5759_v46  ;;  %v5845_v46 = vld [vmem:[%s8293_s1 + $0x8] ss:$16 sps:$4 sm:$0xff]  }
  0x9f   : > { %1964 = vmatmul.mubr.bf16.gmra.mxu0 %v5755_v45  ;;  %v5851_v45 = vld [vmem:[%s6710_s9 + $0xf4] ss:$28 sps:$4 sm:$0xff]  }
  0xa0   : > { %2077 = vmatmul.mubr.bf16.gmra.mxu1 %v5756_v47  ;;  %2128 = vmatpush2.bf16.msra.mxu0 %v5757_v48  ;;  %v5848_v47 = vld [vmem:[%s8293_s1 + $0x208] ss:$16 sps:$4 sm:$0xff]   ;;  %v5857_v48 = vld [vmem:[%s8293_s1 + $0x1ec] ss:$16 sps:$4 sm:$0xff]  }
  0xa1   : > { %1973 = vmatprep.mubr.bf16.mxu0 %v5763_v49  ;;  %2129 = vmatprep.subr.bf16.mxu0 %v5762_v50  ;;  %v5860_v49 = vld [vmem:[%s8293_s1 + $0x3ec] ss:$16 sps:$4 sm:$0xff]  }
  0xa2   : > { %2086 = vmatprep.mubr.bf16.mxu1 %v5765_v51  ;;  %v5853_v50 = vld [vmem:[%s6710_s9 + $0xf0] ss:$28 sps:$4 sm:$0xff]   ;;  %v5854_v51 = vld [vmem:[%s6710_s9 + $0xf8] ss:$28 sps:$4 sm:$0xff]  }
  0xa4   : > { %2130 = vmatpush2.bf16.msra.mxu0 %v5760_v52  ;;  %v5855_v52 = vld [vmem:[%s8293_s1 + $0x1e8] ss:$16 sps:$4 sm:$0xff]  }
  0xa5   : > { %2131 = vmatprep.subr.bf16.mxu0 %v5771_v54  ;;  %v5863_v54 = vld [vmem:[%s8293_s1 + $0x1cc] ss:$16 sps:$4 sm:$0xff]  }
  0xa7   : > { %1974 = vmatmul.mubr.bf16.gmra.mxu0 %v5767_v53  ;;  %v5858_v53 = vld [vmem:[%s8293_s1 + $0x3e8] ss:$16 sps:$4 sm:$0xff]  }
  0xa8   : > { %2087 = vmatmul.mubr.bf16.gmra.mxu1 %v5768_v55  ;;  %2132 = vmatpush2.bf16.msra.mxu0 %v5769_v56  ;;  %v5866_v55 = vld [vmem:[%s8293_s1 + $0x3cc] ss:$16 sps:$4 sm:$0xff]  }
  0xa9   : > { %1983 = vmatprep.mubr.bf16.mxu0 %v5775_v58  ;;  %2133 = vmatprep.subr.bf16.mxu0 %v5774_v57  ;;  %v5867_v56 = vld [vmem:[%s6710_s9 + $0x12c] ss:$28 sps:$4 sm:$0xff]  }
  0xaa   : > { %2096 = vmatprep.mubr.bf16.mxu1 %v5777_v59  ;;  %v5861_v57 = vld [vmem:[%s8293_s1 + $0x1c8] ss:$16 sps:$4 sm:$0xff]   ;;  %v5873_v59 = vld [vmem:[%s8293_s1 + $0x1ac] ss:$16 sps:$4 sm:$0xff]  }
  0xab   : > { %v5864_v58 = vld [vmem:[%s8293_s1 + $0x3c8] ss:$16 sps:$4 sm:$0xff]  }
  0xac   : > { %2134 = vmatpush2.bf16.msra.mxu0 %v5772_v60  ;;  %v5876_v60 = vld [vmem:[%s8293_s1 + $0x3ac] ss:$16 sps:$4 sm:$0xff]  }
  0xad   : > { %2135 = vmatprep.subr.bf16.mxu0 %v5783_v61  ;;  %v5869_v61 = vld [vmem:[%s6710_s9 + $0x128] ss:$28 sps:$4 sm:$0xff]  }
  0xaf   : > { %1984 = vmatmul.mubr.bf16.gmra.mxu0 %v5779_v62  ;;  %v5870_v62 = vld [vmem:[%s6710_s9 + $0x130] ss:$28 sps:$4 sm:$0xff]  }
  0xb0   : > { %2097 = vmatmul.mubr.bf16.gmra.mxu1 %v5780_v63  ;;  %2136 = vmatpush2.bf16.msra.mxu0 %v5781_v0  ;;  %v5871_v63 = vld [vmem:[%s8293_s1 + $0x1a8] ss:$16 sps:$4 sm:$0xff]  }
  0xb1   : > { %2139 = vmatprep.mubr.bf16.mxu0 %v5789_v1  ;;  %2137 = vmatprep.subr.bf16.mxu0 %v5786_v2  ;;  %v5874_v0 = vld [vmem:[%s8293_s1 + $0x3a8] ss:$16 sps:$4 sm:$0xff]   ;;  %v5879_v1 = vld [vmem:[%s8293_s1 + $0x18c] ss:$16 sps:$4 sm:$0xff]  }
  0xb2   : > { %2252 = vmatprep.mubr.bf16.mxu1 %v6438_v4  ;;  %v5882_v2 = vld [vmem:[%s8293_s1 + $0x38c] ss:$16 sps:$4 sm:$0xff]  }
  0xb4   : > { %2138 = vmatpush2.bf16.msra.mxu0 %v5784_v3  ;;  %v5883_v3 = vld [vmem:[%s6710_s9 + $0x164] ss:$28 sps:$4 sm:$0xff]  }
  0xb5   : > { %2333 = vmatprep.subr.bf16.mxu0 %v5793_v5  ;;  %v5877_v5 = vld [vmem:[%s8293_s1 + $0x188] ss:$16 sps:$4 sm:$0xff]  }
  0xb7   : > { %2140 = vmatmul.mubr.bf16.vlgmr.msra.gmra.mxu0 %v5787_v6  ;;  %v5880_v6 = vld [vmem:[%s8293_s1 + $0x388] ss:$16 sps:$4 sm:$0xff]  }
  0xb8   : > { %5213 = vmatmul.mubr.msk.bf16.vlgmr.msra.gmra.mxu1 %vm1856_vm0, %v5790_v7  ;;  %2334 = vmatpush1.bf16.msra.mxu0 %v5791_v8  ;;  %v5889_v7 = vld [vmem:[%s8293_s1 + $0x16c] ss:$16 sps:$4 sm:$0xff]  }
  0xb9   : > { %2447 = vmatpush1.bf16.msra.mxu1 %v5794_v9  ;;  %2335 = vmatprep.subr.bf16.mxu0 %v5799_v10  ;;  %v5892_v8 = vld [vmem:[%s8293_s1 + $0x36c] ss:$16 sps:$4 sm:$0xff]   ;;  %v5886_v10 = vld [vmem:[%s6710_s9 + $0x168] ss:$28 sps:$4 sm:$0xff]  }
  0xba   : > { %2448 = vmatprep.subr.bf16.mxu1 %v5802_v11  ;;  %2149 = vmatprep.mubr.bf16.mxu0 %v5803_v12  ;;  %v5885_v9 = vld [vmem:[%s6710_s9 + $0x160] ss:$28 sps:$4 sm:$0xff]   ;;  %v5887_v11 = vld [vmem:[%s8293_s1 + $0x168] ss:$16 sps:$4 sm:$0xff]  }
  0xbb   : > { %2262 = vmatprep.mubr.bf16.mxu1 %v6438_v4  ;;  %v5890_v12 = vld [vmem:[%s8293_s1 + $0x368] ss:$16 sps:$4 sm:$0xff]  }
  0xbc   : > { %2336 = vmatpush1.bf16.msra.mxu0 %v5797_v13  ;;  %v5895_v13 = vld [vmem:[%s8293_s1 + $0x14c] ss:$16 sps:$4 sm:$0xff]  }
  0xbd   : > { %2449 = vmatpush1.bf16.msra.mxu1 %v5800_v14  ;;  %2337 = vmatprep.subr.bf16.mxu0 %v5809_v16  ;;  %v5898_v14 = vld [vmem:[%s8293_s1 + $0x34c] ss:$16 sps:$4 sm:$0xff]   ;;  %v5893_v16 = vld [vmem:[%s8293_s1 + $0x148] ss:$16 sps:$4 sm:$0xff]  }
  0xbe   : > { %2450 = vmatprep.subr.bf16.mxu1 %v5812_v17  ;;  %v5896_v17 = vld [vmem:[%s8293_s1 + $0x348] ss:$16 sps:$4 sm:$0xff]  }
  0xbf   : > { %2150 = vmatmul.mubr.bf16.gmra.mxu0 %v5805_v15  ;;  %v7100_v15 = vld [vmem:[%s6710_s9 + $0x19c] ss:$28 sps:$4 sm:$0xff]  }
  0xc0   : > { %5214 = vmatmul.mubr.msk.bf16.gmra.mxu1 %vm1856_vm0, %v5806_v18  ;;  %2338 = vmatpush1.bf16.msra.mxu0 %v5807_v19  ;;  %v5901_v18 = vld [vmem:[%s6710_s9 + $0x198] ss:$28 sps:$4 sm:$0xff]   ;;  %v5905_v19 = vld [vmem:[%s8293_s1 + $0x12c] ss:$16 sps:$4 sm:$0xff]  }
  0xc1   : > { %2451 = vmatpush1.bf16.msra.mxu1 %v5810_v20  ;;  %2339 = vmatprep.subr.bf16.mxu0 %v5815_v21  ;;  %v5908_v20 = vld [vmem:[%s8293_s1 + $0x32c] ss:$16 sps:$4 sm:$0xff]  }
  0xc2   : > { %2452 = vmatprep.subr.bf16.mxu1 %v5818_v22  ;;  %2159 = vmatprep.mubr.bf16.mxu0 %v5819_v23  ;;  %v5902_v21 = vld [vmem:[%s6710_s9 + $0x1a0] ss:$28 sps:$4 sm:$0xff]   ;;  %v5903_v22 = vld [vmem:[%s8293_s1 + $0x128] ss:$16 sps:$4 sm:$0xff]  }
  0xc3   : > { %2272 = vmatprep.mubr.bf16.mxu1 %v6438_v4  ;;  %v5906_v23 = vld [vmem:[%s8293_s1 + $0x328] ss:$16 sps:$4 sm:$0xff]  }
  0xc4   : > { %2340 = vmatpush1.bf16.msra.mxu0 %v5813_v24  ;;  %v5911_v24 = vld [vmem:[%s8293_s1 + $0x10c] ss:$16 sps:$4 sm:$0xff]  }
  0xc5   : > { %2453 = vmatpush1.bf16.msra.mxu1 %v5816_v25  ;;  %2341 = vmatprep.subr.bf16.mxu0 %v5825_v27  ;;  %v5914_v25 = vld [vmem:[%s8293_s1 + $0x30c] ss:$16 sps:$4 sm:$0xff]   ;;  %v5912_v27 = vld [vmem:[%s8293_s1 + $0x308] ss:$16 sps:$4 sm:$0xff]  }
  0xc6   : > { %2454 = vmatprep.subr.bf16.mxu1 %v5828_v28  ;;  %v5917_v28 = vld [vmem:[%s8293_s1 + $0x4ec] ss:$16 sps:$4 sm:$0xff]  }
  0xc7   : > { %2160 = vmatmul.mubr.bf16.gmra.mxu0 %v5821_v26  ;;  %v5909_v26 = vld [vmem:[%s8293_s1 + $0x108] ss:$16 sps:$4 sm:$0xff]  }
  0xc8   : > { %5215 = vmatmul.mubr.msk.bf16.gmra.mxu1 %vm1856_vm0, %v5822_v29  ;;  %2342 = vmatpush1.bf16.msra.mxu0 %v5823_v30  ;;  %v5920_v29 = vld [vmem:[%s8293_s1 + $0x60c] ss:$16 sps:$4 sm:$0xff]   ;;  %v6254_v30 = vld [vmem:[%s6710_s9 + $0x4] ss:$28 sps:$4 sm:$0xff]  }
  0xc9   : > { %2455 = vmatpush1.bf16.msra.mxu1 %v5826_v31  ;;  %2343 = vmatprep.subr.bf16.mxu0 %v5831_v32  ;;  %v6255_v31 = vld [vmem:[%s6710_s9 + $0xc] ss:$28 sps:$4 sm:$0xff]  }
  0xca   : > { %2456 = vmatprep.subr.bf16.mxu1 %v5834_v33  ;;  %2169 = vmatprep.mubr.bf16.mxu0 %v5835_v34  ;;  %v5915_v32 = vld [vmem:[%s8293_s1 + $0x4e8] ss:$16 sps:$4 sm:$0xff]   ;;  %v5923_v34 = vld [vmem:[%s8293_s1 + $0x4cc] ss:$16 sps:$4 sm:$0xff]  }
  0xcb   : > { %2282 = vmatprep.mubr.bf16.mxu1 %v6438_v4  ;;  %v5918_v33 = vld [vmem:[%s8293_s1 + $0x608] ss:$16 sps:$4 sm:$0xff]  }
  0xcc   : > { %2344 = vmatpush1.bf16.msra.mxu0 %v5829_v35  ;;  %v5921_v35 = vld [vmem:[%s8293_s1 + $0x4c8] ss:$16 sps:$4 sm:$0xff]  }
  0xcd   : > { %2457 = vmatpush1.bf16.msra.mxu1 %v5832_v36  ;;  %2345 = vmatprep.subr.bf16.mxu0 %v5841_v37  ;;  %v6256_v36 = vld [vmem:[%s6710_s9] ss:$28 sps:$4 sm:$0xff]   ;;  %v6257_v37 = vld [vmem:[%s6710_s9 + $0x8] ss:$28 sps:$4 sm:$0xff]  }
  0xce   : > { %2458 = vmatprep.subr.bf16.mxu1 %v5844_v38  ;;  %v6258_v38 = vld [vmem:[%s6710_s9 + $0x3c] ss:$28 sps:$4 sm:$0xff]  }
  0xcf   : > { %2170 = vmatmul.mubr.bf16.gmra.mxu0 %v5837_v39  ;;  %v5926_v39 = vld [vmem:[%s8293_s1 + $0x4ac] ss:$16 sps:$4 sm:$0xff]  }
  0xd0   : > { %5216 = vmatmul.mubr.msk.bf16.gmra.mxu1 %vm1856_vm0, %v5838_v40  ;;  %2346 = vmatpush1.bf16.msra.mxu0 %v5839_v41  ;;  %v6259_v40 = vld [vmem:[%s6710_s9 + $0x44] ss:$28 sps:$4 sm:$0xff]   ;;  %v5924_v41 = vld [vmem:[%s8293_s1 + $0x4a8] ss:$16 sps:$4 sm:$0xff]  }
  0xd1   : > { %2459 = vmatpush1.bf16.msra.mxu1 %v5842_v42  ;;  %2347 = vmatprep.subr.bf16.mxu0 %v5847_v43  ;;  %v5929_v42 = vld [vmem:[%s8293_s1 + $0x48c] ss:$16 sps:$4 sm:$0xff]   ;;  %v5927_v43 = vld [vmem:[%s8293_s1 + $0x488] ss:$16 sps:$4 sm:$0xff]  }
  0xd2   : > { %2460 = vmatprep.subr.bf16.mxu1 %v5850_v44  ;;  %2179 = vmatprep.mubr.bf16.mxu0 %v5851_v45  ;;  %v6260_v44 = vld [vmem:[%s6710_s9 + $0x38] ss:$28 sps:$4 sm:$0xff]   ;;  %v6261_v45 = vld [vmem:[%s6710_s9 + $0x40] ss:$28 sps:$4 sm:$0xff]  }
  0xd3   : > { %2292 = vmatprep.mubr.bf16.mxu1 %v6438_v4 }
  0xd4   : > { %2348 = vmatpush1.bf16.msra.mxu0 %v5845_v46  ;;  %v6262_v46 = vld [vmem:[%s6710_s9 + $0x74] ss:$28 sps:$4 sm:$0xff]  }
  0xd5   : > { %2461 = vmatpush1.bf16.msra.mxu1 %v5848_v47  ;;  %2349 = vmatprep.subr.bf16.mxu0 %v5857_v48  ;;  %v6263_v47 = vld [vmem:[%s6710_s9 + $0x7c] ss:$28 sps:$4 sm:$0xff]  }
  0xd6   : > { %2462 = vmatprep.subr.bf16.mxu1 %v5860_v49  ;;  %v5932_v48 = vld [vmem:[%s8293_s1 + $0x46c] ss:$16 sps:$4 sm:$0xff]   ;;  %v5930_v49 = vld [vmem:[%s8293_s1 + $0x468] ss:$16 sps:$4 sm:$0xff]  }
  0xd7   : > { %2180 = vmatmul.mubr.bf16.gmra.mxu0 %v5853_v50  ;;  %v5935_v50 = vld [vmem:[%s8293_s1 + $0x44c] ss:$16 sps:$4 sm:$0xff]  }
  0xd8   : > { %5217 = vmatmul.mubr.msk.bf16.gmra.mxu1 %vm1856_vm0, %v5854_v51  ;;  %2350 = vmatpush2.bf16.msra.mxu0 %v5855_v52  ;;  %v5933_v51 = vld [vmem:[%s8293_s1 + $0x448] ss:$16 sps:$4 sm:$0xff]   ;;  %v6264_v52 = vld [vmem:[%s6710_s9 + $0x70] ss:$28 sps:$4 sm:$0xff]  }
  0xd9   : > { %2463 = vmatpush2.bf16.msra.mxu1 %v5858_v53  ;;  %2351 = vmatprep.subr.bf16.mxu0 %v5863_v54  ;;  %v6265_v53 = vld [vmem:[%s6710_s9 + $0x78] ss:$28 sps:$4 sm:$0xff]   ;;  %v6266_v54 = vld [vmem:[%s6710_s9 + $0xac] ss:$28 sps:$4 sm:$0xff]  }
  0xda   : > { %2464 = vmatprep.subr.bf16.mxu1 %v5866_v55  ;;  %2189 = vmatprep.mubr.bf16.mxu0 %v5867_v56  ;;  %v6267_v55 = vld [vmem:[%s6710_s9 + $0xb4] ss:$28 sps:$4 sm:$0xff]   ;;  %v5938_v56 = vld [vmem:[%s8293_s1 + $0x42c] ss:$16 sps:$4 sm:$0xff]  }
  0xdb   : > { %2302 = vmatprep.mubr.bf16.mxu1 %v6438_v4 }
  0xdc   : > { %2352 = vmatpush2.bf16.msra.mxu0 %v5861_v57  ;;  %v5936_v57 = vld [vmem:[%s8293_s1 + $0x428] ss:$16 sps:$4 sm:$0xff]  }
  0xdd   : > { %2465 = vmatpush2.bf16.msra.mxu1 %v5864_v58  ;;  %2353 = vmatprep.subr.bf16.mxu0 %v5873_v59  ;;  %v5941_v58 = vld [vmem:[%s8293_s1 + $0x40c] ss:$16 sps:$4 sm:$0xff]   ;;  %v5939_v59 = vld [vmem:[%s8293_s1 + $0x408] ss:$16 sps:$4 sm:$0xff]  }
  0xde   : > { %2466 = vmatprep.subr.bf16.mxu1 %v5876_v60  ;;  %v6268_v60 = vld [vmem:[%s6710_s9 + $0xa8] ss:$28 sps:$4 sm:$0xff]  }
  0xdf   : > { %2190 = vmatmul.mubr.bf16.gmra.mxu0 %v5869_v61  ;;  %v6269_v61 = vld [vmem:[%s6710_s9 + $0xb0] ss:$28 sps:$4 sm:$0xff]  }
  0xe0   : > { %5218 = vmatmul.mubr.msk.bf16.gmra.mxu1 %vm1856_vm0, %v5870_v62  ;;  %2354 = vmatpush2.bf16.msra.mxu0 %v5871_v63  ;;  %v576_v62 = vlaneseq  ;;  %v6270_v63 = vld [vmem:[%s6710_s9 + $0xe4] ss:$28 sps:$4 sm:$0xff]  }
  0xe1   : > { %2467 = vmatpush2.bf16.msra.mxu1 %v5874_v0  ;;  %2355 = vmatprep.subr.bf16.mxu0 %v5879_v1  ;;  %v6271_v0 = vld [vmem:[%s6710_s9 + $0xec] ss:$28 sps:$4 sm:$0xff]  }
  0xe2   : > { %2468 = vmatprep.subr.bf16.mxu1 %v5882_v2  ;;  %2199 = vmatprep.mubr.bf16.mxu0 %v5883_v3  ;;  %v5944_v1 = vld [vmem:[%s8293_s1 + $0x5ec] ss:$16 sps:$4 sm:$0xff]   ;;  %v5942_v2 = vld [vmem:[%s8293_s1 + $0x5e8] ss:$16 sps:$4 sm:$0xff]   ;;  %v7216_v3 = vshrl.u32 %v576_v62, 7 }
  0xe3   : > { %2312 = vmatprep.mubr.bf16.mxu1 %v6438_v4 }
  0xe4   : > { %2356 = vmatpush2.bf16.msra.mxu0 %v5877_v5  ;;  %8316 = vst [vmem:[#allocation11_spill] sm:$0xff] %v7216_v3  ;;  %v5947_v5 = vld [vmem:[%s8293_s1 + $0x5cc] ss:$16 sps:$4 sm:$0xff]  }
  0xe5   : > { %2469 = vmatpush2.bf16.msra.mxu1 %v5880_v6  ;;  %2357 = vmatprep.subr.bf16.mxu0 %v5889_v7  ;;  %v5945_v6 = vld [vmem:[%s8293_s1 + $0x5c8] ss:$16 sps:$4 sm:$0xff]   ;;  %v6272_v7 = vld [vmem:[%s6710_s9 + $0xe0] ss:$28 sps:$4 sm:$0xff]  }
  0xe6   : > { %2470 = vmatprep.subr.bf16.mxu1 %v5892_v8  ;;  %v6273_v8 = vld [vmem:[%s6710_s9 + $0xe8] ss:$28 sps:$4 sm:$0xff]  }
  0xe7   : > { %2200 = vmatmul.mubr.bf16.gmra.mxu0 %v5885_v9  ;;  %v8301_v9 = vsub.s32 0, %v7216_v3 }
  0xe8   : > { %5219 = vmatmul.mubr.msk.bf16.gmra.mxu1 %vm1856_vm0, %v5886_v10  ;;  %2358 = vmatpush2.bf16.msra.mxu0 %v5887_v11  ;;  %v6274_v10 = vld [vmem:[%s6710_s9 + $0x11c] ss:$28 sps:$4 sm:$0xff]   ;;  %v6275_v11 = vld [vmem:[%s6710_s9 + $0x124] ss:$28 sps:$4 sm:$0xff]  }
  0xe9   : > { %2471 = vmatpush2.bf16.msra.mxu1 %v5890_v12  ;;  %2359 = vmatprep.subr.bf16.mxu0 %v5895_v13  ;;  %v5950_v12 = vld [vmem:[%s8293_s1 + $0x5ac] ss:$16 sps:$4 sm:$0xff]   ;;  %v5948_v13 = vld [vmem:[%s8293_s1 + $0x5a8] ss:$16 sps:$4 sm:$0xff]  }
  0xea   : > { %2472 = vmatprep.subr.bf16.mxu1 %v5898_v14  ;;  %2209 = vmatprep.mubr.bf16.mxu0 %v7100_v15  ;;  %v5953_v14 = vld [vmem:[%s8293_s1 + $0x58c] ss:$16 sps:$4 sm:$0xff]  }
  0xeb   : > { %2322 = vmatprep.mubr.bf16.mxu1 %v6438_v4 }
  0xec   : > { %2360 = vmatpush2.bf16.msra.mxu0 %v5893_v16  ;;  %v5951_v16 = vld [vmem:[%s8293_s1 + $0x588] ss:$16 sps:$4 sm:$0xff]  }
  0xed   : > { %2473 = vmatpush2.bf16.msra.mxu1 %v5896_v17  ;;  %2361 = vmatprep.subr.bf16.mxu0 %v5905_v19  ;;  %v6276_v17 = vld [vmem:[%s6710_s9 + $0x118] ss:$28 sps:$4 sm:$0xff]  }
  0xee   : > { %2474 = vmatprep.subr.bf16.mxu1 %v5908_v20  ;;  %v6278_v19 = vld [vmem:[%s6710_s9 + $0x154] ss:$28 sps:$4 sm:$0xff]   ;;  %v6279_v20 = vld [vmem:[%s6710_s9 + $0x15c] ss:$28 sps:$4 sm:$0xff]  }
  0xef   : > { %2210 = vmatmul.mubr.bf16.gmra.mxu0 %v5901_v18  ;;  %v6277_v18 = vld [vmem:[%s6710_s9 + $0x120] ss:$28 sps:$4 sm:$0xff]  }
  0xf0   : > { %5220 = vmatmul.mubr.msk.bf16.gmra.mxu1 %vm1856_vm0, %v5902_v21  ;;  %2362 = vmatpush2.bf16.msra.mxu0 %v5903_v22  ;;  %v5956_v21 = vld [vmem:[%s8293_s1 + $0x56c] ss:$16 sps:$4 sm:$0xff]   ;;  %v5954_v22 = vld [vmem:[%s8293_s1 + $0x568] ss:$16 sps:$4 sm:$0xff]  }
  0xf1   : > { %2475 = vmatpush2.bf16.msra.mxu1 %v5906_v23  ;;  %2363 = vmatprep.subr.bf16.mxu0 %v5911_v24  ;;  %v5959_v23 = vld [vmem:[%s8293_s1 + $0x54c] ss:$16 sps:$4 sm:$0xff]   ;;  %v5957_v24 = vld [vmem:[%s8293_s1 + $0x548] ss:$16 sps:$4 sm:$0xff]  }
  0xf2   : > { %2476 = vmatprep.subr.bf16.mxu1 %v5914_v25  ;;  %2365 = vmatprep.mubr.bf16.mxu0 %v6254_v30  ;;  %v6280_v25 = vld [vmem:[%s6710_s9 + $0x150] ss:$28 sps:$4 sm:$0xff]   ;;  %v5960_v30 = vld [vmem:[%s8293_s1 + $0x528] ss:$16 sps:$4 sm:$0xff]  }
  0xf3   : > { %2478 = vmatprep.mubr.bf16.mxu1 %v6255_v31  ;;  %v5965_v31 = vld [vmem:[%s8293_s1 + $0x50c] ss:$16 sps:$4 sm:$0xff]  }
  0xf4   : > { %2364 = vmatpush2.bf16.msra.mxu0 %v5909_v26  ;;  %v6281_v26 = vld [vmem:[%s6710_s9 + $0x158] ss:$28 sps:$4 sm:$0xff]  }
  0xf5   : > { %2477 = vmatpush2.bf16.msra.mxu1 %v5912_v27  ;;  %2559 = vmatprep.subr.bf16.mxu0 %v5917_v28  ;;  %v6282_v27 = vld [vmem:[%s6710_s9 + $0x18c] ss:$28 sps:$4 sm:$0xff]   ;;  %v6283_v28 = vld [vmem:[%s6710_s9 + $0x194] ss:$28 sps:$4 sm:$0xff]  }
  0xf6   : > { %2686 = vmatprep.subr.bf16.mxu1 %v5920_v29  ;;  %v5962_v29 = vld [vmem:[%s8293_s1 + $0x52c] ss:$16 sps:$4 sm:$0xff]  }
  0xf7   : > { %2366 = vmatmul.mubr.bf16.vlgmr.msra.gmra.mxu0 %v6256_v36  ;;  %v574_v36 = vld [vmem:[%s8294_s2] sm:$0xf] }
  0xf8   : > { %2479 = vmatmul.mubr.bf16.vlgmr.msra.gmra.mxu1 %v6257_v37  ;;  %2560 = vmatpush1.bf16.msra.mxu0 %v5915_v32  ;;  %v5963_v32 = vld [vmem:[%s8293_s1 + $0x508] ss:$16 sps:$4 sm:$0xff]   ;;  %v5968_v37 = vld [vmem:[#allocation2 + $0xe4] ss:$16 sps:$4 sm:$0xff]  }
  0xf9   : > { %2687 = vmatpush1.bf16.msra.mxu1 %v5918_v33  ;;  %2561 = vmatprep.subr.bf16.mxu0 %v5923_v34  ;;  %v6284_v33 = vld [vmem:[%s6710_s9 + $0x188] ss:$28 sps:$4 sm:$0xff]   ;;  %v6285_v34 = vld [vmem:[%s6710_s9 + $0x190] ss:$28 sps:$4 sm:$0xff]  }
  0xfa   : > { %2375 = vmatprep.mubr.bf16.mxu0 %v6258_v38  ;;  %2488 = vmatprep.mubr.bf16.mxu1 %v6259_v40  ;;  %v8302_v38 = vsub.s32 1, %v7216_v3  ;;  %v5966_v40 = vld [vmem:[#allocation2 + $0xe0] ss:$16 sps:$4 sm:$0xff]  }
  0xfc   : > { %2562 = vmatpush1.bf16.msra.mxu0 %v5921_v35  ;;  %v6286_v35 = vld [vmem:[%s6710_s9 + $0x14] ss:$28 sps:$4 sm:$0xff]  }
  0xfd   : > { %2563 = vmatprep.subr.bf16.mxu0 %v5926_v39  ;;  %v7283_v39 = vrot.slane %v574_v36, %v8301_v9 }
  0xff   : > { %2376 = vmatmul.mubr.bf16.gmra.mxu0 %v6260_v44 }
 0x100   : > { %2489 = vmatmul.mubr.bf16.gmra.mxu1 %v6261_v45  ;;  %2564 = vmatpush1.bf16.msra.mxu0 %v5924_v41  ;;  %v7287_v41 = vrot.slane %v574_v36, %v8302_v38  ;;  %v6287_v45 = vld [vmem:[%s6710_s9 + $0x10] ss:$28 sps:$4 sm:$0xff]  }
 0x101   : > { %2385 = vmatprep.mubr.bf16.mxu0 %v6262_v46  ;;  %2565 = vmatprep.subr.bf16.mxu0 %v5929_v42  ;;  %v5971_v42 = vld [vmem:[#allocation2 + $0xc4] ss:$16 sps:$4 sm:$0xff]   ;;  %v6065_v36 = vld [vmem:[#allocation2 + $0x2c0] ss:$16 sps:$4 sm:$0xff]  }
 0x102   : > { %2498 = vmatprep.mubr.bf16.mxu1 %v6263_v47  ;;  %v6288_v46 = vld [vmem:[%s6710_s9 + $0x18] ss:$28 sps:$4 sm:$0xff]  }
 0x104   : > { %2566 = vmatpush1.bf16.msra.mxu0 %v5927_v43 }
 0x105   : > { %2567 = vmatprep.subr.bf16.mxu0 %v5932_v48  ;;  %v6289_v48 = vld [vmem:[%s6710_s9 + $0x4c] ss:$28 sps:$4 sm:$0xff]  }
 0x107   : > { %2386 = vmatmul.mubr.bf16.gmra.mxu0 %v6264_v52 }
 0x108   : > { %2499 = vmatmul.mubr.bf16.gmra.mxu1 %v6265_v53  ;;  %2568 = vmatpush1.bf16.msra.mxu0 %v5930_v49 }
 0x109   : > { %2395 = vmatprep.mubr.bf16.mxu0 %v6266_v54  ;;  %2569 = vmatprep.subr.bf16.mxu0 %v5935_v50  ;;  %v5974_v54 = vld [vmem:[#allocation2 + $0xa4] ss:$16 sps:$4 sm:$0xff]  }
 0x10a   : > { %2508 = vmatprep.mubr.bf16.mxu1 %v6267_v55 }
 0x10c   : > { %2570 = vmatpush1.bf16.msra.mxu0 %v5933_v51  ;;  %v5969_v51 = vld [vmem:[#allocation2 + $0xc0] ss:$16 sps:$4 sm:$0xff]  }
 0x10d   : > { %2571 = vmatprep.subr.bf16.mxu0 %v5938_v56 }
 0x10f   : > { %2396 = vmatmul.mubr.bf16.gmra.mxu0 %v6268_v60  ;;  %v5972_v60 = vld [vmem:[#allocation2 + $0xa0] ss:$16 sps:$4 sm:$0xff]  }
 0x110   : > { %2509 = vmatmul.mubr.bf16.gmra.mxu1 %v6269_v61  ;;  %2572 = vmatpush1.bf16.msra.mxu0 %v5936_v57  ;;  %v5977_v61 = vld [vmem:[#allocation2 + $0x84] ss:$16 sps:$4 sm:$0xff]  }
 0x111   : > { %2405 = vmatprep.mubr.bf16.mxu0 %v6270_v63  ;;  %2573 = vmatprep.subr.bf16.mxu0 %v5941_v58 }
 0x112   : > { %2518 = vmatprep.mubr.bf16.mxu1 %v6271_v0  ;;  %v6290_v0 = vld [vmem:[%s6710_s9 + $0x48] ss:$28 sps:$4 sm:$0xff]  }
 0x114   : > { %2574 = vmatpush1.bf16.msra.mxu0 %v5939_v59 }
 0x115   : > { %2575 = vmatprep.subr.bf16.mxu0 %v5944_v1  ;;  %v6291_v1 = vld [vmem:[%s6710_s9 + $0x50] ss:$28 sps:$4 sm:$0xff]  }
 0x117   : > { %2406 = vmatmul.mubr.bf16.gmra.mxu0 %v6272_v7 }
 0x118   : > { %2519 = vmatmul.mubr.bf16.gmra.mxu1 %v6273_v8  ;;  %2576 = vmatpush2.bf16.msra.mxu0 %v5942_v2  ;;  %v5975_v8 = vld [vmem:[#allocation2 + $0x80] ss:$16 sps:$4 sm:$0xff]  }
 0x119   : > { %2415 = vmatprep.mubr.bf16.mxu0 %v6274_v10  ;;  %2577 = vmatprep.subr.bf16.mxu0 %v5947_v5  ;;  %v6292_v5 = vld [vmem:[%s6710_s9 + $0x84] ss:$28 sps:$4 sm:$0xff]  }
 0x11a   : > { %2528 = vmatprep.mubr.bf16.mxu1 %v6275_v11 }
 0x11c   : > { %2578 = vmatpush2.bf16.msra.mxu0 %v5945_v6 }
 0x11d   : > { %2579 = vmatprep.subr.bf16.mxu0 %v5950_v12  ;;  %v5980_v12 = vld [vmem:[#allocation2 + $0x64] ss:$16 sps:$4 sm:$0xff]  }
 0x11f   : > { %2416 = vmatmul.mubr.bf16.gmra.mxu0 %v6276_v17 }
 0x120   : > { %2529 = vmatmul.mubr.bf16.gmra.mxu1 %v6277_v18  ;;  %2580 = vmatpush2.bf16.msra.mxu0 %v5948_v13 }
 0x121   : > { %2425 = vmatprep.mubr.bf16.mxu0 %v6278_v19  ;;  %2581 = vmatprep.subr.bf16.mxu0 %v5953_v14  ;;  %v5978_v19 = vld [vmem:[#allocation2 + $0x60] ss:$16 sps:$4 sm:$0xff]  }
 0x122   : > { %2538 = vmatprep.mubr.bf16.mxu1 %v6279_v20  ;;  %v6064_v20 = vld [vmem:[#allocation2 + $0x2e4] ss:$16 sps:$4 sm:$0xff]  }
 0x123   : > { %3784 = vmatprep.subr.bf16.mxu1 %v6064_v20  ;;  %v5990_v20 = vld [vmem:[#allocation2 + $0x1e0] ss:$16 sps:$4 sm:$0xff]  }
 0x124   : > { %2582 = vmatpush2.bf16.msra.mxu0 %v5951_v16 }
 0x125   : > { %2583 = vmatprep.subr.bf16.mxu0 %v5956_v21  ;;  %v5983_v21 = vld [vmem:[#allocation2 + $0x44] ss:$16 sps:$4 sm:$0xff]  }
 0x127   : > { %2426 = vmatmul.mubr.bf16.gmra.mxu0 %v6280_v25  ;;  %v6293_v25 = vld [vmem:[%s6710_s9 + $0x80] ss:$28 sps:$4 sm:$0xff]  }
 0x128   : > { %2539 = vmatmul.mubr.bf16.gmra.mxu1 %v6281_v26  ;;  %2584 = vmatpush2.bf16.msra.mxu0 %v5954_v22  ;;  %v6062_v22 = vld [vmem:[#allocation2 + $0x2e0] ss:$16 sps:$4 sm:$0xff]   ;;  %v6294_v26 = vld [vmem:[%s6710_s9 + $0x88] ss:$28 sps:$4 sm:$0xff]  }
 0x129   : > { %2435 = vmatprep.mubr.bf16.mxu0 %v6282_v27  ;;  %2585 = vmatprep.subr.bf16.mxu0 %v5959_v23 }
 0x12a   : > { %2548 = vmatprep.mubr.bf16.mxu1 %v6283_v28  ;;  %v6295_v28 = vld [vmem:[%s6710_s9 + $0xbc] ss:$28 sps:$4 sm:$0xff]  }
 0x12c   : > { %2586 = vmatpush2.bf16.msra.mxu0 %v5957_v24 }
 0x12d   : > { %2587 = vmatprep.subr.bf16.mxu0 %v5962_v29 }
 0x12f   : > { %2436 = vmatmul.mubr.bf16.gmra.mxu0 %v6284_v33 }
 0x130   : > { %2549 = vmatmul.mubr.bf16.gmra.mxu1 %v6285_v34  ;;  %2588 = vmatpush2.bf16.msra.mxu0 %v5960_v30 }
 0x131   : > { %2591 = vmatprep.mubr.bf16.mxu0 %v6286_v35  ;;  %2589 = vmatprep.subr.bf16.mxu0 %v5965_v31  ;;  %v5981_v31 = vld [vmem:[#allocation2 + $0x40] ss:$16 sps:$4 sm:$0xff]   ;;  %v5986_v35 = vld [vmem:[#allocation2 + $0x24] ss:$16 sps:$4 sm:$0xff]  }
 0x132   : > { %2704 = vmatprep.mubr.bf16.mxu1 %v6438_v4 }
 0x134   : > { %2590 = vmatpush2.bf16.msra.mxu0 %v5963_v32  ;;  %v6067_v32 = vld [vmem:[#allocation2 + $0x2c4] ss:$16 sps:$4 sm:$0xff]  }
 0x135   : > { %3671 = vmatprep.subr.bf16.mxu0 %v5968_v37 }
 0x137   : > { %v1915_v43 = vpop.f32.mrf.mxu0  ;;  %2592 = vmatmul.mubr.bf16.vlgmr.msra.gmra.mxu0 %v6287_v45  ;;  %v5984_v45 = vld [vmem:[#allocation2 + $0x20] ss:$16 sps:$4 sm:$0xff]  }
 0x138   : > { %v2028_v44 = vpop.f32.mrf.mxu1  ;;  %5221 = vmatmul.mubr.msk.bf16.vlgmr.msra.gmra.mxu1 %vm1856_vm0, %v6288_v46  ;;  %v1916_v47 = vadd.f32 %v1915_v43, %v7283_v39  ;;  %2601 = vmatprep.mubr.bf16.mxu0 %v6289_v48  ;;  %v6070_v46 = vld [vmem:[#allocation2 + $0x2a4] ss:$16 sps:$4 sm:$0xff]   ;;  %v6068_v48 = vld [vmem:[#allocation2 + $0x2a0] ss:$16 sps:$4 sm:$0xff]  }
 0x139   : > { %2714 = vmatprep.mubr.bf16.mxu1 %v6438_v4  ;;  %v1917_v49 = vpop.f32.mrf.mxu0  ;;  %3672 = vmatpush1.bf16.msra.mxu0 %v5966_v40 }
 0x13a   : > { %v2030_v50 = vpop.f32.mrf.mxu1  ;;  %v7295_v52 = vadd.f32 %v2028_v44, %v1916_v47  ;;  %v1918_v53 = vadd.f32 %v1917_v49, %v7287_v41  ;;  %3673 = vmatprep.subr.bf16.mxu0 %v5971_v42  ;;  %3785 = vmatpush1.bf16.msra.mxu1 %v6062_v22  ;;  %v5989_v47 = vld [vmem:[#allocation2 + $0x4] ss:$16 sps:$4 sm:$0xff]  }
 0x13b   : > { %v7298_v55 = vpop.f32.mrf.mxu0  ;;  %3786 = vmatprep.subr.bf16.mxu1 %v6067_v32  ;;  %v5995_v22 = vld [vmem:[#allocation2 + $0x1c4] ss:$16 sps:$4 sm:$0xff]   ;;  %v5993_v32 = vld [vmem:[#allocation2 + $0x1c0] ss:$16 sps:$4 sm:$0xff]  }
 0x13c   : > { %v7300_v56 = vpop.f32.mrf.mxu1  ;;  %v7302_v57 = vadd.f32 %v2030_v50, %v1918_v53  ;;  %v6297_v53 = vld [vmem:[%s6710_s9 + $0xc0] ss:$28 sps:$4 sm:$0xff]  }
 0x13d   : > { %v7304_v58 = vpop.f32.mrf.mxu0  ;;  %3674 = vmatpush1.bf16.msra.mxu0 %v5969_v51  ;;  %v6296_v51 = vld [vmem:[%s6710_s9 + $0xb8] ss:$28 sps:$4 sm:$0xff]  }
 0x13e   : > { %v7306_v59 = vpop.f32.mrf.mxu1  ;;  %3675 = vmatprep.subr.bf16.mxu0 %v5974_v54  ;;  %3787 = vmatpush1.bf16.msra.mxu1 %v6065_v36 }
 0x13f   : > { %v1925_v62 = vpop.f32.mrf.mxu0  ;;  %2602 = vmatmul.mubr.bf16.gmra.mxu0 %v6290_v0  ;;  %3788 = vmatprep.subr.bf16.mxu1 %v6070_v46  ;;  %v6073_v0 = vld [vmem:[#allocation2 + $0x284] ss:$16 sps:$4 sm:$0xff]   ;;  %v6077_v46 = vld [vmem:[#allocation2 + $0x240] ss:$16 sps:$4 sm:$0xff]  }
 0x140   : > { %v2038_v63 = vpop.f32.mrf.mxu1  ;;  %5222 = vmatmul.mubr.msk.bf16.gmra.mxu1 %vm1856_vm0, %v6291_v1  ;;  %v1926_v2 = vadd.f32 %v1925_v62, %v7283_v39  ;;  %2611 = vmatprep.mubr.bf16.mxu0 %v6292_v5  ;;  %v5992_v5 = vld [vmem:[#allocation2 + $0x1e4] ss:$16 sps:$4 sm:$0xff]  }
 0x141   : > { %2724 = vmatprep.mubr.bf16.mxu1 %v6438_v4  ;;  %v1927_v6 = vpop.f32.mrf.mxu0  ;;  %3676 = vmatpush1.bf16.msra.mxu0 %v5972_v60  ;;  %v6298_v60 = vld [vmem:[%s6710_s9 + $0xf4] ss:$28 sps:$4 sm:$0xff]  }
 0x142   : > { %v2040_v7 = vpop.f32.mrf.mxu1  ;;  %v7314_v10 = vadd.f32 %v2038_v63, %v1926_v2  ;;  %v1928_v11 = vadd.f32 %v1927_v6, %v7287_v41  ;;  %3677 = vmatprep.subr.bf16.mxu0 %v5977_v61  ;;  %v5987_v63 = vld [vmem:[#allocation2] ss:$16 sps:$4 sm:$0xff]   ;;  %3789 = vmatpush1.bf16.msra.mxu1 %v6068_v48 }
 0x143   : > { %v7317_v13 = vpop.f32.mrf.mxu0  ;;  %v6071_v6 = vld [vmem:[#allocation2 + $0x280] ss:$16 sps:$4 sm:$0xff]   ;;  %3790 = vmatprep.subr.bf16.mxu1 %v6073_v0  ;;  %v6302_v0 = vld [vmem:[%s6710_s9 + $0x128] ss:$28 sps:$4 sm:$0xff]  }
 0x144   : > { %v7319_v14 = vpop.f32.mrf.mxu1  ;;  %v7321_v16 = vadd.f32 %v2040_v7, %v1928_v11  ;;  %v1930_v3 = vadd.f32 %v7317_v13, %v7283_v39 }
 0x145   : > { %v7323_v17 = vpop.f32.mrf.mxu0  ;;  %3678 = vmatpush1.bf16.msra.mxu0 %v5975_v8 }
 0x146   : > { %v7325_v18 = vpop.f32.mrf.mxu1  ;;  %3679 = vmatprep.subr.bf16.mxu0 %v5980_v12  ;;  %3791 = vmatpush1.bf16.msra.mxu1 %v6071_v6  ;;  %v6304_v6 = vld [vmem:[%s6710_s9 + $0x164] ss:$28 sps:$4 sm:$0xff]  }
 0x147   : > { %v1935_v23 = vpop.f32.mrf.mxu0  ;;  %2612 = vmatmul.mubr.bf16.gmra.mxu0 %v6293_v25 }
 0x148   : > { %v2048_v24 = vpop.f32.mrf.mxu1  ;;  %5223 = vmatmul.mubr.msk.bf16.gmra.mxu1 %vm1856_vm0, %v6294_v26  ;;  %v1936_v27 = vadd.f32 %v1935_v23, %v7283_v39  ;;  %2621 = vmatprep.mubr.bf16.mxu0 %v6295_v28  ;;  %v6074_v23 = vld [vmem:[#allocation2 + $0x260] ss:$16 sps:$4 sm:$0xff]  }
 0x149   : > { %2734 = vmatprep.mubr.bf16.mxu1 %v6438_v4  ;;  %v1937_v29 = vpop.f32.mrf.mxu0  ;;  %3680 = vmatpush1.bf16.msra.mxu0 %v5978_v19  ;;  %v6299_v26 = vld [vmem:[%s6710_s9 + $0xf0] ss:$28 sps:$4 sm:$0xff]  }
 0x14a   : > { %v2050_v30 = vpop.f32.mrf.mxu1  ;;  %v7333_v33 = vadd.f32 %v2048_v24, %v1936_v27  ;;  %v1938_v34 = vadd.f32 %v1937_v29, %v7287_v41  ;;  %3681 = vmatprep.subr.bf16.mxu0 %v5983_v21  ;;  %v6076_v21 = vld [vmem:[#allocation2 + $0x264] ss:$16 sps:$4 sm:$0xff]   ;;  %v6301_v29 = vld [vmem:[%s6710_s9 + $0x12c] ss:$28 sps:$4 sm:$0xff]  }
 0x14b   : > { %v7336_v37 = vpop.f32.mrf.mxu0  ;;  %v6300_v27 = vld [vmem:[%s6710_s9 + $0xf8] ss:$28 sps:$4 sm:$0xff]   ;;  %3792 = vmatprep.subr.bf16.mxu1 %v6076_v21 }
 0x14c   : > { %v7338_v40 = vpop.f32.mrf.mxu1  ;;  %v7340_v42 = vadd.f32 %v2050_v30, %v1938_v34  ;;  %v6079_v34 = vld [vmem:[#allocation2 + $0x244] ss:$16 sps:$4 sm:$0xff]   ;;  %3793 = vmatpush1.bf16.msra.mxu1 %v6074_v23 }
 0x14d   : > { %v7342_v43 = vpop.f32.mrf.mxu0  ;;  %3682 = vmatpush1.bf16.msra.mxu0 %v5981_v31  ;;  %3794 = vmatprep.subr.bf16.mxu1 %v6079_v34  ;;  %v6085_v23 = vld [vmem:[#allocation2 + $0x204] ss:$16 sps:$4 sm:$0xff]   ;;  %v6002_v34 = vld [vmem:[#allocation2 + $0x160] ss:$16 sps:$4 sm:$0xff]  }
 0x14e   : > { %v7344_v44 = vpop.f32.mrf.mxu1  ;;  %3683 = vmatprep.subr.bf16.mxu0 %v5986_v35 }
 0x14f   : > { %v1945_v49 = vpop.f32.mrf.mxu0  ;;  %2622 = vmatmul.mubr.bf16.gmra.mxu0 %v6296_v51 }
 0x150   : > { %v2058_v50 = vpop.f32.mrf.mxu1  ;;  %5224 = vmatmul.mubr.msk.bf16.gmra.mxu1 %vm1856_vm0, %v6297_v53  ;;  %v1946_v54 = vadd.f32 %v1945_v49, %v7283_v39  ;;  %2631 = vmatprep.mubr.bf16.mxu0 %v6298_v60  ;;  %v5996_v53 = vld [vmem:[#allocation2 + $0x1a0] ss:$16 sps:$4 sm:$0xff]   ;;  %v6001_v60 = vld [vmem:[#allocation2 + $0x184] ss:$16 sps:$4 sm:$0xff]  }
 0x151   : > { %2744 = vmatprep.mubr.bf16.mxu1 %v6438_v4  ;;  %v1947_v61 = vpop.f32.mrf.mxu0  ;;  %3684 = vmatpush1.bf16.msra.mxu0 %v5984_v45  ;;  %v5998_v45 = vld [vmem:[#allocation2 + $0x1a4] ss:$16 sps:$4 sm:$0xff]  }
 0x152   : > { %v2060_v62 = vpop.f32.mrf.mxu1  ;;  %v7352_v1 = vadd.f32 %v2058_v50, %v1946_v54  ;;  %v1948_v2 = vadd.f32 %v1947_v61, %v7287_v41  ;;  %3685 = vmatprep.subr.bf16.mxu0 %v5989_v47  ;;  %v6082_v54 = vld [vmem:[#allocation2 + $0x224] ss:$16 sps:$4 sm:$0xff]   ;;  %3795 = vmatpush1.bf16.msra.mxu1 %v6077_v46  ;;  %v6080_v61 = vld [vmem:[#allocation2 + $0x220] ss:$16 sps:$4 sm:$0xff]  }
 0x153   : > { %v7355_v7 = vpop.f32.mrf.mxu0  ;;  %3796 = vmatprep.subr.bf16.mxu1 %v6082_v54  ;;  %v6086_v46 = vld [vmem:[#allocation2 + $0x3e0] ss:$16 sps:$4 sm:$0xff]  }
 0x154   : > { %v7357_v8 = vpop.f32.mrf.mxu1  ;;  %v7359_v11 = vadd.f32 %v2060_v62, %v1948_v2  ;;  %v6303_v2 = vld [vmem:[%s6710_s9 + $0x130] ss:$28 sps:$4 sm:$0xff]  }
 0x155   : > { %v7361_v12 = vpop.f32.mrf.mxu0  ;;  %3686 = vmatpush1.bf16.msra.mxu0 %v5987_v63 }
 0x156   : > { %v7363_v19 = vpop.f32.mrf.mxu1  ;;  %3687 = vmatprep.subr.bf16.mxu0 %v5992_v5  ;;  %3797 = vmatpush1.bf16.msra.mxu1 %v6080_v61  ;;  %v6306_v61 = vld [vmem:[%s6710_s9 + $0x168] ss:$28 sps:$4 sm:$0xff]  }
 0x157   : > { %v1955_v24 = vpop.f32.mrf.mxu0  ;;  %2632 = vmatmul.mubr.bf16.gmra.mxu0 %v6299_v26  ;;  %v6004_v26 = vld [vmem:[#allocation2 + $0x164] ss:$16 sps:$4 sm:$0xff]   ;;  %3798 = vmatprep.subr.bf16.mxu1 %v6085_v23 }
 0x158   : > { %v2068_v25 = vpop.f32.mrf.mxu1  ;;  %5225 = vmatmul.mubr.msk.bf16.gmra.mxu1 %vm1856_vm0, %v6300_v27  ;;  %v1956_v28 = vadd.f32 %v1955_v24, %v7283_v39  ;;  %2641 = vmatprep.mubr.bf16.mxu0 %v6301_v29  ;;  %v6083_v27 = vld [vmem:[#allocation2 + $0x200] ss:$16 sps:$4 sm:$0xff]  }
 0x159   : > { %2754 = vmatprep.mubr.bf16.mxu1 %v6438_v4  ;;  %v1957_v30 = vpop.f32.mrf.mxu0  ;;  %3688 = vmatpush2.bf16.msra.mxu0 %v5990_v20 }
 0x15a   : > { %v2070_v31 = vpop.f32.mrf.mxu1  ;;  %v7371_v35 = vadd.f32 %v2068_v25, %v1956_v28  ;;  %v1958_v36 = vadd.f32 %v1957_v30, %v7287_v41  ;;  %3689 = vmatprep.subr.bf16.mxu0 %v5995_v22  ;;  %v5999_v22 = vld [vmem:[#allocation2 + $0x180] ss:$16 sps:$4 sm:$0xff]   ;;  %3799 = vmatpush1.bf16.msra.mxu1 %v6083_v27 }
 0x15b   : > { %v7374_v47 = vpop.f32.mrf.mxu0  ;;  %v6008_v27 = vld [vmem:[#allocation2 + $0x120] ss:$16 sps:$4 sm:$0xff]  }
 0x15c   : > { %v7376_v48 = vpop.f32.mrf.mxu1  ;;  %v7378_v49 = vadd.f32 %v2070_v31, %v1958_v36  ;;  %v6088_v36 = vld [vmem:[#allocation2 + $0x3e4] ss:$16 sps:$4 sm:$0xff]  }
 0x15d   : > { %v7380_v50 = vpop.f32.mrf.mxu0  ;;  %3690 = vmatpush2.bf16.msra.mxu0 %v5993_v32  ;;  %3800 = vmatprep.subr.bf16.mxu1 %v6088_v36  ;;  %v6013_v36 = vld [vmem:[#allocation2 + $0x104] ss:$16 sps:$4 sm:$0xff]  }
 0x15e   : > { %v7382_v51 = vpop.f32.mrf.mxu1  ;;  %3691 = vmatprep.subr.bf16.mxu0 %v5998_v45  ;;  %v6007_v45 = vld [vmem:[#allocation2 + $0x144] ss:$16 sps:$4 sm:$0xff]   ;;  %3801 = vmatpush2.bf16.msra.mxu1 %v6086_v46 }
 0x15f   : > { %v1965_v62 = vpop.f32.mrf.mxu0  ;;  %2642 = vmatmul.mubr.bf16.gmra.mxu0 %v6302_v0 }
 0x160   : > { %v2078_v63 = vpop.f32.mrf.mxu1  ;;  %5226 = vmatmul.mubr.msk.bf16.gmra.mxu1 %vm1856_vm0, %v6303_v2  ;;  %v1966_v5 = vadd.f32 %v1965_v62, %v7283_v39  ;;  %2651 = vmatprep.mubr.bf16.mxu0 %v6304_v6  ;;  %v6005_v2 = vld [vmem:[#allocation2 + $0x140] ss:$16 sps:$4 sm:$0xff]  }
 0x161   : > { %2764 = vmatprep.mubr.bf16.mxu1 %v6438_v4  ;;  %v1967_v20 = vpop.f32.mrf.mxu0  ;;  %3692 = vmatpush2.bf16.msra.mxu0 %v5996_v53 }
 0x162   : > { %v2080_v21 = vpop.f32.mrf.mxu1  ;;  %v7390_v24 = vadd.f32 %v2078_v63, %v1966_v5  ;;  %v1968_v25 = vadd.f32 %v1967_v20, %v7287_v41  ;;  %3693 = vmatprep.subr.bf16.mxu0 %v6001_v60  ;;  %v6305_v60 = vld [vmem:[%s6710_s9 + $0x160] ss:$28 sps:$4 sm:$0xff]   ;;  %v6091_v5 = vld [vmem:[#allocation2 + $0x3c4] ss:$16 sps:$4 sm:$0xff]  }
 0x163   : > { %v7393_v28 = vpop.f32.mrf.mxu0  ;;  %3802 = vmatprep.subr.bf16.mxu1 %v6091_v5 }
 0x164   : > { %v7395_v29 = vpop.f32.mrf.mxu1  ;;  %v7397_v30 = vadd.f32 %v2080_v21, %v1968_v25  ;;  %v6010_v21 = vld [vmem:[#allocation2 + $0x124] ss:$16 sps:$4 sm:$0xff]  }
 0x165   : > { %v7399_v31 = vpop.f32.mrf.mxu0  ;;  %3694 = vmatpush2.bf16.msra.mxu0 %v5999_v22  ;;  %v6089_v22 = vld [vmem:[#allocation2 + $0x3c0] ss:$16 sps:$4 sm:$0xff]  }
 0x166   : > { %v7401_v32 = vpop.f32.mrf.mxu1  ;;  %3695 = vmatprep.subr.bf16.mxu0 %v6004_v26  ;;  %3803 = vmatpush2.bf16.msra.mxu1 %v6089_v22  ;;  %v6095_v22 = vld [vmem:[#allocation2 + $0x380] ss:$16 sps:$4 sm:$0xff]  }
 0x167   : > { %v1975_v53 = vpop.f32.mrf.mxu0  ;;  %2652 = vmatmul.mubr.bf16.gmra.mxu0 %v6305_v60  ;;  %v6308_v60 = vld [vmem:[%s6710_s9 + $0x1a0] ss:$28 sps:$4 sm:$0xff]  }
 0x168   : > { %v2088_v54 = vpop.f32.mrf.mxu1  ;;  %5227 = vmatmul.mubr.msk.bf16.gmra.mxu1 %vm1856_vm0, %v6306_v61  ;;  %v1976_v62 = vadd.f32 %v1975_v53, %v7283_v39  ;;  %2661 = vmatprep.mubr.bf16.mxu0 %v7100_v15 }
 0x169   : > { %2774 = vmatprep.mubr.bf16.mxu1 %v6438_v4  ;;  %v1977_v63 = vpop.f32.mrf.mxu0  ;;  %3696 = vmatpush2.bf16.msra.mxu0 %v6002_v34  ;;  %v6094_v34 = vld [vmem:[#allocation2 + $0x3a4] ss:$16 sps:$4 sm:$0xff]  }
 0x16a   : > { %v2090_v0 = vpop.f32.mrf.mxu1  ;;  %v7409_v6 = vadd.f32 %v2088_v54, %v1976_v62  ;;  %v1978_v20 = vadd.f32 %v1977_v63, %v7287_v41  ;;  %3697 = vmatprep.subr.bf16.mxu0 %v6007_v45  ;;  %v6092_v45 = vld [vmem:[#allocation2 + $0x3a0] ss:$16 sps:$4 sm:$0xff]   ;;  %v6307_v54 = vld [vmem:[%s6710_s9 + $0x198] ss:$28 sps:$4 sm:$0xff]   ;;  %3804 = vmatprep.subr.bf16.mxu1 %v6094_v34  ;;  %s8252_s9 = scalar_lea.sflag [#allocation4], %s302_s29 }
 0x16b   : > { %v7412_v23 = vpop.f32.mrf.mxu0  ;;  %3805 = vmatpush2.bf16.msra.mxu1 %v6092_v45 }
 0x16c   : > { %v7414_v15 = vpop.f32.mrf.mxu1  ;;  %v7416_v4 = vadd.f32 %v2090_v0, %v1978_v20  ;;  %v6011_v0 = vld [vmem:[#allocation2 + $0x100] ss:$16 sps:$4 sm:$0xff]  }
 0x16d   : > { %v7418_v25 = vpop.f32.mrf.mxu0  ;;  %3698 = vmatpush2.bf16.msra.mxu0 %v6005_v2  ;;  %v6097_v2 = vld [vmem:[#allocation2 + $0x384] ss:$16 sps:$4 sm:$0xff]  }
 0x16e   : > { %v7420_v26 = vpop.f32.mrf.mxu1  ;;  %3699 = vmatprep.subr.bf16.mxu0 %v6010_v21  ;;  %v6016_v21 = vld [vmem:[#allocation2 + $0xec] ss:$16 sps:$4 sm:$0xff]   ;;  %3806 = vmatprep.subr.bf16.mxu1 %v6097_v2 }
 0x16f   : > { %v1985_v46 = vpop.f32.mrf.mxu0  ;;  %2662 = vmatmul.mubr.bf16.gmra.mxu0 %v6307_v54  ;;  %3807 = vmatpush2.bf16.msra.mxu1 %v6095_v22 }
 0x170   : > { %v2098_v53 = vpop.f32.mrf.mxu1  ;;  %5228 = vmatmul.mubr.msk.bf16.gmra.mxu1 %vm1856_vm0, %v6308_v60  ;;  %v1986_v61 = vadd.f32 %v1985_v46, %v7283_v39  ;;  %v1920_v60 = vadd.f32 %v7298_v55, %v7283_v39 }
 0x171   : > { %v1987_v62 = vpop.f32.mrf.mxu0  ;;  %3700 = vmatpush2.bf16.msra.mxu0 %v6008_v27 }
 0x172   : > { %v2100_v63 = vpop.f32.mrf.mxu1  ;;  %v7426_v5 = vadd.f32 %v2098_v53, %v1986_v61  ;;  %v1988_v20 = vadd.f32 %v1987_v62, %v7287_v41  ;;  %3701 = vmatprep.subr.bf16.mxu0 %v6013_v36  ;;  %v6100_v53 = vld [vmem:[#allocation2 + $0x364] ss:$16 sps:$4 sm:$0xff]   ;;  %v6098_v36 = vld [vmem:[#allocation2 + $0x360] ss:$16 sps:$4 sm:$0xff]   ;;  %v1922_v62 = vadd.f32 %v7304_v58, %v7287_v41  ;;  %v2033_v38 = vadd.f32 %v7300_v56, %v1920_v60 }
 0x173   : > { %v7429_v54 = vpop.f32.mrf.mxu0  ;;  %3808 = vmatprep.subr.bf16.mxu1 %v6100_v53  ;;  %v6106_v58 = vld [vmem:[#allocation2 + $0x324] ss:$16 sps:$4 sm:$0xff]  }
 0x174   : > { %8317 = vst [vmem:[#allocation12_spill] sm:$0xff] %v7426_v5  ;;  %8318 = vst [vmem:[#allocation13_spill] sm:$0xff] %v7429_v54  ;;  %v7431_v9 = vpop.f32.mrf.mxu1  ;;  %v7433_v46 = vadd.f32 %v2100_v63, %v1988_v20  ;;  %v6103_v20 = vld [vmem:[#allocation2 + $0x344] ss:$16 sps:$4 sm:$0xff]   ;;  %3809 = vmatpush2.bf16.msra.mxu1 %v6098_v36  ;;  %v2035_v5 = vadd.f32 %v7306_v59, %v1922_v62  ;;  %v2043_v54 = vadd.f32 %v7319_v14, %v1930_v3 }
 0x175   : > { %8319 = vst [vmem:[#allocation14_spill] sm:$0xff] %v7431_v9  ;;  %v7435_v34 = vpop.f32.mrf.mxu0  ;;  %3702 = vmatpush2.bf16.msra.mxu0 %v6011_v0  ;;  %3810 = vmatprep.subr.bf16.mxu1 %v6103_v20  ;;  %v1940_v3 = vadd.f32 %v7336_v37, %v7283_v39  ;;  %v1942_v37 = vadd.f32 %v7342_v43, %v7287_v41 }
 0x176   : > { %8320 = vst [vmem:[#allocation15_spill] sm:$0xff] %v7433_v46  ;;  %8321 = vst [vmem:[#allocation16_spill] sm:$0xff] %v7435_v34  ;;  %v7437_v27 = vpop.f32.mrf.mxu1  ;;  %3897 = vmatprep.subr.bf16.mxu0 %v6016_v21 }
 0x177   : > { %8322 = vst [vmem:[#allocation17_spill] sm:$0xff] %v7437_v27  ;;  %v2141_v45 = vpop.f32.mrf.mxu0  ;;  %v6101_v27 = vld [vmem:[#allocation2 + $0x340] ss:$16 sps:$4 sm:$0xff]   ;;  %v2055_v43 = vadd.f32 %v7344_v44, %v1942_v37 }
 0x178   : > { %v2254_v61 = vpop.f32.mrf.mxu1  ;;  %v2142_v55 = vadd.f32 %v2141_v45, %v7295_v52  ;;  %3811 = vmatpush2.bf16.msra.mxu1 %v6101_v27  ;;  %v1932_v45 = vadd.f32 %v7323_v17, %v7287_v41 }
 0x179   : > { %v2143_v63 = vpop.f32.mrf.mxu0  ;;  %3812 = vmatprep.subr.bf16.mxu1 %v6106_v58  ;;  %v6019_v58 = vld [vmem:[#allocation2 + $0xcc] ss:$16 sps:$4 sm:$0xff]  }
 0x17a   : > { %v2256_v2 = vpop.f32.mrf.mxu1  ;;  %v2144_v0 = vadd.f32 %v2143_v63, %v7302_v57  ;;  %v6104_v57 = vld [vmem:[#allocation2 + $0x320] ss:$16 sps:$4 sm:$0xff]   ;;  %v2255_v36 = vadd.f32 %v2254_v61, %v2142_v55 }
 0x17b   : > { %v2145_v21 = vpop.f32.mrf.mxu0 }
 0x17c   : > { %v2258_v22 = vpop.f32.mrf.mxu1  ;;  %v2146_v53 = vadd.f32 %v2145_v21, %v2033_v38  ;;  %v2257_v34 = vadd.f32 %v2256_v2, %v2144_v0  ;;  %v6109_v21 = vld [vmem:[#allocation2 + $0x304] ss:$16 sps:$4 sm:$0xff]   ;;  %3813 = vmatpush2.bf16.msra.mxu1 %v6104_v57  ;;  %v2785_v27 = vmax.f32 %v2255_v36, 0.0 }
 0x17d   : > { %v2147_v46 = vpop.f32.mrf.mxu0  ;;  %3814 = vmatprep.subr.bf16.mxu1 %v6109_v21  ;;  %v2053_v21 = vadd.f32 %v7338_v40, %v1940_v3  ;;  %v6025_v3 = vld [vmem:[#allocation2 + $0x8c] ss:$16 sps:$4 sm:$0xff]  }
 0x17e   : > { %v2260_v9 = vpop.f32.mrf.mxu1  ;;  %v2259_v56 = vadd.f32 %v2258_v22, %v2146_v53  ;;  %v2148_v60 = vadd.f32 %v2147_v46, %v2035_v5  ;;  %v2786_v13 = vmax.f32 %v2257_v34, 0.0  ;;  %v6107_v46 = vld [vmem:[#allocation2 + $0x300] ss:$16 sps:$4 sm:$0xff]   ;;  %v6014_v53 = vld [vmem:[#allocation2 + $0xe8] ss:$16 sps:$4 sm:$0xff]  }
 0x17f   : > { %v2151_v63 = vpop.f32.mrf.mxu0 }
 0x180   : > { %v2264_v52 = vpop.f32.mrf.mxu1  ;;  %v2261_v59 = vadd.f32 %v2260_v9, %v2148_v60  ;;  %v2789_v38 = vmax.f32 %v2259_v56, 0.0  ;;  %v2152_v61 = vadd.f32 %v2151_v63, %v7314_v10  ;;  %v2045_v9 = vadd.f32 %v7325_v18, %v1932_v45  ;;  %v6112_v56 = vld [vmem:[#allocation2 + $0x2ec] ss:$16 sps:$4 sm:$0xff]   ;;  %3815 = vmatpush2.bf16.msra.mxu1 %v6107_v46  ;;  %v6017_v45 = vld [vmem:[#allocation2 + $0xc8] ss:$16 sps:$4 sm:$0xff]  }
 0x181   : > { %v2153_v62 = vpop.f32.mrf.mxu0  ;;  %4010 = vmatprep.subr.bf16.mxu1 %v6112_v56 }
 0x182   : > { %v2266_v20 = vpop.f32.mrf.mxu1  ;;  %v2790_v2 = vmax.f32 %v2261_v59, 0.0  ;;  %v2154_v5 = vadd.f32 %v2153_v62, %v7321_v16  ;;  %v7459_v14 = vpack.c.bf16 %v2789_v38, %v2785_v27  ;;  %v2265_v18 = vadd.f32 %v2264_v52, %v2152_v61 }
 0x183   : > { %v2155_v0 = vpop.f32.mrf.mxu0 }
 0x184   : > { %v2268_v55 = vpop.f32.mrf.mxu1  ;;  %v2156_v17 = vadd.f32 %v2155_v0, %v2043_v54  ;;  %v7455_v22 = vpack.c.bf16 %v2790_v2, %v2786_v13  ;;  %v2267_v60 = vadd.f32 %v2266_v20, %v2154_v5  ;;  %v6022_v20 = vld [vmem:[#allocation2 + $0xac] ss:$16 sps:$4 sm:$0xff]   ;;  %v2793_v5 = vmax.f32 %v2265_v18, 0.0 }
 0x185   : > { %v2157_v16 = vpop.f32.mrf.mxu0 }
 0x186   : > { %v2270_v34 = vpop.f32.mrf.mxu1  ;;  %v2269_v10 = vadd.f32 %v2268_v55, %v2156_v17  ;;  %v2158_v57 = vadd.f32 %v2157_v16, %v2045_v9  ;;  %3703 = vmatprep.mubr.bf16.mxu0 %v7455_v22  ;;  %v2794_v13 = vmax.f32 %v2267_v60, 0.0  ;;  %v6020_v9 = vld [vmem:[#allocation2 + $0xa8] ss:$16 sps:$4 sm:$0xff]   ;;  %v1952_v60 = vadd.f32 %v7361_v12, %v7287_v41 }
 0x187   : > { %v2161_v54 = vpop.f32.mrf.mxu0  ;;  %3704 = vmatmul.mubr.bf16.vlgmr.msra.gmra.mxu0 %v7459_v14 }
 0x188   : > { %v2274_v36 = vpop.f32.mrf.mxu1  ;;  %v2271_v63 = vadd.f32 %v2270_v34, %v2158_v57  ;;  %3898 = vmatpush1.bf16.msra.mxu0 %v6014_v53  ;;  %v2797_v59 = vmax.f32 %v2269_v10, 0.0  ;;  %v2162_v46 = vadd.f32 %v2161_v54, %v7333_v33  ;;  %v6023_v57 = vld [vmem:[#allocation2 + $0x88] ss:$16 sps:$4 sm:$0xff]   ;;  %v2065_v12 = vadd.f32 %v7363_v19, %v1952_v60 }
 0x189   : > { %v2163_v38 = vpop.f32.mrf.mxu0  ;;  %3899 = vmatprep.subr.bf16.mxu0 %v6019_v58 }
 0x18a   : > { %v2276_v62 = vpop.f32.mrf.mxu1  ;;  %v2798_v52 = vmax.f32 %v2271_v63, 0.0  ;;  %v2164_v2 = vadd.f32 %v2163_v38, %v7340_v42  ;;  %v7471_v17 = vpack.c.bf16 %v2797_v59, %v2793_v5  ;;  %v1950_v42 = vadd.f32 %v7355_v7, %v7283_v39  ;;  %v6028_v7 = vld [vmem:[#allocation2 + $0x6c] ss:$16 sps:$4 sm:$0xff]  }
 0x18b   : > { %v2165_v27 = vpop.f32.mrf.mxu0  ;;  %v2275_v44 = vadd.f32 %v2274_v36, %v2162_v46 }
 0x18c   : > { %v2278_v61 = vpop.f32.mrf.mxu1  ;;  %v2166_v0 = vadd.f32 %v2165_v27, %v2053_v21  ;;  %3900 = vmatpush1.bf16.msra.mxu0 %v6017_v45  ;;  %v7469_v55 = vpack.c.bf16 %v2798_v52, %v2794_v13  ;;  %v2277_v16 = vadd.f32 %v2276_v62, %v2164_v2  ;;  %v2063_v63 = vadd.f32 %v7357_v8, %v1950_v42  ;;  %v6026_v2 = vld [vmem:[#allocation2 + $0x68] ss:$16 sps:$4 sm:$0xff]   ;;  %v6031_v27 = vld [vmem:[#allocation2 + $0x4c] ss:$16 sps:$4 sm:$0xff]  }
 0x18d   : > { %v2167_v53 = vpop.f32.mrf.mxu0  ;;  %3901 = vmatprep.subr.bf16.mxu0 %v6022_v20  ;;  %v2801_v38 = vmax.f32 %v2275_v44, 0.0 }
 0x18e   : > { %v2280_v40 = vpop.f32.mrf.mxu1  ;;  %v2279_v33 = vadd.f32 %v2278_v61, %v2166_v0  ;;  %v2168_v34 = vadd.f32 %v2167_v53, %v2055_v43  ;;  %3713 = vmatprep.mubr.bf16.mxu0 %v7469_v55  ;;  %v2802_v45 = vmax.f32 %v2277_v16, 0.0  ;;  %v1962_v53 = vadd.f32 %v7380_v50, %v7287_v41 }
 0x18f   : > { %v2171_v58 = vpop.f32.mrf.mxu0  ;;  %3714 = vmatmul.mubr.bf16.gmra.mxu0 %v7471_v17 }
 0x190   : > { %v2284_v56 = vpop.f32.mrf.mxu1  ;;  %v2281_v10 = vadd.f32 %v2280_v40, %v2168_v34  ;;  %3902 = vmatpush1.bf16.msra.mxu0 %v6020_v9  ;;  %v2805_v18 = vmax.f32 %v2279_v33, 0.0  ;;  %v2172_v62 = vadd.f32 %v2171_v58, %v7352_v1  ;;  %v2075_v50 = vadd.f32 %v7382_v51, %v1962_v53 }
 0x191   : > { %v2173_v54 = vpop.f32.mrf.mxu0  ;;  %3903 = vmatprep.subr.bf16.mxu0 %v6025_v3  ;;  %v6029_v3 = vld [vmem:[#allocation2 + $0x48] ss:$16 sps:$4 sm:$0xff]  }
 0x192   : > { %v2286_v37 = vpop.f32.mrf.mxu1  ;;  %v2806_v59 = vmax.f32 %v2281_v10, 0.0  ;;  %v2174_v36 = vadd.f32 %v2173_v54, %v7359_v11  ;;  %v7485_v5 = vpack.c.bf16 %v2805_v18, %v2801_v38  ;;  %v1960_v11 = vadd.f32 %v7374_v47, %v7283_v39  ;;  %v6034_v47 = vld [vmem:[#allocation2 + $0x2c] ss:$16 sps:$4 sm:$0xff]  }
 0x193   : > { %v2175_v20 = vpop.f32.mrf.mxu0  ;;  %v2285_v19 = vadd.f32 %v2284_v56, %v2172_v62 }
 0x194   : > { %v2288_v21 = vpop.f32.mrf.mxu1  ;;  %v2176_v13 = vadd.f32 %v2175_v20, %v2063_v63  ;;  %3904 = vmatpush1.bf16.msra.mxu0 %v6023_v57  ;;  %v7483_v52 = vpack.c.bf16 %v2806_v59, %v2802_v45  ;;  %v2287_v61 = vadd.f32 %v2286_v37, %v2174_v36  ;;  %v2073_v34 = vadd.f32 %v7376_v48, %v1960_v11  ;;  %v6037_v59 = vld [vmem:[#allocation2 + $0xc] ss:$16 sps:$4 sm:$0xff]  }
 0x195   : > { %v2177_v46 = vpop.f32.mrf.mxu0  ;;  %3905 = vmatprep.subr.bf16.mxu0 %v6028_v7  ;;  %v2809_v60 = vmax.f32 %v2285_v19, 0.0  ;;  %v6032_v7 = vld [vmem:[#allocation2 + $0x28] ss:$16 sps:$4 sm:$0xff]  }
 0x196   : > { %v2290_v8 = vpop.f32.mrf.mxu1  ;;  %v2289_v1 = vadd.f32 %v2288_v21, %v2176_v13  ;;  %v2178_v43 = vadd.f32 %v2177_v46, %v2065_v12  ;;  %3723 = vmatprep.mubr.bf16.mxu0 %v7483_v52  ;;  %v2810_v44 = vmax.f32 %v2287_v61, 0.0  ;;  %v1972_v21 = vadd.f32 %v7399_v31, %v7287_v41  ;;  %v6035_v13 = vld [vmem:[#allocation2 + $0x8] ss:$16 sps:$4 sm:$0xff]  }
 0x197   : > { %v2181_v0 = vpop.f32.mrf.mxu0  ;;  %3724 = vmatmul.mubr.bf16.gmra.mxu0 %v7485_v5 }
 0x198   : > { %v2294_v9 = vpop.f32.mrf.mxu1  ;;  %v2291_v40 = vadd.f32 %v2290_v8, %v2178_v43  ;;  %3906 = vmatpush1.bf16.msra.mxu0 %v6026_v2  ;;  %v2813_v42 = vmax.f32 %v2289_v1, 0.0  ;;  %v2182_v10 = vadd.f32 %v2181_v0, %v7371_v35  ;;  %v2085_v31 = vadd.f32 %v7401_v32, %v1972_v21 }
 0x199   : > { %v2183_v16 = vpop.f32.mrf.mxu0  ;;  %3907 = vmatprep.subr.bf16.mxu0 %v6031_v27 }
 0x19a   : > { %v2296_v33 = vpop.f32.mrf.mxu1  ;;  %v2814_v58 = vmax.f32 %v2291_v40, 0.0  ;;  %v2184_v56 = vadd.f32 %v2183_v16, %v7378_v49  ;;  %v7499_v63 = vpack.c.bf16 %v2813_v42, %v2809_v60  ;;  %v1970_v49 = vadd.f32 %v7393_v28, %v7283_v39  ;;  %v6040_v28 = vld [vmem:[#allocation2 + $0x1ec] ss:$16 sps:$4 sm:$0xff]  }
 0x19b   : > { %v2185_v57 = vpop.f32.mrf.mxu0  ;;  %v2295_v51 = vadd.f32 %v2294_v9, %v2182_v10  ;;  %v6041_v10 = vld [vmem:[#allocation2 + $0x1c8] ss:$16 sps:$4 sm:$0xff]  }
 0x19c   : > { %v2298_v18 = vpop.f32.mrf.mxu1  ;;  %v2186_v54 = vadd.f32 %v2185_v57, %v2073_v34  ;;  %3908 = vmatpush1.bf16.msra.mxu0 %v6029_v3  ;;  %v7497_v37 = vpack.c.bf16 %v2814_v58, %v2810_v44  ;;  %v2297_v36 = vadd.f32 %v2296_v33, %v2184_v56  ;;  %v2083_v27 = vadd.f32 %v7395_v29, %v1970_v49  ;;  %v6038_v3 = vld [vmem:[#allocation2 + $0x1e8] ss:$16 sps:$4 sm:$0xff]   ;;  %v6043_v33 = vld [vmem:[#allocation2 + $0x1cc] ss:$16 sps:$4 sm:$0xff]  }
 0x19d   : > { %v2187_v45 = vpop.f32.mrf.mxu0  ;;  %3909 = vmatprep.subr.bf16.mxu0 %v6034_v47  ;;  %v2817_v43 = vmax.f32 %v2295_v51, 0.0  ;;  %v1982_v56 = vadd.f32 %v7418_v25, %v7287_v41 }
 0x19e   : > { %v2300_v48 = vpop.f32.mrf.mxu1  ;;  %v2299_v35 = vadd.f32 %v2298_v18, %v2186_v54  ;;  %v2188_v38 = vadd.f32 %v2187_v45, %v2075_v50  ;;  %3733 = vmatprep.mubr.bf16.mxu0 %v7497_v37  ;;  %v2818_v11 = vmax.f32 %v2297_v36, 0.0 }
 0x19f   : > { %v2191_v62 = vpop.f32.mrf.mxu0  ;;  %3734 = vmatmul.mubr.bf16.gmra.mxu0 %v7499_v63  ;;  %v2095_v25 = vadd.f32 %v7420_v26, %v1982_v56 }
 0x1a0   : > { %v2304_v20 = vpop.f32.mrf.mxu1  ;;  %v2301_v12 = vadd.f32 %v2300_v48, %v2188_v38  ;;  %3910 = vmatpush1.bf16.msra.mxu0 %v6032_v7  ;;  %v2821_v2 = vmax.f32 %v2299_v35, 0.0  ;;  %v2192_v19 = vadd.f32 %v2191_v62, %v7390_v24  ;;  %v6044_v62 = vld [vmem:[#allocation2 + $0x1a8] ss:$16 sps:$4 sm:$0xff]  }
 0x1a1   : > { %v2193_v46 = vpop.f32.mrf.mxu0  ;;  %3911 = vmatprep.subr.bf16.mxu0 %v6037_v59 }
 0x1a2   : > { %v2306_v8 = vpop.f32.mrf.mxu1  ;;  %v2822_v61 = vmax.f32 %v2301_v12, 0.0  ;;  %v2194_v1 = vadd.f32 %v2193_v46, %v7397_v30  ;;  %v7513_v42 = vpack.c.bf16 %v2821_v2, %v2817_v43  ;;  %v1980_v30 = vadd.f32 %v7412_v23, %v7283_v39  ;;  %v6046_v23 = vld [vmem:[#allocation2 + $0x1ac] ss:$16 sps:$4 sm:$0xff]   ;;  %v8325_v43 = vld [vmem:[#allocation11_spill] sm:$0xff] }
 0x1a3   : > { %v2195_v0 = vpop.f32.mrf.mxu0  ;;  %v2305_v32 = vadd.f32 %v2304_v20, %v2192_v19  ;;  %v6049_v12 = vld [vmem:[#allocation2 + $0x18c] ss:$16 sps:$4 sm:$0xff]   ;;  %v8305_v19 = vsub.s32 2, %v8325_v43 }
 0x1a4   : > { %v2308_v9 = vpop.f32.mrf.mxu1  ;;  %v2196_v53 = vadd.f32 %v2195_v0, %v2083_v27  ;;  %3912 = vmatpush1.bf16.msra.mxu0 %v6035_v13  ;;  %v7511_v40 = vpack.c.bf16 %v2822_v61, %v2818_v11  ;;  %v2307_v47 = vadd.f32 %v2306_v8, %v2194_v1  ;;  %v2093_v54 = vadd.f32 %v7414_v15, %v1980_v30  ;;  %v8324_v27 = vld [vmem:[#allocation16_spill] sm:$0xff]  ;;  %v8327_v30 = vld [vmem:[#allocation15_spill] sm:$0xff] }
 0x1a5   : > { %v2197_v16 = vpop.f32.mrf.mxu0  ;;  %3913 = vmatprep.subr.bf16.mxu0 %v6040_v28  ;;  %v2825_v59 = vmax.f32 %v2305_v32, 0.0  ;;  %v1992_v11 = vadd.f32 %v8324_v27, %v7287_v41  ;;  %v6047_v1 = vld [vmem:[#allocation2 + $0x188] ss:$16 sps:$4 sm:$0xff]  }
 0x1a6   : > { %v2310_v29 = vpop.f32.mrf.mxu1  ;;  %v2309_v24 = vadd.f32 %v2308_v9, %v2196_v53  ;;  %v2198_v34 = vadd.f32 %v2197_v16, %v2085_v31  ;;  %3743 = vmatprep.mubr.bf16.mxu0 %v7511_v40  ;;  %v2826_v7 = vmax.f32 %v2307_v47, 0.0  ;;  %v6052_v31 = vld [vmem:[#allocation2 + $0x16c] ss:$16 sps:$4 sm:$0xff]   ;;  %v8306_v53 = vsub.s32 3, %v8325_v43 }
 0x1a7   : > { %v2201_v44 = vpop.f32.mrf.mxu0  ;;  %3744 = vmatmul.mubr.bf16.gmra.mxu0 %v7513_v42  ;;  %v8328_v41 = vld [vmem:[#allocation12_spill] sm:$0xff] }
 0x1a8   : > { %v2314_v58 = vpop.f32.mrf.mxu1  ;;  %v2311_v60 = vadd.f32 %v2310_v29, %v2198_v34  ;;  %3914 = vmatpush2.bf16.msra.mxu0 %v6038_v3  ;;  %v2829_v57 = vmax.f32 %v2309_v24, 0.0  ;;  %v2202_v49 = vadd.f32 %v2201_v44, %v7409_v6  ;;  %v8326_v3 = vld [vmem:[#allocation14_spill] sm:$0xff] }
 0x1a9   : > { %v2203_v18 = vpop.f32.mrf.mxu0  ;;  %3915 = vmatprep.subr.bf16.mxu0 %v6043_v33 }
 0x1aa   : > { %v2316_v50 = vpop.f32.mrf.mxu1  ;;  %v2830_v45 = vmax.f32 %v2311_v60, 0.0  ;;  %v2204_v48 = vadd.f32 %v2203_v18, %v7416_v4  ;;  %v7527_v20 = vpack.c.bf16 %v2829_v57, %v2825_v59  ;;  %v8323_v4 = vld [vmem:[#allocation13_spill] sm:$0xff]  ;;  %v2315_v26 = vadd.f32 %v2314_v58, %v2202_v49  ;;  %v6309_v57 = vld [vmem:[%s8294_s2] sm:$0xf] }
 0x1ab   : > { %v2205_v36 = vpop.f32.mrf.mxu0  ;;  %v1990_v13 = vadd.f32 %v8323_v4, %v7283_v39  ;;  %v8329_v58 = vld [vmem:[#allocation17_spill] sm:$0xff]  ;;  %v7548_v18 = vrot.slane %v6309_v57, %v8305_v19 }
 0x1ac   : > { %v2318_v35 = vpop.f32.mrf.mxu1  ;;  %v2206_v38 = vadd.f32 %v2205_v36, %v2093_v54  ;;  %3916 = vmatpush2.bf16.msra.mxu0 %v6041_v10  ;;  %v7525_v51 = vpack.c.bf16 %v2830_v45, %v2826_v7  ;;  %v2317_v2 = vadd.f32 %v2316_v50, %v2204_v48  ;;  %v2833_v24 = vmax.f32 %v2315_v26, 0.0  ;;  %v6050_v50 = vld [vmem:[#allocation2 + $0x168] ss:$16 sps:$4 sm:$0xff]   ;;  %v6055_v45 = vld [vmem:[#allocation2 + $0x14c] ss:$16 sps:$4 sm:$0xff]  }
 0x1ad   : > { %v2207_v21 = vpop.f32.mrf.mxu0  ;;  %3917 = vmatprep.subr.bf16.mxu0 %v6046_v23  ;;  %v2103_v16 = vadd.f32 %v8326_v3, %v1990_v13  ;;  %v2105_v56 = vadd.f32 %v8329_v58, %v1992_v11  ;;  %v7555_v36 = vrot.slane %v6309_v57, %v8306_v53  ;;  %v6061_v3 = vld [vmem:[#allocation2 + $0x10c] ss:$16 sps:$4 sm:$0xff]  }
 0x1ae   : > { %v2320_v15 = vpop.f32.mrf.mxu1  ;;  %v2319_v6 = vadd.f32 %v2318_v35, %v2206_v38  ;;  %v2208_v46 = vadd.f32 %v2207_v21, %v2095_v25  ;;  %3753 = vmatprep.mubr.bf16.mxu0 %v7525_v51  ;;  %v2834_v29 = vmax.f32 %v2317_v2, 0.0  ;;  %v6058_v2 = vld [vmem:[#allocation2 + $0x12c] ss:$16 sps:$4 sm:$0xff]  }
 0x1af   : > { %v2211_v8 = vpop.f32.mrf.mxu0  ;;  %3754 = vmatmul.mubr.bf16.gmra.mxu0 %v7527_v20 }
 0x1b0   : > { %v2324_v28 = vpop.f32.mrf.mxu1  ;;  %v2321_v61 = vadd.f32 %v2320_v15, %v2208_v46  ;;  %3918 = vmatpush2.bf16.msra.mxu0 %v6044_v62  ;;  %v2837_v0 = vmax.f32 %v2319_v6, 0.0  ;;  %v2212_v34 = vadd.f32 %v2211_v8, %v8328_v41  ;;  %v6053_v15 = vld [vmem:[#allocation2 + $0x148] ss:$16 sps:$4 sm:$0xff]  }
 0x1b1   : > { %v2213_v39 = vpop.f32.mrf.mxu0  ;;  %3919 = vmatprep.subr.bf16.mxu0 %v6049_v12 }
 0x1b2   : > { %v2326_v9 = vpop.f32.mrf.mxu1  ;;  %v2838_v33 = vmax.f32 %v2321_v61, 0.0  ;;  %v2214_v47 = vadd.f32 %v2213_v39, %v8327_v30  ;;  %v7550_v23 = vpack.c.bf16 %v2837_v0, %v2833_v24  ;;  %v2325_v35 = vadd.f32 %v2324_v28, %v2212_v34  ;;  %v6056_v0 = vld [vmem:[#allocation2 + $0x128] ss:$16 sps:$4 sm:$0xff]  }
 0x1b3   : > { %v2215_v32 = vpop.f32.mrf.mxu0  ;;  %v6059_v30 = vld [vmem:[#allocation2 + $0x108] ss:$16 sps:$4 sm:$0xff]  }
 0x1b4   : > { %v2328_v44 = vpop.f32.mrf.mxu1  ;;  %v2216_v60 = vadd.f32 %v2215_v32, %v2103_v16  ;;  %3920 = vmatpush2.bf16.msra.mxu0 %v6047_v1  ;;  %v7541_v10 = vpack.c.bf16 %v2838_v33, %v2834_v29  ;;  %v2327_v48 = vadd.f32 %v2326_v9, %v2214_v47  ;;  %v2841_v28 = vmax.f32 %v2325_v35, 0.0 }
 0x1b5   : > { %v2217_v54 = vpop.f32.mrf.mxu0  ;;  %3921 = vmatprep.subr.bf16.mxu0 %v6052_v31 }
 0x1b6   : > { %v2330_v7 = vpop.f32.mrf.mxu1  ;;  %v2329_v59 = vadd.f32 %v2328_v44, %v2216_v60  ;;  %v2218_v49 = vadd.f32 %v2217_v54, %v2105_v56  ;;  %3763 = vmatprep.mubr.bf16.mxu0 %v7541_v10  ;;  %v2842_v6 = vmax.f32 %v2327_v48, 0.0 }
 0x1b7   : > { %v2367_v25 = vpop.f32.mrf.mxu0  ;;  %3764 = vmatmul.mubr.bf16.gmra.mxu0 %v7550_v23 }
 0x1b8   : > { %v2480_v38 = vpop.f32.mrf.mxu1  ;;  %v2331_v62 = vadd.f32 %v2330_v7, %v2218_v49  ;;  %v2368_v21 = vadd.f32 %v2367_v25, %v7548_v18  ;;  %3922 = vmatpush2.bf16.msra.mxu0 %v6050_v50  ;;  %v2845_v12 = vmax.f32 %v2329_v59, 0.0 }
 0x1b9   : > { %v2369_v4 = vpop.f32.mrf.mxu0  ;;  %3923 = vmatprep.subr.bf16.mxu0 %v6055_v45 }
 0x1ba   : > { %v2482_v13 = vpop.f32.mrf.mxu1  ;;  %v2846_v46 = vmax.f32 %v2331_v62, 0.0  ;;  %v7559_v26 = vadd.f32 %v2480_v38, %v2368_v21  ;;  %v2370_v8 = vadd.f32 %v2369_v4, %v7555_v36  ;;  %v7570_v39 = vpack.c.bf16 %v2845_v12, %v2841_v28 }
 0x1bb   : > { %v7562_v27 = vpop.f32.mrf.mxu0 }
 0x1bc   : > { %v7564_v11 = vpop.f32.mrf.mxu1  ;;  %v7566_v61 = vadd.f32 %v2482_v13, %v2370_v8  ;;  %3924 = vmatpush2.bf16.msra.mxu0 %v6053_v15  ;;  %v7568_v1 = vpack.c.bf16 %v2846_v46, %v2842_v6 }
 0x1bd   : > { %v7572_v9 = vpop.f32.mrf.mxu0  ;;  %3925 = vmatprep.subr.bf16.mxu0 %v6058_v2 }
 0x1be   : > { %v7574_v31 = vpop.f32.mrf.mxu1  ;;  %3773 = vmatprep.mubr.bf16.mxu0 %v7568_v1 }
 0x1bf   : > { %v2377_v16 = vpop.f32.mrf.mxu0  ;;  %3774 = vmatmul.mubr.bf16.gmra.mxu0 %v7570_v39 }
 0x1c0   : > { %v2490_v29 = vpop.f32.mrf.mxu1  ;;  %v2378_v33 = vadd.f32 %v2377_v16, %v7548_v18  ;;  %3926 = vmatpush2.bf16.msra.mxu0 %v6056_v0  ;;  %3929 = vmatprep.mubr.bf16.mxu0 %v7455_v22 }
 0x1c1   : > { %v2379_v47 = vpop.f32.mrf.mxu0  ;;  %3927 = vmatprep.subr.bf16.mxu0 %v6061_v3 }
 0x1c2   : > { %v2492_v24 = vpop.f32.mrf.mxu1  ;;  %v7580_v41 = vadd.f32 %v2490_v29, %v2378_v33  ;;  %v2380_v34 = vadd.f32 %v2379_v47, %v7555_v36 }
 0x1c3   : > { %v7583_v32 = vpop.f32.mrf.mxu0 }
 0x1c4   : > { %v7585_v44 = vpop.f32.mrf.mxu1  ;;  %v7587_v58 = vadd.f32 %v2492_v24, %v2380_v34  ;;  %3928 = vmatpush2.bf16.msra.mxu0 %v6059_v30 }
 0x1c5   : > { %v7589_v56 = vpop.f32.mrf.mxu0 }
 0x1c6   : > { %v7591_v60 = vpop.f32.mrf.mxu1 }
 0x1c7   : > { %v2387_v22 = vpop.f32.mrf.mxu0  ;;  %3930 = vmatmul.mubr.bf16.vlgmr.msra.gmra.mxu0 %v7459_v14 }
 0x1c8   : > { %v2500_v57 = vpop.f32.mrf.mxu1  ;;  %v2388_v50 = vadd.f32 %v2387_v22, %v7548_v18  ;;  %3939 = vmatprep.mubr.bf16.mxu0 %v7469_v55 }
 0x1c9   : > { %v2389_v54 = vpop.f32.mrf.mxu0 }
 0x1ca   : > { %v2502_v7 = vpop.f32.mrf.mxu1  ;;  %v7596_v45 = vadd.f32 %v2500_v57, %v2388_v50  ;;  %v2390_v48 = vadd.f32 %v2389_v54, %v7555_v36 }
 0x1cb   : > { %v7599_v59 = vpop.f32.mrf.mxu0 }
 0x1cc   : > { %v7601_v49 = vpop.f32.mrf.mxu1  ;;  %v7603_v35 = vadd.f32 %v2502_v7, %v2390_v48 }
 0x1cd   : > { %v7605_v25 = vpop.f32.mrf.mxu0 }
 0x1ce   : > { %v7607_v38 = vpop.f32.mrf.mxu1 }
 0x1cf   : > { %v2397_v14 = vpop.f32.mrf.mxu0  ;;  %3940 = vmatmul.mubr.bf16.gmra.mxu0 %v7471_v17 }
 0x1d0   : > { %v2510_v62 = vpop.f32.mrf.mxu1  ;;  %v2398_v55 = vadd.f32 %v2397_v14, %v7548_v18  ;;  %3949 = vmatprep.mubr.bf16.mxu0 %v7483_v52 }
 0x1d1   : > { %v2399_v21 = vpop.f32.mrf.mxu0 }
 0x1d2   : > { %v2512_v15 = vpop.f32.mrf.mxu1  ;;  %v7612_v12 = vadd.f32 %v2510_v62, %v2398_v55  ;;  %v2400_v4 = vadd.f32 %v2399_v21, %v7555_v36 }
 0x1d3   : > { %v7615_v13 = vpop.f32.mrf.mxu0 }
 0x1d4   : > { %v7617_v2 = vpop.f32.mrf.mxu1  ;;  %v7619_v6 = vadd.f32 %v2512_v15, %v2400_v4 }
 0x1d5   : > { %v7621_v46 = vpop.f32.mrf.mxu0 }
 0x1d6   : > { %v7623_v8 = vpop.f32.mrf.mxu1 }
 0x1d7   : > { %v2407_v17 = vpop.f32.mrf.mxu0  ;;  %3950 = vmatmul.mubr.bf16.gmra.mxu0 %v7485_v5 }
 0x1d8   : > { %v2520_v28 = vpop.f32.mrf.mxu1  ;;  %v2408_v52 = vadd.f32 %v2407_v17, %v7548_v18  ;;  %3959 = vmatprep.mubr.bf16.mxu0 %v7497_v37 }
 0x1d9   : > { %v2409_v0 = vpop.f32.mrf.mxu0 }
 0x1da   : > { %v2522_v3 = vpop.f32.mrf.mxu1  ;;  %v7628_v16 = vadd.f32 %v2520_v28, %v2408_v52  ;;  %v2410_v29 = vadd.f32 %v2409_v0, %v7555_v36 }
 0x1db   : > { %v7631_v33 = vpop.f32.mrf.mxu0 }
 0x1dc   : > { %v7633_v30 = vpop.f32.mrf.mxu1  ;;  %v7635_v47 = vadd.f32 %v2522_v3, %v2410_v29 }
 0x1dd   : > { %v7637_v24 = vpop.f32.mrf.mxu0 }
 0x1de   : > { %v7639_v34 = vpop.f32.mrf.mxu1 }
 0x1df   : > { %v2417_v5 = vpop.f32.mrf.mxu0  ;;  %3960 = vmatmul.mubr.bf16.gmra.mxu0 %v7499_v63 }
 0x1e0   : > { %v2530_v22 = vpop.f32.mrf.mxu1  ;;  %v2418_v37 = vadd.f32 %v2417_v5, %v7548_v18  ;;  %3969 = vmatprep.mubr.bf16.mxu0 %v7511_v40 }
 0x1e1   : > { %v2419_v57 = vpop.f32.mrf.mxu0 }
 0x1e2   : > { %v2532_v50 = vpop.f32.mrf.mxu1  ;;  %v7644_v54 = vadd.f32 %v2530_v22, %v2418_v37  ;;  %v2420_v7 = vadd.f32 %v2419_v57, %v7555_v36 }
 0x1e3   : > { %v7647_v48 = vpop.f32.mrf.mxu0 }
 0x1e4   : > { %v7649_v14 = vpop.f32.mrf.mxu1  ;;  %v7651_v62 = vadd.f32 %v2532_v50, %v2420_v7 }
 0x1e5   : > { %v7653_v55 = vpop.f32.mrf.mxu0 }
 0x1e6   : > { %v7655_v21 = vpop.f32.mrf.mxu1 }
 0x1e7   : > { %v2427_v63 = vpop.f32.mrf.mxu0  ;;  %3970 = vmatmul.mubr.bf16.gmra.mxu0 %v7513_v42 }
 0x1e8   : > { %v2540_v15 = vpop.f32.mrf.mxu1  ;;  %v2428_v40 = vadd.f32 %v2427_v63, %v7548_v18  ;;  %3979 = vmatprep.mubr.bf16.mxu0 %v7525_v51 }
 0x1e9   : > { %v2429_v4 = vpop.f32.mrf.mxu0 }
 0x1ea   : > { %v2542_v17 = vpop.f32.mrf.mxu1  ;;  %v7660_v28 = vadd.f32 %v2540_v15, %v2428_v40  ;;  %v2430_v52 = vadd.f32 %v2429_v4, %v7555_v36 }
 0x1eb   : > { %v7663_v0 = vpop.f32.mrf.mxu0 }
 0x1ec   : > { %v7665_v3 = vpop.f32.mrf.mxu1  ;;  %v7667_v29 = vadd.f32 %v2542_v17, %v2430_v52 }
 0x1ed   : > { %v7669_v5 = vpop.f32.mrf.mxu0 }
 0x1ee   : > { %v7671_v22 = vpop.f32.mrf.mxu1 }
 0x1ef   : > { %v2437_v42 = vpop.f32.mrf.mxu0  ;;  %3980 = vmatmul.mubr.bf16.gmra.mxu0 %v7527_v20  ;;  %v2372_v20 = vadd.f32 %v7562_v27, %v7548_v18 }
 0x1f0   : > { %v2550_v37 = vpop.f32.mrf.mxu1  ;;  %v2438_v51 = vadd.f32 %v2437_v42, %v7548_v18  ;;  %3989 = vmatprep.mubr.bf16.mxu0 %v7541_v10 }
 0x1f1   : > { %v2439_v57 = vpop.f32.mrf.mxu0 }
 0x1f2   : > { %v2552_v50 = vpop.f32.mrf.mxu1  ;;  %v7676_v7 = vadd.f32 %v2550_v37, %v2438_v51  ;;  %v2440_v63 = vadd.f32 %v2439_v57, %v7555_v36  ;;  %v2374_v37 = vadd.f32 %v7572_v9, %v7555_v36  ;;  %v2382_v9 = vadd.f32 %v7583_v32, %v7548_v18 }
 0x1f3   : > { %v7679_v15 = vpop.f32.mrf.mxu0 }
 0x1f4   : > { %8330 = vst [vmem:[#allocation13_spill] sm:$0xff] %v7676_v7  ;;  %8331 = vst [vmem:[#allocation16_spill] sm:$0xff] %v7679_v15  ;;  %v7681_v40 = vpop.f32.mrf.mxu1  ;;  %v7683_v4 = vadd.f32 %v2552_v50, %v2440_v63  ;;  %v2485_v50 = vadd.f32 %v7564_v11, %v2372_v20  ;;  %v2487_v27 = vadd.f32 %v7574_v31, %v2374_v37 }
 0x1f5   : > { %8332 = vst [vmem:[#allocation14_spill] sm:$0xff] %v7681_v40  ;;  %v7685_v17 = vpop.f32.mrf.mxu0 }
 0x1f6   : > { %8333 = vst [vmem:[#allocation15_spill] sm:$0xff] %v7683_v4  ;;  %8334 = vst [vmem:[#allocation12_spill] sm:$0xff] %v7685_v17  ;;  %v7687_v52 = vpop.f32.mrf.mxu1 }
 0x1f7   : > { %8335 = vst [vmem:[#allocation17_spill] sm:$0xff] %v7687_v52  ;;  %v2593_v10 = vpop.f32.mrf.mxu0  ;;  %3990 = vmatmul.mubr.bf16.gmra.mxu0 %v7550_v23 }
 0x1f8   : > { %v2706_v42 = vpop.f32.mrf.mxu1  ;;  %3999 = vmatprep.mubr.bf16.mxu0 %v7568_v1  ;;  %v2594_v19 = vadd.f32 %v2593_v10, %v7559_v26  ;;  %v2384_v26 = vadd.f32 %v7589_v56, %v7555_v36  ;;  %v2495_v10 = vadd.f32 %v7585_v44, %v2382_v9  ;;  %v6110_v56 = vld [vmem:[#allocation2 + $0x2e8] ss:$16 sps:$4 sm:$0xff]   ;;  %v6115_v44 = vld [vmem:[#allocation2 + $0x2cc] ss:$16 sps:$4 sm:$0xff]  }
 0x1f9   : > { %v2595_v51 = vpop.f32.mrf.mxu0 }
 0x1fa   : > { %v2708_v57 = vpop.f32.mrf.mxu1  ;;  %v2596_v63 = vadd.f32 %v2595_v51, %v7566_v61  ;;  %v2707_v17 = vadd.f32 %v2706_v42, %v2594_v19 }
 0x1fb   : > { %v2597_v53 = vpop.f32.mrf.mxu0 }
 0x1fc   : > { %v2710_v43 = vpop.f32.mrf.mxu1  ;;  %v2598_v52 = vadd.f32 %v2597_v53, %v2485_v50  ;;  %v2709_v4 = vadd.f32 %v2708_v57, %v2596_v63 }
 0x1fd   : > { %v2599_v7 = vpop.f32.mrf.mxu0 }
 0x1fe   : > { %v2712_v23 = vpop.f32.mrf.mxu1  ;;  %v2711_v1 = vadd.f32 %v2710_v43, %v2598_v52  ;;  %v2600_v40 = vadd.f32 %v2599_v7, %v2487_v27  ;;  %v2788_v37 = vmax.f32 %v2709_v4, 0.0  ;;  %v2787_v43 = vmax.f32 %v2707_v17, 0.0 }
 0x1ff   : > { %v2603_v15 = vpop.f32.mrf.mxu0  ;;  %4000 = vmatmul.mubr.bf16.gmra.mxu0 %v7570_v39  ;;  %v2497_v39 = vadd.f32 %v7591_v60, %v2384_v26  ;;  %v2392_v4 = vadd.f32 %v7599_v59, %v7548_v18  ;;  %v6118_v59 = vld [vmem:[#allocation2 + $0x2ac] ss:$16 sps:$4 sm:$0xff]  }
 0x200   : > { %v2716_v11 = vpop.f32.mrf.mxu1  ;;  %v2713_v61 = vadd.f32 %v2712_v23, %v2600_v40  ;;  %v2791_v20 = vmax.f32 %v2711_v1, 0.0  ;;  %v2604_v19 = vadd.f32 %v2603_v15, %v7580_v41  ;;  %v2394_v23 = vadd.f32 %v7605_v25, %v7555_v36  ;;  %v6113_v1 = vld [vmem:[#allocation2 + $0x2c8] ss:$16 sps:$4 sm:$0xff]  }
 0x201   : > { %v2605_v31 = vpop.f32.mrf.mxu0 }
 0x202   : > { %v2718_v53 = vpop.f32.mrf.mxu1  ;;  %v2792_v51 = vmax.f32 %v2713_v61, 0.0  ;;  %v2606_v32 = vadd.f32 %v2605_v31, %v7587_v58  ;;  %v7710_v40 = vpack.c.bf16 %v2791_v20, %v2787_v43  ;;  %v2717_v41 = vadd.f32 %v2716_v11, %v2604_v19 }
 0x203   : > { %v2607_v7 = vpop.f32.mrf.mxu0  ;;  %v2505_v31 = vadd.f32 %v7601_v49, %v2392_v4  ;;  %v2507_v25 = vadd.f32 %v7607_v38, %v2394_v23 }
 0x204   : > { %v2720_v52 = vpop.f32.mrf.mxu1  ;;  %v2608_v42 = vadd.f32 %v2607_v7, %v2495_v10  ;;  %v7708_v57 = vpack.c.bf16 %v2792_v51, %v2788_v37  ;;  %v2719_v58 = vadd.f32 %v2718_v53, %v2606_v32  ;;  %v2795_v37 = vmax.f32 %v2717_v41, 0.0 }
 0x205   : > { %v2609_v50 = vpop.f32.mrf.mxu0 }
 0x206   : > { %v2722_v63 = vpop.f32.mrf.mxu1  ;;  %v2721_v17 = vadd.f32 %v2720_v52, %v2608_v42  ;;  %v2610_v27 = vadd.f32 %v2609_v50, %v2497_v39  ;;  %3816 = vmatprep.mubr.bf16.mxu1 %v7708_v57  ;;  %v2796_v53 = vmax.f32 %v2719_v58, 0.0  ;;  %v6116_v52 = vld [vmem:[#allocation2 + $0x2a8] ss:$16 sps:$4 sm:$0xff]   ;;  %v2404_v58 = vadd.f32 %v7621_v46, %v7555_v36 }
 0x207   : > { %v2613_v15 = vpop.f32.mrf.mxu0  ;;  %3817 = vmatmul.mubr.bf16.vlgmr.msra.gmra.mxu1 %v7710_v40 }
 0x208   : > { %v2726_v60 = vpop.f32.mrf.mxu1  ;;  %v2723_v9 = vadd.f32 %v2722_v63, %v2610_v27  ;;  %4011 = vmatpush1.bf16.msra.mxu1 %v6110_v56  ;;  %v2799_v26 = vmax.f32 %v2721_v17, 0.0  ;;  %v2614_v51 = vadd.f32 %v2613_v15, %v7596_v45  ;;  %v6121_v56 = vld [vmem:[#allocation2 + $0x28c] ss:$16 sps:$4 sm:$0xff]   ;;  %v6119_v27 = vld [vmem:[#allocation2 + $0x288] ss:$16 sps:$4 sm:$0xff]   ;;  %v2517_v46 = vadd.f32 %v7623_v8, %v2404_v58 }
 0x209   : > { %v2615_v61 = vpop.f32.mrf.mxu0  ;;  %4012 = vmatprep.subr.bf16.mxu1 %v6115_v44 }
 0x20a   : > { %v2728_v20 = vpop.f32.mrf.mxu1  ;;  %v2800_v10 = vmax.f32 %v2723_v9, 0.0  ;;  %v2616_v11 = vadd.f32 %v2615_v61, %v7603_v35  ;;  %v7724_v39 = vpack.c.bf16 %v2799_v26, %v2795_v37  ;;  %v2402_v35 = vadd.f32 %v7615_v13, %v7548_v18  ;;  %v6124_v13 = vld [vmem:[#allocation2 + $0x26c] ss:$16 sps:$4 sm:$0xff]  }
 0x20b   : > { %v2617_v32 = vpop.f32.mrf.mxu0  ;;  %v2727_v38 = vadd.f32 %v2726_v60, %v2614_v51 }
 0x20c   : > { %v2730_v43 = vpop.f32.mrf.mxu1  ;;  %v2618_v19 = vadd.f32 %v2617_v32, %v2505_v31  ;;  %4013 = vmatpush1.bf16.msra.mxu1 %v6113_v1  ;;  %v7722_v7 = vpack.c.bf16 %v2800_v10, %v2796_v53  ;;  %v2729_v50 = vadd.f32 %v2728_v20, %v2616_v11  ;;  %v2515_v9 = vadd.f32 %v7617_v2, %v2402_v35  ;;  %v6122_v11 = vld [vmem:[#allocation2 + $0x268] ss:$16 sps:$4 sm:$0xff]   ;;  %v6127_v32 = vld [vmem:[#allocation2 + $0x24c] ss:$16 sps:$4 sm:$0xff]  }
 0x20d   : > { %v2619_v42 = vpop.f32.mrf.mxu0  ;;  %4014 = vmatprep.subr.bf16.mxu1 %v6118_v59  ;;  %v2803_v61 = vmax.f32 %v2727_v38, 0.0 }
 0x20e   : > { %v2732_v49 = vpop.f32.mrf.mxu1  ;;  %v2731_v45 = vadd.f32 %v2730_v43, %v2618_v19  ;;  %v2620_v63 = vadd.f32 %v2619_v42, %v2507_v25  ;;  %3826 = vmatprep.mubr.bf16.mxu1 %v7722_v7  ;;  %v2804_v1 = vmax.f32 %v2729_v50, 0.0  ;;  %v2414_v42 = vadd.f32 %v7637_v24, %v7555_v36 }
 0x20f   : > { %v2623_v44 = vpop.f32.mrf.mxu0  ;;  %3827 = vmatmul.mubr.bf16.gmra.mxu1 %v7724_v39 }
 0x210   : > { %v2736_v4 = vpop.f32.mrf.mxu1  ;;  %v2733_v17 = vadd.f32 %v2732_v49, %v2620_v63  ;;  %4015 = vmatpush1.bf16.msra.mxu1 %v6116_v52  ;;  %v2807_v41 = vmax.f32 %v2731_v45, 0.0  ;;  %v2624_v20 = vadd.f32 %v2623_v44, %v7612_v12  ;;  %v2527_v24 = vadd.f32 %v7639_v34, %v2414_v42 }
 0x211   : > { %v2625_v15 = vpop.f32.mrf.mxu0  ;;  %4016 = vmatprep.subr.bf16.mxu1 %v6121_v56  ;;  %v6125_v56 = vld [vmem:[#allocation2 + $0x248] ss:$16 sps:$4 sm:$0xff]  }
 0x212   : > { %v2738_v23 = vpop.f32.mrf.mxu1  ;;  %v2808_v26 = vmax.f32 %v2733_v17, 0.0  ;;  %v2626_v60 = vadd.f32 %v2625_v15, %v7619_v6  ;;  %v7738_v37 = vpack.c.bf16 %v2807_v41, %v2803_v61  ;;  %v2412_v6 = vadd.f32 %v7631_v33, %v7548_v18  ;;  %v6130_v33 = vld [vmem:[#allocation2 + $0x22c] ss:$16 sps:$4 sm:$0xff]  }
 0x213   : > { %v2627_v59 = vpop.f32.mrf.mxu0  ;;  %v2737_v8 = vadd.f32 %v2736_v4, %v2624_v20 }
 0x214   : > { %v2740_v31 = vpop.f32.mrf.mxu1  ;;  %v2628_v53 = vadd.f32 %v2627_v59, %v2515_v9  ;;  %4017 = vmatpush1.bf16.msra.mxu1 %v6119_v27  ;;  %v7736_v10 = vpack.c.bf16 %v2808_v26, %v2804_v1  ;;  %v2739_v43 = vadd.f32 %v2738_v23, %v2626_v60  ;;  %v2525_v63 = vadd.f32 %v7633_v30, %v2412_v6  ;;  %v6133_v26 = vld [vmem:[#allocation2 + $0x20c] ss:$16 sps:$4 sm:$0xff]  }
 0x215   : > { %v2629_v51 = vpop.f32.mrf.mxu0  ;;  %4018 = vmatprep.subr.bf16.mxu1 %v6124_v13  ;;  %v2811_v58 = vmax.f32 %v2737_v8, 0.0  ;;  %v6128_v13 = vld [vmem:[#allocation2 + $0x228] ss:$16 sps:$4 sm:$0xff]  }
 0x216   : > { %v2742_v2 = vpop.f32.mrf.mxu1  ;;  %v2741_v12 = vadd.f32 %v2740_v31, %v2628_v53  ;;  %v2630_v25 = vadd.f32 %v2629_v51, %v2517_v46  ;;  %3836 = vmatprep.mubr.bf16.mxu1 %v7736_v10  ;;  %v2812_v38 = vmax.f32 %v2739_v43, 0.0  ;;  %v2424_v31 = vadd.f32 %v7653_v55, %v7555_v36  ;;  %v6131_v53 = vld [vmem:[#allocation2 + $0x208] ss:$16 sps:$4 sm:$0xff]  }
 0x217   : > { %v2633_v19 = vpop.f32.mrf.mxu0  ;;  %3837 = vmatmul.mubr.bf16.gmra.mxu1 %v7738_v37 }
 0x218   : > { %v2746_v52 = vpop.f32.mrf.mxu1  ;;  %v2743_v49 = vadd.f32 %v2742_v2, %v2630_v25  ;;  %4019 = vmatpush1.bf16.msra.mxu1 %v6122_v11  ;;  %v2815_v35 = vmax.f32 %v2741_v12, 0.0  ;;  %v2634_v17 = vadd.f32 %v2633_v19, %v7628_v16  ;;  %v2537_v55 = vadd.f32 %v7655_v21, %v2424_v31 }
 0x219   : > { %v2635_v50 = vpop.f32.mrf.mxu0  ;;  %4020 = vmatprep.subr.bf16.mxu1 %v6127_v32 }
 0x21a   : > { %v2748_v45 = vpop.f32.mrf.mxu1  ;;  %v2816_v44 = vmax.f32 %v2743_v49, 0.0  ;;  %v2636_v4 = vadd.f32 %v2635_v50, %v7635_v47  ;;  %v7752_v9 = vpack.c.bf16 %v2815_v35, %v2811_v58  ;;  %v2422_v47 = vadd.f32 %v7647_v48, %v7548_v18  ;;  %v6136_v48 = vld [vmem:[#allocation2 + $0x3ec] ss:$16 sps:$4 sm:$0xff]  }
 0x21b   : > { %v2637_v27 = vpop.f32.mrf.mxu0  ;;  %v2747_v34 = vadd.f32 %v2746_v52, %v2634_v17  ;;  %v6137_v17 = vld [vmem:[#allocation2 + $0x3c8] ss:$16 sps:$4 sm:$0xff]  }
 0x21c   : > { %v2750_v41 = vpop.f32.mrf.mxu1  ;;  %v2638_v15 = vadd.f32 %v2637_v27, %v2525_v63  ;;  %4021 = vmatpush1.bf16.msra.mxu1 %v6125_v56  ;;  %v7750_v23 = vpack.c.bf16 %v2816_v44, %v2812_v38  ;;  %v2749_v60 = vadd.f32 %v2748_v45, %v2636_v4  ;;  %v2535_v32 = vadd.f32 %v7649_v14, %v2422_v47  ;;  %v6134_v56 = vld [vmem:[#allocation2 + $0x3e8] ss:$16 sps:$4 sm:$0xff]   ;;  %v6139_v45 = vld [vmem:[#allocation2 + $0x3cc] ss:$16 sps:$4 sm:$0xff]  }
 0x21d   : > { %v2639_v1 = vpop.f32.mrf.mxu0  ;;  %4022 = vmatprep.subr.bf16.mxu1 %v6130_v33  ;;  %v2819_v25 = vmax.f32 %v2747_v34, 0.0  ;;  %v2434_v4 = vadd.f32 %v7669_v5, %v7555_v36 }
 0x21e   : > { %v2752_v30 = vpop.f32.mrf.mxu1  ;;  %v2751_v16 = vadd.f32 %v2750_v41, %v2638_v15  ;;  %v2640_v61 = vadd.f32 %v2639_v1, %v2527_v24  ;;  %3846 = vmatprep.mubr.bf16.mxu1 %v7750_v23  ;;  %v2820_v6 = vmax.f32 %v2749_v60, 0.0 }
 0x21f   : > { %v2643_v20 = vpop.f32.mrf.mxu0  ;;  %3847 = vmatmul.mubr.bf16.gmra.mxu1 %v7752_v9  ;;  %v2547_v5 = vadd.f32 %v7671_v22, %v2434_v4 }
 0x220   : > { %v2756_v59 = vpop.f32.mrf.mxu1  ;;  %v2753_v46 = vadd.f32 %v2752_v30, %v2640_v61  ;;  %4023 = vmatpush1.bf16.msra.mxu1 %v6128_v13  ;;  %v2823_v11 = vmax.f32 %v2751_v16, 0.0  ;;  %v2644_v8 = vadd.f32 %v2643_v20, %v7644_v54  ;;  %v6140_v20 = vld [vmem:[#allocation2 + $0x3a8] ss:$16 sps:$4 sm:$0xff]  }
 0x221   : > { %v2645_v51 = vpop.f32.mrf.mxu0  ;;  %4024 = vmatprep.subr.bf16.mxu1 %v6133_v26 }
 0x222   : > { %v2758_v2 = vpop.f32.mrf.mxu1  ;;  %v2824_v43 = vmax.f32 %v2753_v46, 0.0  ;;  %v2646_v12 = vadd.f32 %v2645_v51, %v7651_v62  ;;  %v7766_v35 = vpack.c.bf16 %v2823_v11, %v2819_v25  ;;  %v2432_v62 = vadd.f32 %v7663_v0, %v7548_v18  ;;  %v6142_v0 = vld [vmem:[#allocation2 + $0x3ac] ss:$16 sps:$4 sm:$0xff]  }
 0x223   : > { %v2647_v19 = vpop.f32.mrf.mxu0  ;;  %v2757_v21 = vadd.f32 %v2756_v59, %v2644_v8  ;;  %v6145_v46 = vld [vmem:[#allocation2 + $0x38c] ss:$16 sps:$4 sm:$0xff]  }
 0x224   : > { %v2760_v52 = vpop.f32.mrf.mxu1  ;;  %v7764_v42 = vpack.c.bf16 %v2824_v43, %v2820_v6  ;;  %v2648_v49 = vadd.f32 %v2647_v19, %v2535_v32  ;;  %4025 = vmatpush1.bf16.msra.mxu1 %v6131_v53  ;;  %v2759_v33 = vadd.f32 %v2758_v2, %v2646_v12  ;;  %v2545_v15 = vadd.f32 %v7665_v3, %v2432_v62  ;;  %v8337_v32 = vld [vmem:[#allocation12_spill] sm:$0xff]  ;;  %v8340_v62 = vld [vmem:[#allocation13_spill] sm:$0xff] }
 0x225   : > { %v2649_v50 = vpop.f32.mrf.mxu0  ;;  %4026 = vmatprep.subr.bf16.mxu1 %v6136_v48  ;;  %v2827_v26 = vmax.f32 %v2757_v21, 0.0  ;;  %v2444_v6 = vadd.f32 %v8337_v32, %v7555_v36  ;;  %v6143_v12 = vld [vmem:[#allocation2 + $0x388] ss:$16 sps:$4 sm:$0xff]   ;;  %v8341_v21 = vld [vmem:[#allocation17_spill] sm:$0xff] }
 0x226   : > { %v2762_v14 = vpop.f32.mrf.mxu1  ;;  %v2761_v54 = vadd.f32 %v2760_v52, %v2648_v49  ;;  %v2650_v63 = vadd.f32 %v2649_v50, %v2537_v55  ;;  %3856 = vmatprep.mubr.bf16.mxu1 %v7764_v42  ;;  %v2828_v13 = vmax.f32 %v2759_v33, 0.0  ;;  %v8338_v52 = vld [vmem:[#allocation14_spill] sm:$0xff]  ;;  %v8339_v50 = vld [vmem:[#allocation15_spill] sm:$0xff] }
 0x227   : > { %v2653_v38 = vpop.f32.mrf.mxu0  ;;  %3857 = vmatmul.mubr.bf16.gmra.mxu1 %v7766_v35  ;;  %v6158_v36 = vld [vmem:[#allocation5 + $0x78] sm:$0xff]  }
 0x228   : > { %v2766_v44 = vpop.f32.mrf.mxu1  ;;  %v2763_v58 = vadd.f32 %v2762_v14, %v2650_v63  ;;  %4027 = vmatpush2.bf16.msra.mxu1 %v6134_v56  ;;  %v2831_v27 = vmax.f32 %v2761_v54, 0.0  ;;  %v2654_v47 = vadd.f32 %v2653_v38, %v7660_v28  ;;  %v2557_v38 = vadd.f32 %v8341_v21, %v2444_v6  ;;  %5396 = vmatprep.subr.bf16.mxu0 %v6158_v36  ;;  %v6166_v32 = vld [vmem:[#allocation5 + $0x58] sm:$0xff]  }
 0x229   : > { %v2655_v41 = vpop.f32.mrf.mxu0  ;;  %4028 = vmatprep.subr.bf16.mxu1 %v6139_v45  ;;  %v6167_v6 = vld [vmem:[#allocation5 + $0x18] sm:$0xff]  }
 0x22a   : > { %v2768_v24 = vpop.f32.mrf.mxu1  ;;  %v2832_v1 = vmax.f32 %v2763_v58, 0.0  ;;  %v2656_v30 = vadd.f32 %v2655_v41, %v7667_v29  ;;  %v7780_v59 = vpack.c.bf16 %v2831_v27, %v2827_v26  ;;  %v8336_v29 = vld [vmem:[#allocation16_spill] sm:$0xff]  ;;  %v2767_v22 = vadd.f32 %v2766_v44, %v2654_v47  ;;  %v6160_v26 = vld [vmem:[#allocation5 + $0x70] sm:$0xff]   ;;  %v6182_v36 = vld [vmem:[#allocation5 + $0xd8] sm:$0xff]  }
 0x22b   : > { %v2657_v60 = vpop.f32.mrf.mxu0  ;;  %v2442_v53 = vadd.f32 %v8336_v29, %v7548_v18  ;;  %v6148_v18 = vld [vmem:[#allocation2 + $0x36c] ss:$16 sps:$4 sm:$0xff]   ;;  %v6146_v58 = vld [vmem:[#allocation2 + $0x368] ss:$16 sps:$4 sm:$0xff]  }
 0x22c   : > { %v2770_v16 = vpop.f32.mrf.mxu1  ;;  %v7778_v61 = vpack.c.bf16 %v2832_v1, %v2828_v13  ;;  %v2658_v34 = vadd.f32 %v2657_v60, %v2545_v15  ;;  %4029 = vmatpush2.bf16.msra.mxu1 %v6137_v17  ;;  %v2769_v11 = vadd.f32 %v2768_v24, %v2656_v30  ;;  %v2835_v45 = vmax.f32 %v2767_v22, 0.0  ;;  %v6159_v17 = vld [vmem:[#allocation5 + $0x38] sm:$0xff]   ;;  %v6164_v22 = vld [vmem:[#allocation5 + $0x60] sm:$0xff]  }
 0x22d   : > { %v2659_v31 = vpop.f32.mrf.mxu0  ;;  %4030 = vmatprep.subr.bf16.mxu1 %v6142_v0  ;;  %v2555_v55 = vadd.f32 %v8338_v52, %v2442_v53  ;;  %v6151_v24 = vld [vmem:[#allocation2 + $0x34c] ss:$16 sps:$4 sm:$0xff]   ;;  %5397 = vmatpush3.bf16.msra.mxu0 %v6159_v17  ;;  %v6149_v60 = vld [vmem:[#allocation2 + $0x348] ss:$16 sps:$4 sm:$0xff]   ;;  %v6172_v52 = vld [vmem:[#allocation5 + $0x40] sm:$0xff]  }
 0x22e   : > { %v2772_v3 = vpop.f32.mrf.mxu1  ;;  %v2771_v28 = vadd.f32 %v2770_v16, %v2658_v34  ;;  %v2660_v51 = vadd.f32 %v2659_v31, %v2547_v5  ;;  %3866 = vmatprep.mubr.bf16.mxu1 %v7778_v61  ;;  %v2836_v49 = vmax.f32 %v2769_v11, 0.0  ;;  %v6161_v16 = vld [vmem:[#allocation5 + $0x30] sm:$0xff]   ;;  %v6154_v34 = vld [vmem:[#allocation2 + $0x32c] ss:$16 sps:$4 sm:$0xff]   ;;  %5398 = vmatprep.subr.bf16.mxu0 %v6160_v26  ;;  %v6152_v53 = vld [vmem:[#allocation2 + $0x328] ss:$16 sps:$4 sm:$0xff]  }
 0x22f   : > { %v2663_v2 = vpop.f32.mrf.mxu0  ;;  %3867 = vmatmul.mubr.bf16.gmra.mxu1 %v7780_v59  ;;  %v6163_v11 = vld [vmem:[#allocation5 + $0x28] sm:$0xff]   ;;  %v6183_v21 = vld [vmem:[#allocation5 + $0x98] sm:$0xff]  }
 0x230   : > { %v2776_v48 = vpop.f32.mrf.mxu1  ;;  %v2773_v43 = vadd.f32 %v2772_v3, %v2660_v51  ;;  %4031 = vmatpush2.bf16.msra.mxu1 %v6140_v20  ;;  %v2839_v25 = vmax.f32 %v2771_v28, 0.0  ;;  %v2664_v33 = vadd.f32 %v2663_v2, %v8340_v62  ;;  %v6157_v51 = vld [vmem:[#allocation2 + $0x30c] ss:$16 sps:$4 sm:$0xff]   ;;  %v6155_v2 = vld [vmem:[#allocation2 + $0x308] ss:$16 sps:$4 sm:$0xff]  }
 0x231   : > { %v2665_v8 = vpop.f32.mrf.mxu0  ;;  %4032 = vmatprep.subr.bf16.mxu1 %v6145_v46  ;;  %5399 = vmatpush3.bf16.msra.mxu0 %v6161_v16  ;;  %v6162_v46 = vld [vmem:[#allocation5 + $0x68] sm:$0xff]  }
 0x232   : > { %v2778_v19 = vpop.f32.mrf.mxu1  ;;  %v2840_v56 = vmax.f32 %v2773_v43, 0.0  ;;  %v2666_v14 = vadd.f32 %v2665_v8, %v8339_v50  ;;  %v7794_v27 = vpack.c.bf16 %v2839_v25, %v2835_v45  ;;  %v2777_v1 = vadd.f32 %v2776_v48, %v2664_v33  ;;  %5400 = vmatprep.subr.bf16.mxu0 %v6162_v46  ;;  %v6165_v48 = vld [vmem:[#allocation5 + $0x20] sm:$0xff]   ;;  %v6169_v25 = vld [vmem:[#allocation5 + $0x10] sm:$0xff]   ;;  %v6175_v50 = vld [vmem:[#allocation5 + $0xb8] sm:$0xff]  }
 0x233   : > { %v2667_v54 = vpop.f32.mrf.mxu0  ;;  %v6177_v45 = vld [vmem:[#allocation5 + $0xb0] sm:$0xff]   ;;  %v6178_v62 = vld [vmem:[#allocation5 + $0xe8] sm:$0xff]  }
 0x234   : > { %v2780_v63 = vpop.f32.mrf.mxu1  ;;  %v7792_v44 = vpack.c.bf16 %v2840_v56, %v2836_v49  ;;  %v2668_v4 = vadd.f32 %v2667_v54, %v2555_v55  ;;  %4033 = vmatpush2.bf16.msra.mxu1 %v6143_v12  ;;  %v2779_v0 = vadd.f32 %v2778_v19, %v2666_v14  ;;  %v2843_v3 = vmax.f32 %v2777_v1, 0.0  ;;  %v6168_v12 = vld [vmem:[#allocation5 + $0x50] sm:$0xff]   ;;  %v6171_v19 = vld [vmem:[#allocation5 + $0x8] sm:$0xff]   ;;  %v6174_v56 = vld [vmem:[#allocation5 + $0xf8] sm:$0xff]  }
 0x235   : > { %v2669_v41 = vpop.f32.mrf.mxu0  ;;  %4034 = vmatprep.subr.bf16.mxu1 %v6148_v18  ;;  %5401 = vmatpush3.bf16.msra.mxu0 %v6163_v11  ;;  %v6176_v14 = vld [vmem:[#allocation5 + $0xf0] sm:$0xff]   ;;  %v6179_v33 = vld [vmem:[#allocation5 + $0xa8] sm:$0xff]   ;;  %v6180_v54 = vld [vmem:[#allocation5 + $0xe0] sm:$0xff]  }
 0x236   : > { %v2781_v15 = vadd.f32 %v2780_v63, %v2668_v4  ;;  %v2670_v13 = vadd.f32 %v2669_v41, %v2557_v38  ;;  %3876 = vmatprep.mubr.bf16.mxu1 %v7792_v44  ;;  %v2782_v30 = vpop.f32.mrf.mxu1  ;;  %v2844_v20 = vmax.f32 %v2779_v0, 0.0  ;;  %5402 = vmatprep.subr.bf16.mxu0 %v6164_v22  ;;  %v6181_v63 = vld [vmem:[#allocation5 + $0xa0] sm:$0xff]   ;;  %v6185_v4 = vld [vmem:[#allocation5 + $0x90] sm:$0xff]   ;;  %v6187_v41 = vld [vmem:[#allocation5 + $0x88] sm:$0xff]  }
 0x237   : > { %3877 = vmatmul.mubr.bf16.gmra.mxu1 %v7794_v27  ;;  %v6188_v0 = vld [vmem:[#allocation5 + $0xc0] sm:$0xff]  }
 0x238   : > { %v2783_v47 = vadd.f32 %v2782_v30, %v2670_v13  ;;  %4035 = vmatpush2.bf16.msra.mxu1 %v6146_v58  ;;  %v2847_v5 = vmax.f32 %v2781_v15, 0.0  ;;  %v6189_v15 = vld [vmem:[#allocation5 + $0x80] sm:$0xff]  }
 0x239   : > { %4036 = vmatprep.subr.bf16.mxu1 %v6151_v24  ;;  %5403 = vmatpush3.bf16.msra.mxu0 %v6165_v48  ;;  %v8342_v11 = vld [vmem:[#allocation11_spill] sm:$0xff] }
 0x23a   : > { %v2848_v31 = vmax.f32 %v2783_v47, 0.0  ;;  %v7800_v28 = vpack.c.bf16 %v2847_v5, %v2843_v3  ;;  %5404 = vmatprep.subr.bf16.mxu0 %v6166_v32  ;;  %v8344_v22 = vsub.s32 0, %v8342_v11 }
 0x23c   : > { %v7798_v29 = vpack.c.bf16 %v2848_v31, %v2844_v20  ;;  %4037 = vmatpush2.bf16.msra.mxu1 %v6149_v60 }
 0x23d   : > { %4038 = vmatprep.subr.bf16.mxu1 %v6154_v34  ;;  %5405 = vmatpush3.bf16.msra.mxu0 %v6167_v6 }
 0x23e   : > { %3886 = vmatprep.mubr.bf16.mxu1 %v7798_v29  ;;  %5406 = vmatprep.subr.bf16.mxu0 %v6168_v12 }
 0x23f   : > { %3887 = vmatmul.mubr.bf16.gmra.mxu1 %v7800_v28 }
 0x240   : > { %4039 = vmatpush2.bf16.msra.mxu1 %v6152_v53  ;;  %4042 = vmatprep.mubr.bf16.mxu1 %v7708_v57  ;;  %v6170_v57 = vld [vmem:[#allocation5 + $0x48] sm:$0xff]  }
 0x241   : > { %4040 = vmatprep.subr.bf16.mxu1 %v6157_v51  ;;  %5407 = vmatpush3.bf16.msra.mxu0 %v6169_v25 }
 0x242   : > { %5408 = vmatprep.subr.bf16.mxu0 %v6170_v57 }
 0x244   : > { %4041 = vmatpush2.bf16.msra.mxu1 %v6155_v2 }
 0x245   : > { %5409 = vmatpush3.bf16.msra.mxu0 %v6171_v19  ;;  %5460 = vmatprep.subr.bf16.mxu1 %v6174_v56 }
 0x246   : > { %5410 = vmatprep.subr.bf16.mxu0 %v6172_v52 }
 0x247   : > { %v7805_v43 = vpop.f32.mrf.mxu0  ;;  %4043 = vmatmul.mubr.bf16.vlgmr.msra.gmra.mxu1 %v7710_v40  ;;  %v6173_v40 = vld [vmem:[#allocation5] sm:$0xff]  }
 0x248   : > { %4052 = vmatprep.mubr.bf16.mxu1 %v7722_v7  ;;  %5461 = vmatpush3.bf16.msra.mxu1 %v6175_v50 }
 0x249   : > { %v7809_v8 = vpop.f32.mrf.mxu0  ;;  %5411 = vmatpush3.bf16.msra.mxu0 %v6173_v40  ;;  %5462 = vmatprep.subr.bf16.mxu1 %v6176_v14 }
 0x24b   : > { %v7811_v18 = vpop.f32.mrf.mxu0 }
 0x24c   : > { %5463 = vmatpush3.bf16.msra.mxu1 %v6177_v45 }
 0x24d   : > { %v7815_v55 = vpop.f32.mrf.mxu0  ;;  %5464 = vmatprep.subr.bf16.mxu1 %v6178_v62 }
 0x24f   : > { %4053 = vmatmul.mubr.bf16.gmra.mxu1 %v7724_v39  ;;  %v7817_v7 = vpop.f32.mrf.mxu0 }
 0x250   : > { %4062 = vmatprep.mubr.bf16.mxu1 %v7736_v10  ;;  %5465 = vmatpush3.bf16.msra.mxu1 %v6179_v33 }
 0x251   : > { %v7821_v49 = vpop.f32.mrf.mxu0  ;;  %5466 = vmatprep.subr.bf16.mxu1 %v6180_v54 }
 0x253   : > { %v7823_v39 = vpop.f32.mrf.mxu0 }
 0x254   : > { %5467 = vmatpush3.bf16.msra.mxu1 %v6181_v63 }
 0x255   : > { %v7827_v10 = vpop.f32.mrf.mxu0  ;;  %5468 = vmatprep.subr.bf16.mxu1 %v6182_v36 }
 0x257   : > { %4063 = vmatmul.mubr.bf16.gmra.mxu1 %v7738_v37  ;;  %v7829_v37 = vpop.f32.mrf.mxu0 }
 0x258   : > { %4072 = vmatprep.mubr.bf16.mxu1 %v7750_v23  ;;  %5469 = vmatpush3.bf16.msra.mxu1 %v6183_v21 }
 0x259   : > { %v7833_v23 = vpop.f32.mrf.mxu0 }
 0x25f   : > { %4073 = vmatmul.mubr.bf16.gmra.mxu1 %v7752_v9  ;;  %v7835_v9 = vpop.f32.mrf.mxu0 }
 0x260   : > { %4082 = vmatprep.mubr.bf16.mxu1 %v7764_v42 }
 0x261   : > { %v7839_v42 = vpop.f32.mrf.mxu0 }
 0x267   : > { %4083 = vmatmul.mubr.bf16.gmra.mxu1 %v7766_v35  ;;  %v7841_v35 = vpop.f32.mrf.mxu0 }
 0x268   : > { %4092 = vmatprep.mubr.bf16.mxu1 %v7778_v61 }
 0x269   : > { %v7845_v61 = vpop.f32.mrf.mxu0 }
 0x26f   : > { %4093 = vmatmul.mubr.bf16.gmra.mxu1 %v7780_v59  ;;  %v7847_v59 = vpop.f32.mrf.mxu0 }
 0x270   : > { %4102 = vmatprep.mubr.bf16.mxu1 %v7792_v44  ;;  %v6184_v44 = vld [vmem:[#allocation5 + $0xd0] sm:$0xff]  }
 0x271   : > { %v7850_v38 = vpop.f32.mrf.mxu0  ;;  %5470 = vmatprep.subr.bf16.mxu1 %v6184_v44 }
 0x272   : > { %5471 = vmatpush3.bf16.msra.mxu1 %v6185_v4 }
 0x273   : > { %v7852_v58 = vpop.f32.mrf.mxu0 }
 0x275   : > { %v7854_v17 = vpop.f32.mrf.mxu0 }
 0x277   : > { %4103 = vmatmul.mubr.bf16.gmra.mxu1 %v7794_v27  ;;  %v6186_v27 = vld [vmem:[#allocation5 + $0xc8] sm:$0xff]   ;;  %v7856_v24 = vpop.f32.mrf.mxu0 }
 0x278   : > { %4112 = vmatprep.mubr.bf16.mxu1 %v7798_v29  ;;  %5472 = vmatprep.subr.bf16.mxu1 %v6186_v27  ;;  %v7887_v29 = vld [vmem:[%s8296_s4] sm:$0xf] }
 0x279   : > { %5473 = vmatpush3.bf16.msra.mxu1 %v6187_v41  ;;  %v7858_v13 = vpop.f32.mrf.mxu0  ;;  %v7899_v2 = vrot.slane %v7887_v29, %v8344_v22 }
 0x27a   : > { %5474 = vmatprep.subr.bf16.mxu1 %v6188_v0 }
 0x27b   : > { %v7860_v1 = vpop.f32.mrf.mxu0  ;;  %v3710_v25 = vadd.f32 %v7811_v18, %v7899_v2  ;;  %v3706_v57 = vadd.f32 %v7805_v43, %v7899_v2  ;;  %v3716_v4 = vadd.f32 %v7817_v7, %v7899_v2 }
 0x27d   : > { %5475 = vmatpush3.bf16.msra.mxu1 %v6189_v15  ;;  %v7862_v30 = vpop.f32.mrf.mxu0 }
 0x27f   : > { %4113 = vmatmul.mubr.bf16.gmra.mxu1 %v7800_v28  ;;  %v7864_v26 = vpop.f32.mrf.mxu0  ;;  %v8343_v28 = vsub.s32 1, %v8342_v11 }
 0x281   : > { %v7866_v47 = vpop.f32.mrf.mxu0  ;;  %v7894_v51 = vrot.slane %v7887_v29, %v8343_v28 }
 0x283   : > { %v7868_v60 = vpop.f32.mrf.mxu0  ;;  %v3708_v12 = vadd.f32 %v7809_v8, %v7894_v51  ;;  %v3712_v52 = vadd.f32 %v7815_v55, %v7894_v51  ;;  %v3718_v43 = vadd.f32 %v7821_v49, %v7894_v51  ;;  %v3720_v55 = vadd.f32 %v7823_v39, %v7899_v2 }
 0x284   : > { %v3722_v0 = vadd.f32 %v7827_v10, %v7894_v51  ;;  %v3728_v10 = vadd.f32 %v7833_v23, %v7894_v51 }
 0x285   : > { %v7870_v16 = vpop.f32.mrf.mxu0 }
 0x287   : > { %v7872_v5 = vpop.f32.mrf.mxu0 }
 0x289   : > { %v7874_v34 = vpop.f32.mrf.mxu0 }
 0x28b   : > { %v7876_v20 = vpop.f32.mrf.mxu0 }
 0x28d   : > { %v7878_v31 = vpop.f32.mrf.mxu0 }
 0x28f   : > { %v7880_v3 = vpop.f32.mrf.mxu0 }
 0x291   : > { %v7882_v46 = vpop.f32.mrf.mxu0 }
 0x293   : > { %v7889_v53 = vpop.f32.mrf.mxu0 }
 0x295   : > { %v7901_v32 = vpop.f32.mrf.mxu0 }
 0x297   : > { %v7911_v50 = vpop.f32.mrf.mxu0 }
 0x299   : > { %v7913_v36 = vpop.f32.mrf.mxu0 }
 0x29b   : > { %v7923_v22 = vpop.f32.mrf.mxu0 }
 0x2c7   : > { %v3818_v48 = vpop.f32.mrf.mxu1 }
 0x2c8   : > { %v3819_v14 = vadd.f32 %v3818_v48, %v3706_v57 }
 0x2c9   : > { %v3820_v6 = vpop.f32.mrf.mxu1 }
 0x2ca   : > { %v3821_v40 = vadd.f32 %v3820_v6, %v3708_v12  ;;  %v4123_v18 = vmax.f32 %v3819_v14, 0.0  ;;  %v3726_v14 = vadd.f32 %v7829_v37, %v7899_v2 }
 0x2cb   : > { %v3822_v19 = vpop.f32.mrf.mxu1 }
 0x2cc   : > { %v3823_v56 = vadd.f32 %v3822_v19, %v3710_v25  ;;  %v4124_v8 = vmax.f32 %v3821_v40, 0.0  ;;  %v7925_v19 = vpop.f32.mrf.mxu0  ;;  %v3730_v40 = vadd.f32 %v7835_v9, %v7899_v2 }
 0x2cd   : > { %v3824_v45 = vpop.f32.mrf.mxu1 }
 0x2ce   : > { %v3825_v62 = vadd.f32 %v3824_v45, %v3712_v52  ;;  %v4127_v33 = vmax.f32 %v3823_v56, 0.0 }
 0x2cf   : > { %v3828_v54 = vpop.f32.mrf.mxu1 }
 0x2d0   : > { %v4128_v63 = vmax.f32 %v3825_v62, 0.0  ;;  %v4187_v27 = vpack.c.bf16 %v4127_v33, %v4123_v18  ;;  %v3829_v48 = vadd.f32 %v3828_v54, %v3716_v4  ;;  %v3732_v33 = vadd.f32 %v7839_v42, %v7894_v51 }
 0x2d1   : > { %v3830_v21 = vpop.f32.mrf.mxu1  ;;  %v3738_v42 = vadd.f32 %v7845_v61, %v7894_v51 }
 0x2d2   : > { %v4188_v44 = vpack.c.bf16 %v4128_v63, %v4124_v8  ;;  %v3831_v15 = vadd.f32 %v3830_v21, %v3718_v43  ;;  %v4131_v7 = vmax.f32 %v3829_v48, 0.0  ;;  %v7935_v63 = vpop.f32.mrf.mxu0 }
 0x2d3   : > { %v3832_v41 = vpop.f32.mrf.mxu1 }
 0x2d4   : > { %v3833_v28 = vadd.f32 %v3832_v41, %v3720_v55  ;;  %4514 = vmatprep.mubr.bf16.mxu0 %v4188_v44  ;;  %v4132_v25 = vmax.f32 %v3831_v15, 0.0  ;;  %v7937_v4 = vpop.f32.mrf.mxu0  ;;  %v3740_v41 = vadd.f32 %v7847_v59, %v7899_v2  ;;  %v3736_v15 = vadd.f32 %v7841_v35, %v7899_v2 }
 0x2d5   : > { %v3834_v6 = vpop.f32.mrf.mxu1  ;;  %4515 = vmatmul.mubr.bf16.vlgmr.msra.gmra.mxu0 %v4187_v27 }
 0x2d6   : > { %v3835_v49 = vadd.f32 %v3834_v6, %v3722_v0  ;;  %v4135_v12 = vmax.f32 %v3833_v28, 0.0  ;;  %v3742_v6 = vadd.f32 %v7850_v38, %v7894_v51  ;;  %v3748_v38 = vadd.f32 %v7854_v17, %v7894_v51 }
 0x2d7   : > { %v3838_v39 = vpop.f32.mrf.mxu1 }
 0x2d8   : > { %v4136_v57 = vmax.f32 %v3835_v49, 0.0  ;;  %v4191_v45 = vpack.c.bf16 %v4135_v12, %v4131_v7  ;;  %v3839_v18 = vadd.f32 %v3838_v39, %v3726_v14  ;;  %v7947_v39 = vpop.f32.mrf.mxu0  ;;  %v3750_v14 = vadd.f32 %v7856_v24, %v7899_v2 }
 0x2d9   : > { %v3840_v52 = vpop.f32.mrf.mxu1 }
 0x2da   : > { %v4192_v56 = vpack.c.bf16 %v4136_v57, %v4132_v25  ;;  %v3841_v54 = vadd.f32 %v3840_v52, %v3728_v10  ;;  %v4139_v37 = vmax.f32 %v3839_v18, 0.0 }
 0x2db   : > { %v3842_v62 = vpop.f32.mrf.mxu1 }
 0x2dc   : > { %v3843_v8 = vadd.f32 %v3842_v62, %v3730_v40  ;;  %4522 = vmatprep.mubr.bf16.mxu0 %v4192_v56  ;;  %v4140_v55 = vmax.f32 %v3841_v54, 0.0  ;;  %v7949_v40 = vpop.f32.mrf.mxu0  ;;  %v3746_v62 = vadd.f32 %v7852_v58, %v7899_v2 }
 0x2dd   : > { %v3844_v21 = vpop.f32.mrf.mxu1  ;;  %4523 = vmatmul.mubr.bf16.gmra.mxu0 %v4191_v45 }
 0x2de   : > { %v3845_v23 = vadd.f32 %v3844_v21, %v3732_v33  ;;  %v4143_v43 = vmax.f32 %v3843_v8, 0.0  ;;  %v3752_v8 = vadd.f32 %v7858_v13, %v7894_v51  ;;  %v3758_v13 = vadd.f32 %v7862_v30, %v7894_v51 }
 0x2df   : > { %v3848_v9 = vpop.f32.mrf.mxu1 }
 0x2e0   : > { %v4144_v44 = vmax.f32 %v3845_v23, 0.0  ;;  %v4195_v28 = vpack.c.bf16 %v4143_v43, %v4139_v37  ;;  %v3849_v25 = vadd.f32 %v3848_v9, %v3736_v15  ;;  %v7959_v23 = vpop.f32.mrf.mxu0  ;;  %v3756_v15 = vadd.f32 %v7860_v1, %v7899_v2 }
 0x2e1   : > { %v3850_v27 = vpop.f32.mrf.mxu1 }
 0x2e2   : > { %v4196_v0 = vpack.c.bf16 %v4144_v44, %v4140_v55  ;;  %v3851_v49 = vadd.f32 %v3850_v27, %v3738_v42  ;;  %v4147_v35 = vmax.f32 %v3849_v25, 0.0  ;;  %v7961_v27 = vpop.f32.mrf.mxu0 }
 0x2e3   : > { %v3852_v48 = vpop.f32.mrf.mxu1 }
 0x2e4   : > { %v3853_v12 = vadd.f32 %v3852_v48, %v3740_v41  ;;  %4530 = vmatprep.mubr.bf16.mxu0 %v4196_v0  ;;  %v4148_v52 = vmax.f32 %v3851_v49, 0.0  ;;  %v3760_v41 = vadd.f32 %v7864_v26, %v7899_v2  ;;  %v7971_v25 = vpop.f32.mrf.mxu0 }
 0x2e5   : > { %v3854_v57 = vpop.f32.mrf.mxu1  ;;  %4531 = vmatmul.mubr.bf16.gmra.mxu0 %v4195_v28 }
 0x2e6   : > { %v3855_v61 = vadd.f32 %v3854_v57, %v3742_v6  ;;  %v4151_v7 = vmax.f32 %v3853_v12, 0.0  ;;  %v3762_v6 = vadd.f32 %v7866_v47, %v7894_v51  ;;  %v3768_v47 = vadd.f32 %v7870_v16, %v7894_v51 }
 0x2e7   : > { %v3858_v59 = vpop.f32.mrf.mxu1 }
 0x2e8   : > { %v4152_v10 = vmax.f32 %v3855_v61, 0.0  ;;  %v4199_v33 = vpack.c.bf16 %v4151_v7, %v4147_v35  ;;  %v3859_v43 = vadd.f32 %v3858_v59, %v3746_v62 }
 0x2e9   : > { %v3860_v56 = vpop.f32.mrf.mxu1 }
 0x2ea   : > { %v4200_v45 = vpack.c.bf16 %v4152_v10, %v4148_v52  ;;  %v3861_v18 = vadd.f32 %v3860_v56, %v3748_v38  ;;  %v4155_v58 = vmax.f32 %v3859_v43, 0.0  ;;  %v7973_v10 = vpop.f32.mrf.mxu0  ;;  %v3770_v56 = vadd.f32 %v7872_v5, %v7899_v2 }
 0x2eb   : > { %v3862_v54 = vpop.f32.mrf.mxu1 }
 0x2ec   : > { %v3863_v21 = vadd.f32 %v3862_v54, %v3750_v14  ;;  %4538 = vmatprep.mubr.bf16.mxu0 %v4200_v45  ;;  %v4156_v44 = vmax.f32 %v3861_v18, 0.0  ;;  %v3766_v14 = vadd.f32 %v7868_v60, %v7899_v2  ;;  %v7983_v18 = vpop.f32.mrf.mxu0 }
 0x2ed   : > { %v3864_v9 = vpop.f32.mrf.mxu1  ;;  %4539 = vmatmul.mubr.bf16.gmra.mxu0 %v4199_v33  ;;  %v3772_v33 = vadd.f32 %v7874_v34, %v7894_v51  ;;  %v3778_v34 = vadd.f32 %v7878_v31, %v7894_v51  ;;  %v8345_v31 = vsub.s32 3, %v8342_v11 }
 0x2ee   : > { %v3865_v17 = vadd.f32 %v3864_v9, %v3752_v8  ;;  %v4159_v55 = vmax.f32 %v3863_v21, 0.0 }
 0x2ef   : > { %v3868_v24 = vpop.f32.mrf.mxu1 }
 0x2f0   : > { %v4160_v37 = vmax.f32 %v3865_v17, 0.0  ;;  %v4203_v28 = vpack.c.bf16 %v4159_v55, %v4155_v58  ;;  %v3869_v57 = vadd.f32 %v3868_v24, %v3756_v15  ;;  %v7985_v24 = vpop.f32.mrf.mxu0 }
 0x2f1   : > { %v3870_v42 = vpop.f32.mrf.mxu1 }
 0x2f2   : > { %v4204_v0 = vpack.c.bf16 %v4160_v37, %v4156_v44  ;;  %v3871_v49 = vadd.f32 %v3870_v42, %v3758_v13  ;;  %v4163_v1 = vmax.f32 %v3869_v57, 0.0  ;;  %v3780_v37 = vadd.f32 %v7880_v3, %v7899_v2 }
 0x2f3   : > { %v3872_v48 = vpop.f32.mrf.mxu1  ;;  %v3776_v42 = vadd.f32 %v7876_v20, %v7899_v2  ;;  %v8000_v3 = vrot.slane %v7887_v29, %v8345_v31  ;;  %v8346_v20 = vsub.s32 2, %v8342_v11 }
 0x2f4   : > { %v3873_v12 = vadd.f32 %v3872_v48, %v3760_v41  ;;  %4546 = vmatprep.mubr.bf16.mxu0 %v4204_v0  ;;  %v4164_v59 = vmax.f32 %v3871_v49, 0.0  ;;  %v3782_v0 = vadd.f32 %v7882_v46, %v7894_v51  ;;  %v7995_v48 = vpop.f32.mrf.mxu0 }
 0x2f5   : > { %v3874_v61 = vpop.f32.mrf.mxu1  ;;  %4547 = vmatmul.mubr.bf16.gmra.mxu0 %v4203_v28  ;;  %v8005_v2 = vrot.slane %v7887_v29, %v8346_v20 }
 0x2f6   : > { %v3875_v30 = vadd.f32 %v3874_v61, %v3762_v6  ;;  %v4167_v7 = vmax.f32 %v3873_v12, 0.0 }
 0x2f7   : > { %v3878_v26 = vpop.f32.mrf.mxu1  ;;  %v3932_v11 = vadd.f32 %v7889_v53, %v8005_v2  ;;  %v3952_v31 = vadd.f32 %v7947_v39, %v8005_v2 }
 0x2f8   : > { %v4168_v52 = vmax.f32 %v3875_v30, 0.0  ;;  %v4207_v45 = vpack.c.bf16 %v4167_v7, %v4163_v1  ;;  %v3879_v21 = vadd.f32 %v3878_v26, %v3766_v14  ;;  %v8007_v30 = vpop.f32.mrf.mxu0 }
 0x2f9   : > { %v3880_v35 = vpop.f32.mrf.mxu1 }
 0x2fa   : > { %v4208_v38 = vpack.c.bf16 %v4168_v52, %v4164_v59  ;;  %v3881_v54 = vadd.f32 %v3880_v35, %v3768_v47  ;;  %v4171_v60 = vmax.f32 %v3879_v21, 0.0  ;;  %v3934_v59 = vadd.f32 %v7901_v32, %v8000_v3  ;;  %v8017_v14 = vpop.f32.mrf.mxu0 }
 0x2fb   : > { %v3882_v62 = vpop.f32.mrf.mxu1  ;;  %v3936_v52 = vadd.f32 %v7911_v50, %v8005_v2  ;;  %v3938_v47 = vadd.f32 %v7913_v36, %v8000_v3  ;;  %v3944_v36 = vadd.f32 %v7925_v19, %v8000_v3 }
 0x2fc   : > { %v3883_v8 = vadd.f32 %v3882_v62, %v3770_v56  ;;  %4554 = vmatprep.mubr.bf16.mxu0 %v4208_v38  ;;  %v4172_v17 = vmax.f32 %v3881_v54, 0.0  ;;  %v8019_v21 = vpop.f32.mrf.mxu0 }
 0x2fd   : > { %v3884_v43 = vpop.f32.mrf.mxu1  ;;  %4555 = vmatmul.mubr.bf16.gmra.mxu0 %v4207_v45 }
 0x2fe   : > { %v3885_v16 = vadd.f32 %v3884_v43, %v3772_v33  ;;  %v4175_v9 = vmax.f32 %v3883_v8, 0.0 }
 0x2ff   : > { %v3888_v5 = vpop.f32.mrf.mxu1 }
 0x300   : > { %v4176_v55 = vmax.f32 %v3885_v16, 0.0  ;;  %v4211_v13 = vpack.c.bf16 %v4175_v9, %v4171_v60  ;;  %v3889_v6 = vadd.f32 %v3888_v5, %v3776_v42  ;;  %v3946_v16 = vadd.f32 %v7935_v63, %v8005_v2 }
 0x301   : > { %v3890_v44 = vpop.f32.mrf.mxu1  ;;  %v3942_v5 = vadd.f32 %v7923_v22, %v8005_v2  ;;  %v3948_v60 = vadd.f32 %v7937_v4, %v8000_v3  ;;  %v3954_v4 = vadd.f32 %v7949_v40, %v8000_v3 }
 0x302   : > { %v4212_v58 = vpack.c.bf16 %v4176_v55, %v4172_v17  ;;  %v3891_v15 = vadd.f32 %v3890_v44, %v3778_v34  ;;  %v4179_v7 = vmax.f32 %v3889_v6, 0.0  ;;  %v3956_v6 = vadd.f32 %v7959_v23, %v8005_v2 }
 0x303   : > { %v3892_v41 = vpop.f32.mrf.mxu1 }
 0x304   : > { %v3893_v28 = vadd.f32 %v3892_v41, %v3780_v37  ;;  %4562 = vmatprep.mubr.bf16.mxu0 %v4212_v58  ;;  %v4180_v57 = vmax.f32 %v3891_v15, 0.0  ;;  %v8029_v37 = vpop.f32.mrf.mxu0 }
 0x305   : > { %v3894_v49 = vpop.f32.mrf.mxu1  ;;  %4563 = vmatmul.mubr.bf16.gmra.mxu0 %v4211_v13 }
 0x306   : > { %v3895_v12 = vadd.f32 %v3894_v49, %v3782_v0  ;;  %v4183_v46 = vmax.f32 %v3893_v28, 0.0  ;;  %v8031_v15 = vpop.f32.mrf.mxu0 }
 0x307   : > { %v4044_v51 = vpop.f32.mrf.mxu1 }
 0x308   : > { %v4184_v61 = vmax.f32 %v3895_v12, 0.0  ;;  %v4215_v29 = vpack.c.bf16 %v4183_v46, %v4179_v7  ;;  %v4045_v45 = vadd.f32 %v4044_v51, %v3932_v11  ;;  %v3958_v46 = vadd.f32 %v7961_v27, %v8000_v3 }
 0x309   : > { %v4046_v26 = vpop.f32.mrf.mxu1  ;;  %v3966_v27 = vadd.f32 %v7983_v18, %v8005_v2 }
 0x30a   : > { %v4216_v1 = vpack.c.bf16 %v4184_v61, %v4180_v57  ;;  %v4047_v56 = vadd.f32 %v4046_v26, %v3934_v59  ;;  %v4125_v53 = vmax.f32 %v4045_v45, 0.0  ;;  %v3985_v61 = vpop.f32.mrf.mxu0 }
 0x30b   : > { %v4048_v35 = vpop.f32.mrf.mxu1 }
 0x30c   : > { %v4049_v38 = vadd.f32 %v4048_v35, %v3936_v52  ;;  %4570 = vmatprep.mubr.bf16.mxu0 %v4216_v1  ;;  %v4126_v54 = vmax.f32 %v4047_v56, 0.0  ;;  %v3987_v11 = vpop.f32.mrf.mxu0  ;;  %v3964_v35 = vadd.f32 %v7973_v10, %v8000_v3  ;;  %v3962_v56 = vadd.f32 %v7971_v25, %v8005_v2 }
 0x30d   : > { %v4050_v62 = vpop.f32.mrf.mxu1  ;;  %4571 = vmatmul.mubr.bf16.gmra.mxu0 %v4215_v29 }
 0x30e   : > { %v4051_v32 = vadd.f32 %v4050_v62, %v3938_v47  ;;  %v4129_v33 = vmax.f32 %v4049_v38, 0.0  ;;  %v3968_v62 = vadd.f32 %v7985_v24, %v8000_v3  ;;  %v3976_v24 = vadd.f32 %v8017_v14, %v8005_v2 }
 0x30f   : > { %v4054_v50 = vpop.f32.mrf.mxu1 }
 0x310   : > { %v4130_v8 = vmax.f32 %v4051_v32, 0.0  ;;  %v4189_v17 = vpack.c.bf16 %v4129_v33, %v4125_v53  ;;  %v4055_v58 = vadd.f32 %v4054_v50, %v3942_v5  ;;  %v3991_v50 = vpop.f32.mrf.mxu0  ;;  %v3974_v5 = vadd.f32 %v8007_v30, %v8000_v3 }
 0x311   : > { %v4056_v43 = vpop.f32.mrf.mxu1 }
 0x312   : > { %v4190_v9 = vpack.c.bf16 %v4130_v8, %v4126_v54  ;;  %v4057_v44 = vadd.f32 %v4056_v43, %v3944_v36  ;;  %v4133_v22 = vmax.f32 %v4055_v58, 0.0 }
 0x313   : > { %v4058_v55 = vpop.f32.mrf.mxu1 }
 0x314   : > { %v4059_v34 = vadd.f32 %v4058_v55, %v3946_v16  ;;  %4611 = vmatprep.mubr.bf16.mxu1 %v4190_v9  ;;  %v4134_v41 = vmax.f32 %v4057_v44, 0.0  ;;  %v3993_v16 = vpop.f32.mrf.mxu0  ;;  %v3972_v55 = vadd.f32 %v7995_v48, %v8005_v2 }
 0x315   : > { %v4060_v42 = vpop.f32.mrf.mxu1  ;;  %4612 = vmatmul.mubr.bf16.vlgmr.msra.gmra.mxu1 %v4189_v17 }
 0x316   : > { %v4061_v19 = vadd.f32 %v4060_v42, %v3948_v60  ;;  %v4137_v13 = vmax.f32 %v4059_v34, 0.0  ;;  %v3978_v34 = vadd.f32 %v8019_v21, %v8000_v3  ;;  %v3986_v21 = vadd.f32 %v3985_v61, %v8005_v2 }
 0x317   : > { %v4064_v63 = vpop.f32.mrf.mxu1 }
 0x318   : > { %v4138_v0 = vmax.f32 %v4061_v19, 0.0  ;;  %v4193_v12 = vpack.c.bf16 %v4137_v13, %v4133_v22  ;;  %v4065_v7 = vadd.f32 %v4064_v63, %v3952_v31  ;;  %v3995_v19 = vpop.f32.mrf.mxu0  ;;  %v3982_v31 = vadd.f32 %v8029_v37, %v8005_v2 }
 0x319   : > { %v4066_v28 = vpop.f32.mrf.mxu1  ;;  %v3994_v37 = vadd.f32 %v3993_v16, %v8000_v3 }
 0x31a   : > { %v4194_v49 = vpack.c.bf16 %v4138_v0, %v4134_v41  ;;  %v4067_v51 = vadd.f32 %v4066_v28, %v3954_v4  ;;  %v4141_v29 = vmax.f32 %v4065_v7, 0.0  ;;  %v3997_v28 = vpop.f32.mrf.mxu0 }
 0x31b   : > { %v4068_v20 = vpop.f32.mrf.mxu1 }
 0x31c   : > { %v4069_v57 = vadd.f32 %v4068_v20, %v3956_v6  ;;  %4619 = vmatprep.mubr.bf16.mxu1 %v4194_v49  ;;  %v4142_v23 = vmax.f32 %v4067_v51, 0.0  ;;  %v3984_v6 = vadd.f32 %v8031_v15, %v8000_v3  ;;  %v4001_v7 = vpop.f32.mrf.mxu0 }
 0x31d   : > { %v4070_v26 = vpop.f32.mrf.mxu1  ;;  %4620 = vmatmul.mubr.bf16.gmra.mxu1 %v4193_v12 }
 0x31e   : > { %v4071_v40 = vadd.f32 %v4070_v26, %v3958_v46  ;;  %v4145_v59 = vmax.f32 %v4069_v57, 0.0  ;;  %v3988_v46 = vadd.f32 %v3987_v11, %v8000_v3 }
 0x31f   : > { %v4074_v52 = vpop.f32.mrf.mxu1 }
 0x320   : > { %v4146_v1 = vmax.f32 %v4071_v40, 0.0  ;;  %v4197_v38 = vpack.c.bf16 %v4145_v59, %v4141_v29  ;;  %v4075_v54 = vadd.f32 %v4074_v52, %v3962_v56 }
 0x321   : > { %v4076_v39 = vpop.f32.mrf.mxu1 }
 0x322   : > { %v4198_v47 = vpack.c.bf16 %v4146_v1, %v4142_v23  ;;  %v4077_v32 = vadd.f32 %v4076_v39, %v3964_v35  ;;  %v4149_v9 = vmax.f32 %v4075_v54, 0.0  ;;  %v4003_v1 = vpop.f32.mrf.mxu0  ;;  %v3996_v35 = vadd.f32 %v3995_v19, %v8005_v2 }
 0x323   : > { %v4078_v45 = vpop.f32.mrf.mxu1 }
 0x324   : > { %v4079_v33 = vadd.f32 %v4078_v45, %v3966_v27  ;;  %4627 = vmatprep.mubr.bf16.mxu1 %v4198_v47  ;;  %v4150_v18 = vmax.f32 %v4077_v32, 0.0  ;;  %v3992_v27 = vadd.f32 %v3991_v50, %v8005_v2  ;;  %v4005_v32 = vpop.f32.mrf.mxu0  ;;  %v4004_v50 = vadd.f32 %v4003_v1, %v8000_v3 }
 0x325   : > { %v4080_v8 = vpop.f32.mrf.mxu1  ;;  %4628 = vmatmul.mubr.bf16.gmra.mxu1 %v4197_v38  ;;  %v3998_v38 = vadd.f32 %v3997_v28, %v8000_v3 }
 0x326   : > { %v4081_v10 = vadd.f32 %v4080_v8, %v3968_v62  ;;  %v4153_v53 = vmax.f32 %v4079_v33, 0.0 }
 0x327   : > { %v4084_v43 = vpop.f32.mrf.mxu1 }
 0x328   : > { %v4154_v36 = vmax.f32 %v4081_v10, 0.0  ;;  %v4201_v60 = vpack.c.bf16 %v4153_v53, %v4149_v9  ;;  %v4085_v13 = vadd.f32 %v4084_v43, %v3972_v55 }
 0x329   : > { %v4086_v25 = vpop.f32.mrf.mxu1 }
 0x32a   : > { %v4202_v17 = vpack.c.bf16 %v4154_v36, %v4150_v18  ;;  %v4087_v58 = vadd.f32 %v4086_v25, %v3974_v5  ;;  %v4157_v4 = vmax.f32 %v4085_v13, 0.0  ;;  %v4007_v36 = vpop.f32.mrf.mxu0  ;;  %v4006_v25 = vadd.f32 %v4005_v32, %v8005_v2 }
 0x32b   : > { %v4088_v44 = vpop.f32.mrf.mxu1 }
 0x32c   : > { %v4089_v42 = vadd.f32 %v4088_v44, %v3976_v24  ;;  %4635 = vmatprep.mubr.bf16.mxu1 %v4202_v17  ;;  %v4158_v14 = vmax.f32 %v4087_v58, 0.0  ;;  %v4002_v24 = vadd.f32 %v4001_v7, %v8005_v2 }
 0x32d   : > { %v4090_v63 = vpop.f32.mrf.mxu1  ;;  %4636 = vmatmul.mubr.bf16.gmra.mxu1 %v4201_v60  ;;  %v4008_v60 = vadd.f32 %v4007_v36, %v8000_v3 }
 0x32e   : > { %v4091_v30 = vadd.f32 %v4090_v63, %v3978_v34  ;;  %v4161_v41 = vmax.f32 %v4089_v42, 0.0 }
 0x32f   : > { %v4094_v0 = vpop.f32.mrf.mxu1 }
 0x330   : > { %v4162_v22 = vmax.f32 %v4091_v30, 0.0  ;;  %v4205_v12 = vpack.c.bf16 %v4161_v41, %v4157_v4  ;;  %v4095_v26 = vadd.f32 %v4094_v0, %v3982_v31 }
 0x331   : > { %v4096_v48 = vpop.f32.mrf.mxu1 }
 0x332   : > { %v4206_v49 = vpack.c.bf16 %v4162_v22, %v4158_v14  ;;  %v4097_v51 = vadd.f32 %v4096_v48, %v3984_v6  ;;  %v4165_v29 = vmax.f32 %v4095_v26, 0.0 }
 0x333   : > { %v4098_v20 = vpop.f32.mrf.mxu1 }
 0x334   : > { %v4099_v57 = vadd.f32 %v4098_v20, %v3986_v21  ;;  %4643 = vmatprep.mubr.bf16.mxu1 %v4206_v49  ;;  %v4166_v23 = vmax.f32 %v4097_v51, 0.0 }
 0x335   : > { %v4100_v40 = vpop.f32.mrf.mxu1  ;;  %4644 = vmatmul.mubr.bf16.gmra.mxu1 %v4205_v12 }
 0x336   : > { %v4101_v59 = vadd.f32 %v4100_v40, %v3988_v46  ;;  %v4169_v52 = vmax.f32 %v4099_v57, 0.0 }
 0x337   : > { %v4104_v15 = vpop.f32.mrf.mxu1 }
 0x338   : > { %v4170_v61 = vmax.f32 %v4101_v59, 0.0  ;;  %v4209_v47 = vpack.c.bf16 %v4169_v52, %v4165_v29  ;;  %v4105_v33 = vadd.f32 %v4104_v15, %v3992_v27  ;;  %v8074_v59 = vld [vmem:[%s8298_s6] ss:$0 sm:$0xff] }
 0x339   : > { %v4106_v39 = vpop.f32.mrf.mxu1 }
 0x33a   : > { %v4210_v11 = vpack.c.bf16 %v4170_v61, %v4166_v23  ;;  %v4107_v45 = vadd.f32 %v4106_v39, %v3994_v37  ;;  %v4173_v16 = vmax.f32 %v4105_v33, 0.0 }
 0x33b   : > { %v4108_v56 = vpop.f32.mrf.mxu1 }
 0x33c   : > { %v4109_v62 = vadd.f32 %v4108_v56, %v3996_v35  ;;  %4651 = vmatprep.mubr.bf16.mxu1 %v4210_v11  ;;  %v4174_v43 = vmax.f32 %v4107_v45, 0.0 }
 0x33d   : > { %v4110_v54 = vpop.f32.mrf.mxu1  ;;  %4652 = vmatmul.mubr.bf16.gmra.mxu1 %v4209_v47 }
 0x33e   : > { %v4111_v8 = vadd.f32 %v4110_v54, %v3998_v38  ;;  %v4177_v10 = vmax.f32 %v4109_v62, 0.0 }
 0x33f   : > { %v4114_v53 = vpop.f32.mrf.mxu1 }
 0x340   : > { %v4178_v18 = vmax.f32 %v4111_v8, 0.0  ;;  %v4213_v17 = vpack.c.bf16 %v4177_v10, %v4173_v16  ;;  %v4115_v58 = vadd.f32 %v4114_v53, %v4002_v24 }
 0x341   : > { %v4116_v9 = vpop.f32.mrf.mxu1 }
 0x342   : > { %v4214_v5 = vpack.c.bf16 %v4178_v18, %v4174_v43  ;;  %v4117_v44 = vadd.f32 %v4116_v9, %v4004_v50  ;;  %v4181_v41 = vmax.f32 %v4115_v58, 0.0 }
 0x343   : > { %v4118_v55 = vpop.f32.mrf.mxu1 }
 0x344   : > { %v4119_v34 = vadd.f32 %v4118_v55, %v4006_v25  ;;  %4659 = vmatprep.mubr.bf16.mxu1 %v4214_v5  ;;  %v4182_v63 = vmax.f32 %v4117_v44, 0.0 }
 0x345   : > { %v4120_v42 = vpop.f32.mrf.mxu1  ;;  %4660 = vmatmul.mubr.bf16.gmra.mxu1 %v4213_v17 }
 0x346   : > { %v4121_v19 = vadd.f32 %v4120_v42, %v4008_v60  ;;  %v4185_v13 = vmax.f32 %v4119_v34, 0.0 }
 0x348   : > { %v4186_v30 = vmax.f32 %v4121_v19, 0.0  ;;  %v4217_v14 = vpack.c.bf16 %v4185_v13, %v4181_v41 }
 0x34a   : > { %v4218_v0 = vpack.c.bf16 %v4186_v30, %v4182_v63 }
 0x34c   : > { %4667 = vmatprep.mubr.bf16.mxu1 %v4218_v0 }
 0x34d   : > { %4668 = vmatmul.mubr.bf16.gmra.mxu1 %v4217_v14 }
 0x395   : > { %v5412_v2 = vpop.f32.mrf.mxu0 }
 0x397   : > { %v5413_v22 = vpop.f32.mrf.mxu0 }
 0x398   : > { %v5414_v40 = vadd.f32 %v5413_v22, %v5412_v2 }
 0x399   : > { %v5415_v28 = vpop.f32.mrf.mxu0 }
 0x39a   : > { %v4517_v61 = vadd.f32 %v5414_v40, %v8074_v59 }
 0x39b   : > { %v5416_v4 = vpop.f32.mrf.mxu0 }
 0x39c   : > { %v5417_v1 = vadd.f32 %v5416_v4, %v5415_v28 }
 0x39d   : > { %v5418_v3 = vpop.f32.mrf.mxu0 }
 0x39e   : > { %v4520_v27 = vadd.f32 %v5417_v1, %v8074_v59 }
 0x39f   : > { %v5419_v48 = vpop.f32.mrf.mxu0 }
 0x3a0   : > { %v5420_v47 = vadd.f32 %v5419_v48, %v5418_v3 }
 0x3a1   : > { %v5421_v6 = vpop.f32.mrf.mxu0 }
 0x3a2   : > { %v4525_v33 = vadd.f32 %v5420_v47, %v8074_v59 }
 0x3a3   : > { %v5422_v21 = vpop.f32.mrf.mxu0 }
 0x3a4   : > { %v5423_v54 = vadd.f32 %v5422_v21, %v5421_v6 }
 0x3a5   : > { %v5424_v49 = vpop.f32.mrf.mxu0 }
 0x3a6   : > { %v4528_v36 = vadd.f32 %v5423_v54, %v8074_v59 }
 0x3a7   : > { %v5425_v31 = vpop.f32.mrf.mxu0 }
 0x3a8   : > { %v5426_v16 = vadd.f32 %v5425_v31, %v5424_v49 }
 0x3a9   : > { %v5427_v12 = vpop.f32.mrf.mxu0 }
 0x3aa   : > { %v4533_v17 = vadd.f32 %v5426_v16, %v8074_v59 }
 0x3ab   : > { %v5428_v20 = vpop.f32.mrf.mxu0 }
 0x3ac   : > { %v5429_v55 = vadd.f32 %v5428_v20, %v5427_v12 }
 0x3ad   : > { %v5430_v46 = vpop.f32.mrf.mxu0 }
 0x3ae   : > { %v4536_v19 = vadd.f32 %v5429_v55, %v8074_v59 }
 0x3af   : > { %v5431_v51 = vpop.f32.mrf.mxu0 }
 0x3b0   : > { %v5432_v13 = vadd.f32 %v5431_v51, %v5430_v46 }
 0x3b1   : > { %v5433_v57 = vpop.f32.mrf.mxu0 }
 0x3b2   : > { %v4541_v2 = vadd.f32 %v5432_v13, %v8074_v59 }
 0x3b3   : > { %v5434_v7 = vpop.f32.mrf.mxu0 }
 0x3b4   : > { %v5435_v22 = vadd.f32 %v5434_v7, %v5433_v57 }
 0x3b5   : > { %v5436_v26 = vpop.f32.mrf.mxu0 }
 0x3b6   : > { %v4544_v21 = vadd.f32 %v5435_v22, %v8074_v59 }
 0x3b7   : > { %v5437_v52 = vpop.f32.mrf.mxu0 }
 0x3b8   : > { %v5438_v49 = vadd.f32 %v5437_v52, %v5436_v26 }
 0x3b9   : > { %v5439_v39 = vpop.f32.mrf.mxu0 }
 0x3ba   : > { %v4549_v57 = vadd.f32 %v5438_v49, %v8074_v59 }
 0x3bb   : > { %v5440_v38 = vpop.f32.mrf.mxu0 }
 0x3bc   : > { %v5441_v7 = vadd.f32 %v5440_v38, %v5439_v39 }
 0x3bd   : > { %v5442_v10 = vpop.f32.mrf.mxu0 }
 0x3be   : > { %v4552_v26 = vadd.f32 %v5441_v7, %v8074_v59 }
 0x3bf   : > { %v5443_v50 = vpop.f32.mrf.mxu0 }
 0x3c0   : > { %v5444_v52 = vadd.f32 %v5443_v50, %v5442_v10 }
 0x3c1   : > { %v5445_v44 = vpop.f32.mrf.mxu0 }
 0x3c2   : > { %v4557_v39 = vadd.f32 %v5444_v52, %v8074_v59 }
 0x3c3   : > { %v5446_v30 = vpop.f32.mrf.mxu0 }
 0x3c5   : > { %v5448_v4 = vpop.f32.mrf.mxu0 }
 0x3c7   : > { %v5449_v12 = vpop.f32.mrf.mxu0 }
 0x3c8   : > { %v5450_v10 = vadd.f32 %v5449_v12, %v5448_v4 }
 0x3ca   : > { %v4565_v50 = vadd.f32 %v5450_v10, %v8074_v59 }
 0x3d5   : > { %v5476_v15 = vpop.f32.mrf.mxu1 }
 0x3d7   : > { %v5477_v23 = vpop.f32.mrf.mxu1 }
 0x3d8   : > { %v5478_v29 = vadd.f32 %v5477_v23, %v5476_v15  ;;  %v5451_v15 = vpop.f32.mrf.mxu0 }
 0x3d9   : > { %v5479_v37 = vpop.f32.mrf.mxu1 }
 0x3da   : > { %v8077_v35 = vadd.f32 %v5478_v29, %v4517_v61 }
 0x3db   : > { %v5480_v11 = vpop.f32.mrf.mxu1 }
 0x3dc   : > { %v5481_v56 = vadd.f32 %v5480_v11, %v5479_v37  ;;  %4676 = vmax.xlane.f32.xlu0 %v8077_v35  ;;  %v5452_v37 = vpop.f32.mrf.mxu0 }
 0x3dd   : > { %v5482_v45 = vpop.f32.mrf.mxu1 }
 0x3de   : > { %v8081_v62 = vadd.f32 %v5481_v56, %v4520_v27  ;;  %v5447_v56 = vadd.f32 %v5446_v30, %v5445_v44 }
 0x3df   : > { %v5483_v32 = vpop.f32.mrf.mxu1 }
 0x3e0   : > { %v5484_v8 = vadd.f32 %v5483_v32, %v5482_v45  ;;  %4678 = vmax.xlane.f32.xlu0 %v8081_v62  ;;  %v5454_v45 = vpop.f32.mrf.mxu0 }
 0x3e1   : > { %v5485_v53 = vpop.f32.mrf.mxu1 }
 0x3e2   : > { %v8085_v43 = vadd.f32 %v5484_v8, %v4525_v33  ;;  %v4560_v8 = vadd.f32 %v5447_v56, %v8074_v59 }
 0x3e3   : > { %v5486_v18 = vpop.f32.mrf.mxu1 }
 0x3e4   : > { %v5487_v9 = vadd.f32 %v5486_v18, %v5485_v53  ;;  %4680 = vmax.xlane.f32.xlu1 %v8085_v43  ;;  %v5455_v18 = vpop.f32.mrf.mxu0 }
 0x3e5   : > { %v5488_v25 = vpop.f32.mrf.mxu1 }
 0x3e6   : > { %v8089_v5 = vadd.f32 %v5487_v9, %v4528_v36 }
 0x3e7   : > { %v5489_v24 = vpop.f32.mrf.mxu1 }
 0x3e8   : > { %v5490_v60 = vadd.f32 %v5489_v24, %v5488_v25  ;;  %4682 = vmax.xlane.f32.xlu1 %v8089_v5  ;;  %v5453_v25 = vadd.f32 %v5452_v37, %v5451_v15 }
 0x3e9   : > { %v5491_v34 = vpop.f32.mrf.mxu1 }
 0x3ea   : > { %v8093_v58 = vadd.f32 %v5490_v60, %v4533_v17  ;;  %v5457_v17 = vpop.f32.mrf.mxu0 }
 0x3eb   : > { %v5492_v42 = vpop.f32.mrf.mxu1 }
 0x3ec   : > { %v5493_v63 = vadd.f32 %v5492_v42, %v5491_v34  ;;  %4684 = vmax.xlane.f32.xlu0 %v8093_v58  ;;  %v4568_v34 = vadd.f32 %v5453_v25, %v8074_v59  ;;  %v5456_v42 = vadd.f32 %v5455_v18, %v5454_v45  ;;  %v5458_v13 = vpop.f32.mrf.mxu0 }
 0x3ed   : > { %v5494_v41 = vpop.f32.mrf.mxu1 }
 0x3ee   : > { %v8097_v0 = vadd.f32 %v5493_v63, %v4536_v19 }
 0x3ef   : > { %v5495_v14 = vpop.f32.mrf.mxu1 }
 0x3f0   : > { %v5496_v28 = vadd.f32 %v5495_v14, %v5494_v41  ;;  %4686 = vmax.xlane.f32.xlu1 %v8097_v0  ;;  %v4573_v14 = vadd.f32 %v5456_v42, %v8074_v59 }
 0x3f1   : > { %v5497_v3 = vpop.f32.mrf.mxu1 }
 0x3f2   : > { %v8101_v48 = vadd.f32 %v5496_v28, %v4541_v2  ;;  %v5459_v2 = vadd.f32 %v5458_v13, %v5457_v17 }
 0x3f3   : > { %v5498_v6 = vpop.f32.mrf.mxu1 }
 0x3f4   : > { %v5499_v31 = vadd.f32 %v5498_v6, %v5497_v3  ;;  %4688 = vmax.xlane.f32.xlu0 %v8101_v48  ;;  %v4576_v6 = vadd.f32 %v5459_v2, %v8074_v59 }
 0x3f5   : > { %v5500_v20 = vpop.f32.mrf.mxu1 }
 0x3f6   : > { %v8105_v46 = vadd.f32 %v5499_v31, %v4544_v21 }
 0x3f7   : > { %v5501_v51 = vpop.f32.mrf.mxu1 }
 0x3f8   : > { %v5502_v40 = vadd.f32 %v5501_v51, %v5500_v20  ;;  %4690 = vmax.xlane.f32.xlu1 %v8105_v46 }
 0x3f9   : > { %v5503_v23 = vpop.f32.mrf.mxu1 }
 0x3fa   : > { %v8109_v61 = vadd.f32 %v5502_v40, %v4549_v57 }
 0x3fb   : > { %v5504_v1 = vpop.f32.mrf.mxu1 }
 0x3fc   : > { %v5505_v29 = vadd.f32 %v5504_v1, %v5503_v23  ;;  %4692 = vmax.xlane.f32.xlu0 %v8109_v61 }
 0x3fd   : > { %v5506_v11 = vpop.f32.mrf.mxu1 }
 0x3fe   : > { %v8113_v27 = vadd.f32 %v5505_v29, %v4552_v26 }
 0x3ff   : > { %v5507_v47 = vpop.f32.mrf.mxu1 }
 0x400   : > { %v5508_v38 = vadd.f32 %v5507_v47, %v5506_v11  ;;  %4694 = vmax.xlane.f32.xlu1 %v8113_v27 }
 0x401   : > { %v5509_v32 = vpop.f32.mrf.mxu1 }
 0x402   : > { %v8117_v33 = vadd.f32 %v5508_v38, %v4557_v39 }
 0x403   : > { %v5510_v54 = vpop.f32.mrf.mxu1 }
 0x404   : > { %v5511_v53 = vadd.f32 %v5510_v54, %v5509_v32  ;;  %4696 = vmax.xlane.f32.xlu0 %v8117_v33 }
 0x405   : > { %v5512_v36 = vpop.f32.mrf.mxu1 }
 0x406   : > { %v8121_v16 = vadd.f32 %v5511_v53, %v4560_v8 }
 0x407   : > { %v5513_v9 = vpop.f32.mrf.mxu1 }
 0x408   : > { %v5514_v24 = vadd.f32 %v5513_v9, %v5512_v36  ;;  %4698 = vmax.xlane.f32.xlu1 %v8121_v16 }
 0x409   : > { %v5515_v55 = vpop.f32.mrf.mxu1 }
 0x40a   : > { %v8125_v60 = vadd.f32 %v5514_v24, %v4565_v50 }
 0x40b   : > { %v5516_v44 = vpop.f32.mrf.mxu1 }
 0x40c   : > { %v5517_v19 = vadd.f32 %v5516_v44, %v5515_v55  ;;  %4700 = vmax.xlane.f32.xlu0 %v8125_v60 }
 0x40d   : > { %v5518_v63 = vpop.f32.mrf.mxu1 }
 0x40e   : > { %v8129_v30 = vadd.f32 %v5517_v19, %v4568_v34 }
 0x40f   : > { %v5519_v41 = vpop.f32.mrf.mxu1 }
 0x410   : > { %v5520_v22 = vadd.f32 %v5519_v41, %v5518_v63  ;;  %4702 = vmax.xlane.f32.xlu1 %v8129_v30 }
 0x411   : > { %v5521_v28 = vpop.f32.mrf.mxu1 }
 0x412   : > { %v8133_v4 = vadd.f32 %v5520_v22, %v4573_v14 }
 0x413   : > { %v5522_v3 = vpop.f32.mrf.mxu1 }
 0x414   : > { %v5523_v21 = vadd.f32 %v5522_v3, %v5521_v28  ;;  %4704 = vmax.xlane.f32.xlu0 %v8133_v4 }
 0x416   : > { %v8137_v49 = vadd.f32 %v5523_v21, %v4576_v6 }
 0x418   : > { %4706 = vmax.xlane.f32.xlu1 %v8137_v49 }
 0x465   : > { %v4677_v31 = vpop.xlane.xlu0 %4676 }
 0x466   : > { %v8141_v12 = vsub.f32 %v8077_v35, %v4677_v31 }
 0x468   : > { %v4724_v20 = vmul.f32 1.442695, %v8141_v12 }
 0x469   : > { %v4679_v51 = vpop.xlane.xlu0 %4678 }
 0x46a   : > { %6190 = vpow2.f32 %v4724_v20  ;;  %v8145_v57 = vsub.f32 %v8081_v62, %v4679_v51 }
 0x46c   : > { %v4726_v59 = vmul.f32 1.442695, %v8145_v57 }
 0x46d   : > { %v4681_v7 = vpop.xlane.xlu1 %4680 }
 0x46e   : > { %6192 = vpow2.f32 %v4726_v59  ;;  %v8149_v40 = vsub.f32 %v8085_v43, %v4681_v7 }
 0x470   : > { %v4728_v15 = vmul.f32 1.442695, %v8149_v40 }
 0x471   : > { %v4683_v23 = vpop.xlane.xlu1 %4682 }
 0x472   : > { %6194 = vpow2.f32 %v4728_v15  ;;  %v8153_v35 = vsub.f32 %v8089_v5, %v4683_v23 }
 0x474   : > { %v4730_v1 = vmul.f32 1.442695, %v8153_v35 }
 0x475   : > { %v4685_v26 = vpop.xlane.xlu0 %4684 }
 0x476   : > { %6196 = vpow2.f32 %v4730_v1  ;;  %v8157_v62 = vsub.f32 %v8093_v58, %v4685_v26 }
 0x477   : > { %v6191_v52 = vpop.eup %6190 }
 0x478   : > { %v4732_v29 = vmul.f32 1.442695, %v8157_v62  ;;  %4756 = vadd.xlane.f32.xlu0 %v6191_v52 }
 0x479   : > { %v4687_v43 = vpop.xlane.xlu1 %4686 }
 0x47a   : > { %6198 = vpow2.f32 %v4732_v29  ;;  %v8161_v37 = vsub.f32 %v8097_v0, %v4687_v43 }
 0x47b   : > { %v6193_v11 = vpop.eup %6192 }
 0x47c   : > { %v4734_v5 = vmul.f32 1.442695, %v8161_v37  ;;  %4758 = vadd.xlane.f32.xlu1 %v6193_v11 }
 0x47d   : > { %v4689_v47 = vpop.xlane.xlu0 %4688 }
 0x47e   : > { %6200 = vpow2.f32 %v4734_v5  ;;  %v8165_v39 = vsub.f32 %v8101_v48, %v4689_v47 }
 0x47f   : > { %v6195_v58 = vpop.eup %6194 }
 0x480   : > { %v4736_v56 = vmul.f32 1.442695, %v8165_v39  ;;  %4760 = vadd.xlane.f32.xlu0 %v6195_v58 }
 0x481   : > { %v4691_v38 = vpop.xlane.xlu1 %4690 }
 0x482   : > { %6202 = vpow2.f32 %v4736_v56  ;;  %v8169_v45 = vsub.f32 %v8105_v46, %v4691_v38 }
 0x483   : > { %v6197_v0 = vpop.eup %6196 }
 0x484   : > { %v4738_v32 = vmul.f32 1.442695, %v8169_v45  ;;  %4762 = vadd.xlane.f32.xlu1 %v6197_v0 }
 0x485   : > { %v4693_v54 = vpop.xlane.xlu0 %4692 }
 0x486   : > { %6204 = vpow2.f32 %v4738_v32  ;;  %v8173_v8 = vsub.f32 %v8109_v61, %v4693_v54 }
 0x487   : > { %v6199_v48 = vpop.eup %6198 }
 0x488   : > { %v4740_v10 = vmul.f32 1.442695, %v8173_v8  ;;  %4764 = vadd.xlane.f32.xlu0 %v6199_v48 }
 0x489   : > { %v4695_v53 = vpop.xlane.xlu1 %4694 }
 0x48a   : > { %6206 = vpow2.f32 %v4740_v10  ;;  %v8177_v18 = vsub.f32 %v8113_v27, %v4695_v53 }
 0x48b   : > { %v6201_v46 = vpop.eup %6200 }
 0x48c   : > { %v4742_v36 = vmul.f32 1.442695, %v8177_v18  ;;  %4766 = vadd.xlane.f32.xlu1 %v6201_v46 }
 0x48d   : > { %v4697_v9 = vpop.xlane.xlu0 %4696 }
 0x48e   : > { %6208 = vpow2.f32 %v4742_v36  ;;  %v8181_v50 = vsub.f32 %v8117_v33, %v4697_v9 }
 0x48f   : > { %v6203_v61 = vpop.eup %6202 }
 0x490   : > { %v4744_v25 = vmul.f32 1.442695, %v8181_v50  ;;  %4768 = vadd.xlane.f32.xlu0 %v6203_v61 }
 0x491   : > { %v4699_v24 = vpop.xlane.xlu1 %4698 }
 0x492   : > { %6210 = vpow2.f32 %v4744_v25  ;;  %v8185_v17 = vsub.f32 %v8121_v16, %v4699_v24 }
 0x493   : > { %v6205_v27 = vpop.eup %6204 }
 0x494   : > { %v4746_v55 = vmul.f32 1.442695, %v8185_v17  ;;  %4770 = vadd.xlane.f32.xlu1 %v6205_v27 }
 0x495   : > { %v4701_v44 = vpop.xlane.xlu0 %4700 }
 0x496   : > { %6212 = vpow2.f32 %v4746_v55  ;;  %v8189_v34 = vsub.f32 %v8125_v60, %v4701_v44 }
 0x497   : > { %v6207_v33 = vpop.eup %6206 }
 0x498   : > { %v4748_v42 = vmul.f32 1.442695, %v8189_v34  ;;  %4772 = vadd.xlane.f32.xlu0 %v6207_v33 }
 0x499   : > { %v4703_v19 = vpop.xlane.xlu1 %4702 }
 0x49a   : > { %6214 = vpow2.f32 %v4748_v42  ;;  %v8193_v13 = vsub.f32 %v8129_v30, %v4703_v19 }
 0x49b   : > { %v6209_v16 = vpop.eup %6208 }
 0x49c   : > { %v4750_v63 = vmul.f32 1.442695, %v8193_v13  ;;  %4774 = vadd.xlane.f32.xlu1 %v6209_v16 }
 0x49d   : > { %v4705_v41 = vpop.xlane.xlu0 %4704 }
 0x49e   : > { %6216 = vpow2.f32 %v4750_v63  ;;  %v8197_v14 = vsub.f32 %v8133_v4, %v4705_v41 }
 0x49f   : > { %v6211_v60 = vpop.eup %6210 }
 0x4a0   : > { %v4752_v2 = vmul.f32 1.442695, %v8197_v14  ;;  %4776 = vadd.xlane.f32.xlu0 %v6211_v60 }
 0x4a1   : > { %v4707_v22 = vpop.xlane.xlu1 %4706 }
 0x4a2   : > { %6218 = vpow2.f32 %v4752_v2  ;;  %v8201_v28 = vsub.f32 %v8137_v49, %v4707_v22 }
 0x4a3   : > { %v6213_v30 = vpop.eup %6212 }
 0x4a4   : > { %v4754_v3 = vmul.f32 1.442695, %v8201_v28  ;;  %4778 = vadd.xlane.f32.xlu1 %v6213_v30 }
 0x4a6   : > { %6220 = vpow2.f32 %v4754_v3 }
 0x4a7   : > { %v6215_v6 = vpop.eup %6214 }
 0x4a8   : > { %4780 = vadd.xlane.f32.xlu0 %v6215_v6 }
 0x4ab   : > { %v6217_v4 = vpop.eup %6216 }
 0x4ac   : > { %4782 = vadd.xlane.f32.xlu1 %v6217_v4 }
 0x4af   : > { %v6219_v21 = vpop.eup %6218 }
 0x4b0   : > { %4784 = vadd.xlane.f32.xlu0 %v6219_v21 }
 0x4b3   : > { %v6221_v31 = vpop.eup %6220 }
 0x4b4   : > { %4786 = vadd.xlane.f32.xlu1 %v6221_v31 }
 0x501   : > { %v4757_v20 = vpop.xlane.xlu0 %4756 }
 0x502   : > { %6222 = vlog2.f32 %v4757_v20 }
 0x505   : > { %v4759_v51 = vpop.xlane.xlu1 %4758 }
 0x506   : > { %6224 = vlog2.f32 %v4759_v51 }
 0x509   : > { %v4761_v49 = vpop.xlane.xlu0 %4760 }
 0x50a   : > { %6226 = vlog2.f32 %v4761_v49 }
 0x50d   : > { %v4763_v59 = vpop.xlane.xlu1 %4762 }
 0x50e   : > { %6228 = vlog2.f32 %v4763_v59 }
 0x50f   : > { %v6223_v7 = vpop.eup %6222 }
 0x510   : > { %v4789_v15 = vmul.f32 0.6931472, %v6223_v7 }
 0x511   : > { %v4765_v23 = vpop.xlane.xlu0 %4764 }
 0x512   : > { %v4820_v1 = vsub.f32 %v8141_v12, %v4789_v15  ;;  %6230 = vlog2.f32 %v4765_v23 }
 0x513   : > { %v6225_v26 = vpop.eup %6224 }
 0x514   : > { %4836 = vst [vmem:[%s8208_s8] sm:$0xff] %v4820_v1  ;;  %v4791_v52 = vmul.f32 0.6931472, %v6225_v26 }
 0x515   : > { %v4767_v29 = vpop.xlane.xlu1 %4766 }
 0x516   : > { %v4821_v43 = vsub.f32 %v8145_v57, %v4791_v52  ;;  %6232 = vlog2.f32 %v4767_v29 }
 0x517   : > { %v6227_v11 = vpop.eup %6226 }
 0x518   : > { %4837 = vst [vmem:[%s8208_s8 + $0x8] sm:$0xff] %v4821_v43  ;;  %v4793_v5 = vmul.f32 0.6931472, %v6227_v11 }
 0x519   : > { %v4769_v47 = vpop.xlane.xlu0 %4768 }
 0x51a   : > { %v4822_v12 = vsub.f32 %v8149_v40, %v4793_v5  ;;  %6234 = vlog2.f32 %v4769_v47 }
 0x51b   : > { %v6229_v58 = vpop.eup %6228 }
 0x51c   : > { %4838 = vst [vmem:[%s8208_s8 + $0x10] sm:$0xff] %v4822_v12  ;;  %v4795_v56 = vmul.f32 0.6931472, %v6229_v58 }
 0x51d   : > { %v4771_v38 = vpop.xlane.xlu1 %4770 }
 0x51e   : > { %v4823_v0 = vsub.f32 %v8153_v35, %v4795_v56  ;;  %6236 = vlog2.f32 %v4771_v38 }
 0x51f   : > { %v6231_v32 = vpop.eup %6230 }
 0x520   : > { %4839 = vst [vmem:[%s8208_s8 + $0x18] sm:$0xff] %v4823_v0  ;;  %v4797_v57 = vmul.f32 0.6931472, %v6231_v32 }
 0x521   : > { %v4773_v54 = vpop.xlane.xlu0 %4772 }
 0x522   : > { %v4824_v48 = vsub.f32 %v8157_v62, %v4797_v57  ;;  %6238 = vlog2.f32 %v4773_v54 }
 0x523   : > { %v6233_v10 = vpop.eup %6232 }
 0x524   : > { %4840 = vst [vmem:[%s8208_s8 + $0x20] sm:$0xff] %v4824_v48  ;;  %v4799_v40 = vmul.f32 0.6931472, %v6233_v10 }
 0x525   : > { %v4775_v53 = vpop.xlane.xlu1 %4774 }
 0x526   : > { %v4825_v46 = vsub.f32 %v8161_v37, %v4799_v40  ;;  %6240 = vlog2.f32 %v4775_v53 }
 0x527   : > { %v6235_v36 = vpop.eup %6234 }
 0x528   : > { %4841 = vst [vmem:[%s8208_s8 + $0x28] sm:$0xff] %v4825_v46  ;;  %v4801_v35 = vmul.f32 0.6931472, %v6235_v36 }
 0x529   : > { %v4777_v9 = vpop.xlane.xlu0 %4776 }
 0x52a   : > { %v4826_v61 = vsub.f32 %v8165_v39, %v4801_v35  ;;  %6242 = vlog2.f32 %v4777_v9 }
 0x52b   : > { %v6237_v25 = vpop.eup %6236 }
 0x52c   : > { %4842 = vst [vmem:[%s8208_s8 + $0x30] sm:$0xff] %v4826_v61  ;;  %v4803_v62 = vmul.f32 0.6931472, %v6237_v25 }
 0x52d   : > { %v4779_v24 = vpop.xlane.xlu1 %4778 }
 0x52e   : > { %v4827_v27 = vsub.f32 %v8169_v45, %v4803_v62  ;;  %6244 = vlog2.f32 %v4779_v24 }
 0x52f   : > { %v6239_v55 = vpop.eup %6238 }
 0x530   : > { %4843 = vst [vmem:[%s8208_s8 + $0x38] sm:$0xff] %v4827_v27  ;;  %v4805_v37 = vmul.f32 0.6931472, %v6239_v55 }
 0x531   : > { %v4781_v44 = vpop.xlane.xlu0 %4780 }
 0x532   : > { %v4828_v33 = vsub.f32 %v8173_v8, %v4805_v37  ;;  %6246 = vlog2.f32 %v4781_v44 }
 0x533   : > { %v6241_v42 = vpop.eup %6240 }
 0x534   : > { %4844 = vst [vmem:[%s8208_s8 + $0x40] sm:$0xff] %v4828_v33  ;;  %v4807_v39 = vmul.f32 0.6931472, %v6241_v42 }
 0x535   : > { %v4783_v19 = vpop.xlane.xlu1 %4782 }
 0x536   : > { %v4829_v16 = vsub.f32 %v8177_v18, %v4807_v39  ;;  %6248 = vlog2.f32 %v4783_v19 }
 0x537   : > { %v6243_v63 = vpop.eup %6242 }
 0x538   : > { %4845 = vst [vmem:[%s8208_s8 + $0x48] sm:$0xff] %v4829_v16  ;;  %v4809_v45 = vmul.f32 0.6931472, %v6243_v63 }
 0x539   : > { %v4785_v41 = vpop.xlane.xlu0 %4784 }
 0x53a   : > { %v4830_v60 = vsub.f32 %v8181_v50, %v4809_v45  ;;  %6250 = vlog2.f32 %v4785_v41 }
 0x53b   : > { %v6245_v2 = vpop.eup %6244 }
 0x53c   : > { %4846 = vst [vmem:[%s8208_s8 + $0x50] sm:$0xff] %v4830_v60  ;;  %v4811_v8 = vmul.f32 0.6931472, %v6245_v2 }
 0x53d   : > { %v4787_v22 = vpop.xlane.xlu1 %4786 }
 0x53e   : > { %v4831_v30 = vsub.f32 %v8185_v17, %v4811_v8  ;;  %6252 = vlog2.f32 %v4787_v22 }
 0x53f   : > { %v6247_v18 = vpop.eup %6246 }
 0x540   : > { %4847 = vst [vmem:[%s8208_s8 + $0x58] sm:$0xff] %v4831_v30  ;;  %v4813_v3 = vmul.f32 0.6931472, %v6247_v18 }
 0x542   : > { %v4832_v6 = vsub.f32 %v8189_v34, %v4813_v3 }
 0x543   : > { %v6249_v4 = vpop.eup %6248 }
 0x544   : > { %4848 = vst [vmem:[%s8208_s8 + $0x60] sm:$0xff] %v4832_v6  ;;  %v4815_v50 = vmul.f32 0.6931472, %v6249_v4 }
 0x546   : > { %v4833_v21 = vsub.f32 %v8193_v13, %v4815_v50 }
 0x547   : > { %v6251_v31 = vpop.eup %6250 }
 0x548   : > { %4849 = vst [vmem:[%s8208_s8 + $0x68] sm:$0xff] %v4833_v21  ;;  %v4817_v20 = vmul.f32 0.6931472, %v6251_v31 }
 0x54a   : > { %v4834_v17 = vsub.f32 %v8197_v14, %v4817_v20 }
 0x54b   : > { %v6253_v51 = vpop.eup %6252 }
 0x54c   : > { %4850 = vst [vmem:[%s8208_s8 + $0x70] sm:$0xff] %v4834_v17  ;;  %v4819_v49 = vmul.f32 0.6931472, %v6253_v51 }
 0x54e   : > { %v4835_v34 = vsub.f32 %v8201_v28, %v4819_v49 }
 0x550   : > { %4851 = vst [vmem:[%s8208_s8 + $0x78] sm:$0xff] %v4835_v34 }
 0x551   : > { %6375 = shalt.err (!%p6372_p3)
}
 0x552   : > { %s6376_s15 = scalar_lea.hbm %s8244_s19, 2048  ;;  %s6380_s13 = scalar_lea.hbm %s8299_s7, 4096 }
 0x553   : > { %p6377_p2 = scmp.ne.s32.totalorder %s8244_s19, %s6376_s15  ;;  %p6381_p6 = scmp.lt.s32.totalorder %s8244_s19, %s8299_s7 }
 0x554   : > { %p6382_p9 = scmp.lt.s32.totalorder %s6380_s13, %s6376_s15 }
 0x555   : > { %p6378_p4 = pnand %p6377_p2, %p6520_p5 }
 0x556   : > { %p6383_p10 = por %p6382_p9, %p6381_p6 }
 0x557   : > { %p6379_p13 = pneg %p6378_p4 }
 0x559   : > { %p6384_p12 = pnand %p6383_p10, %p6379_p13 }
 0x55b   : > { %6387 = shalt.err (!%p6384_p12)
}
 0x55c   : > { %s6440_s16 = smov 128   ;;  %s6441_s18 = smov 8  }
 0x55d   : > { %5533 = dma.vmem_to_hbm [thread:$0]  (%p6520_p5), %s8246_s17, 2048, %s8244_s19, %s8252_s9, %s6440_s16, %s6440_s16, %s6441_s18  }
 0x55e PF: > { %p5550_p7 = scmp.ge.s32.totalorder %s6430_s27, 2  ;;  %s4881_s28 = sand.u32 1, %s6418_s24  }
 0x55f   : > { %p8347_p8 = scmp.ne.s32.totalorder %s8309_s12, 0  ;;  %s4882_s20 = scalar_lea.sflag [#allocation4], %s4881_s28 }
 0x561   : > { %p5543_p11 = pnand %p5550_p7, %p8347_p8 }
 0x563   : > { %p5544_p0 = pneg %p5543_p11 }
 0x565   : > { %6413 = dma.done.wait (%p5544_p0), %s4882_s20, 2048  }
 0x566   : > { %6415 = vsyncadd (%p5544_p0), %s4882_s20, 4294965248  ;;  %p19_p1 = scmp.ge.s32.totalorder %s6507_s30, 4   ;;  %s8348_s24 = smov %s6422_s25 }
 0x567   : > { %s8349_s25 = smov %s6426_s26  ;;  %s8350_s26 = smov %s6518_s10 }
 0x568   : > { %s8351_s27 = smov %s6507_s30  ;;  %21 = sbr.rel (!%p19_p1) target bundleno = 5 (0x5), region = 92 }
 0x56d   :  { %4887 = vsyncpa [#allocation3], 1 }
 0x56e   :  { %4889 = vsyncpa [#allocation3 + $0x1], 1 }
 0x56f   :  { %4890 = vsyncpa [#allocation6], 1 }
 0x570   :  { %4891 = vsyncpa [#allocation4], 1 }
 0x571   :  { %4893 = vsyncpa [#allocation4 + $0x1], 1 }

</bundles_post_ra>
